<compile_context>
chip_gen: v5e
topology: v5e:2x2
jax: 0.10.0
libtpu: 0.0.40
codegen_flags: <defaults>
</compile_context>

<pallas_src>
import math
import functools

import jax
import jax.numpy as jnp
from jax.experimental import pallas as pl
from jax.experimental.pallas import tpu as pltpu


# ---------------------------------------------------------------------------
# Fused kernel: one EncoderLayer step for one (batch, row-tile) activation slab.
# grid = (B, H // TH, num_layers); the f32 activation tile lives in act_ref (VMEM)
# across the innermost layer axis.  All weights are resident in VMEM.
# ---------------------------------------------------------------------------
def fused_encoder_kernel(
    x_ref, pos_ref,
    wq_ref, wk_ref, wv_ref, wo_ref, w1_ref, w2_ref,
    bqkv_ref, dvec_ref, b1_ref,
    o_ref,
    act_ref,
    *, heads, dim_head, W, eps=1e-5,
):
    layer = pl.program_id(2)

    # Layer 0: pull the input row-tile into the resident VMEM activation buffer.
    @pl.when(layer == 0)
    def _init():
        act_ref[...] = x_ref[0].astype(jnp.float32)

    rows, D = act_ref.shape                 # rows = TH * W
    TH = rows // W
    dh = dim_head

    x = act_ref[...]                                        # (rows, D) f32 residual
    qk_in_bf = (x + pos_ref[...].astype(jnp.float32)).astype(jnp.bfloat16)
    x_bf = x.astype(jnp.bfloat16)

    def head_bias(j, m):                    # j: 0=q, 1=k, 2=v ; -> (1, dh) f32
        return bqkv_ref[layer, j * heads + m]

    # --- per-head attention; head-stacked weights, no activation relayouts --------
    # NOTE: per-head projections use only dh MXU lanes; for production configs with
    # dh < 128 consider padding dh to 128 (review item).  Toy config is tiny anyway.
    attn_out = jnp.zeros((rows, D), jnp.float32)
    for m in range(heads):
        q_m = (jnp.dot(qk_in_bf, wq_ref[layer, m],          # scale folded into wq/bq
                       preferred_element_type=jnp.float32) + head_bias(0, m))
        k_m = (jnp.dot(qk_in_bf, wk_ref[layer, m],
                       preferred_element_type=jnp.float32) + head_bias(1, m))
        v_m = (jnp.dot(x_bf, wv_ref[layer, m],
                       preferred_element_type=jnp.float32) + head_bias(2, m))

        # (rows, dh) -> (TH, W, dh): pure view when W % 8 == 0 (asserted in wrapper).
        qb = q_m.reshape(TH, W, dh).astype(jnp.bfloat16)
        kb = k_m.reshape(TH, W, dh).astype(jnp.bfloat16)
        vb = v_m.reshape(TH, W, dh).astype(jnp.bfloat16)

        # width-only attention, batched over the TH rows of the tile
        dots = jnp.einsum('twd,tvd->twv', qb, kb,
                          preferred_element_type=jnp.float32)      # (TH, W, W)
        dots = dots - jnp.max(dots, axis=-1, keepdims=True)
        e = jnp.exp(dots)
        denom = jnp.sum(e, axis=-1, keepdims=True)                 # (TH, W, 1)
        pv = jnp.einsum('twv,tvd->twd', e.astype(jnp.bfloat16), vb,
                        preferred_element_type=jnp.float32)        # (TH, W, dh)
        # normalize AFTER the PV matmul (dh-wide instead of W-wide multiply)
        a_m = (pv * pl.reciprocal(denom, approx=True)).reshape(rows, dh)

        # head merge folded into the (bias-free) output projection
        attn_out = attn_out + jnp.dot(a_m.astype(jnp.bfloat16), wo_ref[layer, m],
                                      preferred_element_type=jnp.float32)

    # --- residual + LayerNorm 1 (f32) ---
    h1 = attn_out + x
    mu1 = jnp.mean(h1, axis=-1, keepdims=True)
    var1 = jnp.mean(jnp.square(h1 - mu1), axis=-1, keepdims=True)
    h1n = (h1 - mu1) * jax.lax.rsqrt(var1 + eps) * dvec_ref[layer, 0] + dvec_ref[layer, 1]

    # --- FeedForward: Linear -> ReLU -> Linear (dropout = identity in eval) ---
    ff = jnp.dot(h1n.astype(jnp.bfloat16), w1_ref[layer],
                 preferred_element_type=jnp.float32) + b1_ref[layer]
    ff = jnp.maximum(ff, 0.0)
    ff = jnp.dot(ff.astype(jnp.bfloat16), w2_ref[layer],
                 preferred_element_type=jnp.float32) + dvec_ref[layer, 4]

    # --- residual + LayerNorm 2 (f32) ---
    h2 = h1n + ff
    mu2 = jnp.mean(h2, axis=-1, keepdims=True)
    var2 = jnp.mean(jnp.square(h2 - mu2), axis=-1, keepdims=True)
    out = (h2 - mu2) * jax.lax.rsqrt(var2 + eps) * dvec_ref[layer, 2] + dvec_ref[layer, 3]

    act_ref[...] = out                      # carry to the next layer step (stays in VMEM)

    # After the last layer, write the finished tile back to HBM once.
    @pl.when(layer == pl.num_programs(2) - 1)
    def _store():
        o_ref[0] = out.astype(o_ref.dtype)


# ---------------------------------------------------------------------------
# pallas_call wrapper: full encoder stack in one call, resident weights.
# ---------------------------------------------------------------------------
def transformer_encoder(x, pos, p, *, heads, dim_head, W, row_tile=None):
    """x: (B, H*W, D) bf16 ; pos: (H*W, D) bf16 ; p: dict of (L, ...)-stacked params."""
    B, N, D = x.shape
    assert N % W == 0
    H = N // W
    L = p["w1"].shape[0]

    TH = H if row_tile is None else row_tile      # shrink TH for very large BEV maps
    assert H % TH == 0, "row_tile must divide H"
    assert W % 8 == 0, "W must be a multiple of 8 (sublane view for (rows,dh)->(TH,W,dh))"
    rows = TH * W
    assert rows % 16 == 0, "row_tile*W must be a multiple of 16 (bf16 sublane packing)"

    kernel = functools.partial(fused_encoder_kernel,
                               heads=heads, dim_head=dim_head, W=W)

    act_map = lambda b, h, l: (b, h, 0)           # constant along l -> DMA'd once per (b, h)
    pos_map = lambda b, h, l: (h, 0)              # batch- and layer-invariant

    def resident(arr):                            # full-array block, constant index_map
        nd = arr.ndim
        return pl.BlockSpec(arr.shape, lambda b, h, l, nd=nd: (0,) * nd)

    in_specs = [
        pl.BlockSpec((1, rows, D), act_map),      # x  (bf16)
        pl.BlockSpec((rows, D), pos_map),         # pos (bf16)
        resident(p["wq"]),                        # (L, heads, D, dh) bf16, scale folded
        resident(p["wk"]),                        # (L, heads, D, dh) bf16
        resident(p["wv"]),                        # (L, heads, D, dh) bf16
        resident(p["wo"]),                        # (L, heads, dh, D) bf16 (bias=False)
        resident(p["w1"]),                        # (L, D, F) bf16
        resident(p["w2"]),                        # (L, F, D) bf16
        resident(p["bqkv"]),                      # (L, 3*heads, 1, dh) f32
        resident(p["dvecs"]),                     # (L, 5, 1, D) f32  [ln1_g, ln1_b, ln2_g, ln2_b, b2]
        resident(p["b1"]),                        # (L, 1, F) f32
    ]

    # Scoped-VMEM budget: resident weights (x2 for buffering slack) + double-buffered
    # bf16 activation tiles + f32 scratch + headroom; clamp into [32 MiB, 64 MiB] so the
    # limit is raised above the 16/32 MiB defaults but never exceeds v7x's 64 MiB.
    wbytes = sum(int(p[k].size) * p[k].dtype.itemsize
                 for k in ("wq", "wk", "wv", "wo", "w1", "w2", "bqkv", "dvecs", "b1"))
    abytes = rows * D * 16                        # 3 bf16 blocks x 2 buffers + f32 scratch
    vmem_limit = int(min(max(2 * wbytes + 3 * abytes + (4 << 20), 32 << 20), 64 << 20))

    return pl.pallas_call(
        kernel,
        out_shape=jax.ShapeDtypeStruct((B, N, D), jnp.bfloat16),
        grid_spec=pltpu.PrefetchScalarGridSpec(
            num_scalar_prefetch=0,
            grid=(B, H // TH, L),
            in_specs=in_specs,
            out_specs=pl.BlockSpec((1, rows, D), act_map),
            scratch_shapes=[pltpu.VMEM((rows, D), jnp.float32)],
        ),
        compiler_params=pltpu.CompilerParams(
            dimension_semantics=("parallel", "parallel", "arbitrary"),
            vmem_limit_bytes=vmem_limit),
    )(x, pos, p["wq"], p["wk"], p["wv"], p["wo"], p["w1"], p["w2"],
      p["bqkv"], p["dvecs"], p["b1"])


# ---------------------------------------------------------------------------
# Plain-JAX glue: sine positional embedding (DETR-style), params, forward.
# ---------------------------------------------------------------------------
def position_embedding_sine(h, w, d_model, temperature=10000.0):
    num_pos_feats = d_model // 2
    y_embed = jnp.broadcast_to(
        jnp.arange(1, h + 1, dtype=jnp.float32)[:, None], (h, w))
    x_embed = jnp.broadcast_to(
        jnp.arange(1, w + 1, dtype=jnp.float32)[None, :], (h, w))
    dim_t = jnp.arange(num_pos_feats, dtype=jnp.float32)
    dim_t = temperature ** (2.0 * jnp.floor(dim_t / 2.0) / num_pos_feats)
    pos_x = x_embed[..., None] / dim_t
    pos_y = y_embed[..., None] / dim_t
    pos_x = jnp.stack((jnp.sin(pos_x[..., 0::2]), jnp.cos(pos_x[..., 1::2])),
                      axis=3).reshape(h, w, num_pos_feats)
    pos_y = jnp.stack((jnp.sin(pos_y[..., 0::2]), jnp.cos(pos_y[..., 1::2])),
                      axis=3).reshape(h, w, num_pos_feats)
    return jnp.concatenate((pos_y, pos_x), axis=2)          # (h, w, d_model)


def init_params(key, d_model, d_ff, heads, num_layers):
    """Head-stacked, L-stacked weights; matmul weights bf16; softmax scale folded into q."""
    L, D, F = num_layers, d_model, d_ff
    dh = F // heads
    scale = dh ** (-0.5)
    ks = jax.random.split(key, 10)
    s_in = 1.0 / math.sqrt(D)
    s_ff = 1.0 / math.sqrt(F)
    nrm = lambda k, shape, s: jax.random.normal(k, shape, jnp.float32) * s

    # Mapping from torch Linear(d_model, d_ff) weight Wt (F, D):
    #   w[l, h] = Wt.T[:, h*dh:(h+1)*dh]   (and wo[l, h] = Wo.T[h*dh:(h+1)*dh, :])
    wq = nrm(ks[0], (L, heads, D, dh), s_in) * scale     # softmax scale folded in
    wk = nrm(ks[1], (L, heads, D, dh), s_in)
    wv = nrm(ks[2], (L, heads, D, dh), s_in)
    wo = nrm(ks[3], (L, heads, dh, D), s_ff)             # to_out, bias=False
    w1 = nrm(ks[4], (L, D, F), s_in)
    w2 = nrm(ks[5], (L, F, D), s_ff)

    bq = nrm(ks[6], (L, heads, 1, dh), 0.01) * scale     # scale folded into q bias too
    bk = nrm(ks[7], (L, heads, 1, dh), 0.01)
    bv = nrm(ks[8], (L, heads, 1, dh), 0.01)
    bqkv = jnp.concatenate([bq, bk, bv], axis=1)          # (L, 3*heads, 1, dh)
    b1 = nrm(ks[9], (L, 1, F), 0.01)

    dvecs = jnp.stack([
        jnp.ones((L, 1, D), jnp.float32),    # ln1 gamma
        jnp.zeros((L, 1, D), jnp.float32),   # ln1 beta
        jnp.ones((L, 1, D), jnp.float32),    # ln2 gamma
        jnp.zeros((L, 1, D), jnp.float32),   # ln2 beta
        jnp.zeros((L, 1, D), jnp.float32),   # ffn b2
    ], axis=1)                               # (L, 5, 1, D)

    return dict(
        wq=wq.astype(jnp.bfloat16), wk=wk.astype(jnp.bfloat16),
        wv=wv.astype(jnp.bfloat16), wo=wo.astype(jnp.bfloat16),
        w1=w1.astype(jnp.bfloat16), w2=w2.astype(jnp.bfloat16),
        bqkv=bqkv, dvecs=dvecs, b1=b1,
    )


def proj_k_forward(x_nchw, params, *, num_heads, d_ff, row_tile=None):
    """x_nchw: (B, d_model, H, W) f32 -> (B, d_model, H, W) f32"""
    assert d_ff % num_heads == 0
    B, D, H, W = x_nchw.shape
    x = jnp.transpose(x_nchw, (0, 2, 3, 1)).reshape(B, H * W, D).astype(jnp.bfloat16)
    pos = position_embedding_sine(H, W, D).reshape(H * W, D).astype(jnp.bfloat16)
    y = transformer_encoder(x, pos, params, heads=num_heads,
                            dim_head=d_ff // num_heads, W=W, row_tile=row_tile)
    y = y.reshape(B, H, W, D).astype(jnp.float32)
    return jnp.transpose(y, (0, 3, 1, 2))


if __name__ == "__main__":
    # small config consistent with the module
    B, H, W = 2, 8, 8
    d_model, num_heads, d_ff, num_layers = 32, 4, 64, 2

    key = jax.random.PRNGKey(0)
    kx, kp = jax.random.split(key)
    x = jax.random.normal(kx, (B, d_model, H, W), dtype=jnp.float32)
    params = init_params(kp, d_model, d_ff, num_heads, num_layers)

    fwd = jax.jit(functools.partial(proj_k_forward, num_heads=num_heads, d_ff=d_ff))
    out = fwd(x, params)
    jax.block_until_ready(out)
    assert out.shape == (B, d_model, H, W), out.shape
    assert bool(jnp.all(jnp.isfinite(out)))
    print("KERNEL_OK")
</pallas_src>

<mosaic_0001>
module attributes {stable_mosaic.version = 11 : i64} {
  func.func @fused_encoder_kernel(%arg0: i32, %arg1: i32, %arg2: i32, %arg3: memref<1x64x32xbf16, #tpu.memory_space<vmem>>, %arg4: memref<64x32xbf16, #tpu.memory_space<vmem>>, %arg5: memref<2x4x32x16xbf16, #tpu.memory_space<vmem>>, %arg6: memref<2x4x32x16xbf16, #tpu.memory_space<vmem>>, %arg7: memref<2x4x32x16xbf16, #tpu.memory_space<vmem>>, %arg8: memref<2x4x16x32xbf16, #tpu.memory_space<vmem>>, %arg9: memref<2x32x64xbf16, #tpu.memory_space<vmem>>, %arg10: memref<2x64x32xbf16, #tpu.memory_space<vmem>>, %arg11: memref<2x12x1x16xf32, #tpu.memory_space<vmem>>, %arg12: memref<2x5x1x32xf32, #tpu.memory_space<vmem>>, %arg13: memref<2x1x64xf32, #tpu.memory_space<vmem>>, %arg14: memref<1x64x32xbf16, #tpu.memory_space<vmem>>, %arg15: memref<64x32xf32, #tpu.memory_space<vmem>>) attributes {dimension_semantics = [#tpu.dimension_semantics<parallel>, #tpu.dimension_semantics<parallel>, #tpu.dimension_semantics<arbitrary>], iteration_bounds = array<i64: 2, 1, 2>, scalar_prefetch = 0 : i64, scratch_operands = 1 : i64, tpu.core_type = #tpu.core_type<tc>, window_params = [{transform_indices = @transform_0, window_bounds = array<i64: 1, 64, 32>}, {transform_indices = @transform_1, window_bounds = array<i64: 64, 32>}, {pipeline_mode = #tpu.pipeline_mode<synchronous>, transform_indices = @transform_2, window_bounds = array<i64: 2, 4, 32, 16>}, {pipeline_mode = #tpu.pipeline_mode<synchronous>, transform_indices = @transform_3, window_bounds = array<i64: 2, 4, 32, 16>}, {pipeline_mode = #tpu.pipeline_mode<synchronous>, transform_indices = @transform_4, window_bounds = array<i64: 2, 4, 32, 16>}, {pipeline_mode = #tpu.pipeline_mode<synchronous>, transform_indices = @transform_5, window_bounds = array<i64: 2, 4, 16, 32>}, {pipeline_mode = #tpu.pipeline_mode<synchronous>, transform_indices = @transform_6, window_bounds = array<i64: 2, 32, 64>}, {pipeline_mode = #tpu.pipeline_mode<synchronous>, transform_indices = @transform_7, window_bounds = array<i64: 2, 64, 32>}, {pipeline_mode = #tpu.pipeline_mode<synchronous>, transform_indices = @transform_8, window_bounds = array<i64: 2, 12, 1, 16>}, {pipeline_mode = #tpu.pipeline_mode<synchronous>, transform_indices = @transform_9, window_bounds = array<i64: 2, 5, 1, 32>}, {pipeline_mode = #tpu.pipeline_mode<synchronous>, transform_indices = @transform_10, window_bounds = array<i64: 2, 1, 64>}, {transform_indices = @transform_11, window_bounds = array<i64: 1, 64, 32>}]} {
    %c0_i32 = arith.constant 0 : i32
    %0 = arith.cmpi eq, %arg2, %c0_i32 : i32
    %1 = arith.extui %0 : i1 to i32
    %c0_i32_0 = arith.constant 0 : i32
    %2 = arith.cmpi ne, %1, %c0_i32_0 : i32
    scf.if %2 {
      %c0_146 = arith.constant 0 : index
      %c0_147 = arith.constant 0 : index
      %c0_148 = arith.constant 0 : index
      %306 = vector.load %arg3[%c0_146, %c0_147, %c0_148] : memref<1x64x32xbf16, #tpu.memory_space<vmem>>, vector<1x64x32xbf16>
      %307 = vector.shape_cast %306 : vector<1x64x32xbf16> to vector<64x32xbf16>
      %308 = arith.extf %307 : vector<64x32xbf16> to vector<64x32xf32>
      %c0_149 = arith.constant 0 : index
      %c0_150 = arith.constant 0 : index
      %309 = vector.load %arg15[%c0_149, %c0_150] : memref<64x32xf32, #tpu.memory_space<vmem>>, vector<64x32xf32>
      tpu.vector_store %arg15[%c0_149, %c0_150], %308 {strides = array<i32>} : memref<64x32xf32, #tpu.memory_space<vmem>>, vector<64x32xf32>,
    } else {
    }
    %c0 = arith.constant 0 : index
    %c0_1 = arith.constant 0 : index
    %3 = vector.load %arg15[%c0, %c0_1] : memref<64x32xf32, #tpu.memory_space<vmem>>, vector<64x32xf32>
    %c0_2 = arith.constant 0 : index
    %c0_3 = arith.constant 0 : index
    %4 = vector.load %arg4[%c0_2, %c0_3] : memref<64x32xbf16, #tpu.memory_space<vmem>>, vector<64x32xbf16>
    %5 = arith.extf %4 : vector<64x32xbf16> to vector<64x32xf32>
    %6 = arith.addf %3, %5 : vector<64x32xf32>
    %7 = arith.truncf %6 : vector<64x32xf32> to vector<64x32xbf16>
    %8 = arith.truncf %3 : vector<64x32xf32> to vector<64x32xbf16>
    %cst = arith.constant 0.000000e+00 : f32
    %9 = vector.broadcast %cst : f32 to vector<64x32xf32>
    %10 = arith.index_cast %arg2 : i32 to index
    %c0_4 = arith.constant 0 : index
    %c0_5 = arith.constant 0 : index
    %c0_6 = arith.constant 0 : index
    %11 = vector.load %arg5[%10, %c0_4, %c0_5, %c0_6] : memref<2x4x32x16xbf16, #tpu.memory_space<vmem>>, vector<1x1x32x16xbf16>
    %12 = vector.shape_cast %11 : vector<1x1x32x16xbf16> to vector<32x16xbf16>
    %cst_7 = arith.constant dense<0.000000e+00> : vector<64x16xf32>
    %13 = tpu.matmul %7, %12, %cst_7 {dimension_numbers = #tpu.dot_dimension_numbers<[1], [0], [0], [1], [0, 0, 1, 1], [], []>} : vector<64x32xbf16>, vector<32x16xbf16>, vector<64x16xf32> -> vector<64x16xf32>
    %14 = arith.index_cast %arg2 : i32 to index
    %c0_8 = arith.constant 0 : index
    %c0_9 = arith.constant 0 : index
    %c0_10 = arith.constant 0 : index
    %15 = vector.load %arg11[%14, %c0_8, %c0_9, %c0_10] : memref<2x12x1x16xf32, #tpu.memory_space<vmem>>, vector<1x1x1x16xf32>
    %16 = vector.shape_cast %15 : vector<1x1x1x16xf32> to vector<1x16xf32>
    %17 = vector.broadcast %16 : vector<1x16xf32> to vector<64x16xf32>
    %18 = arith.addf %13, %17 : vector<64x16xf32>
    %19 = arith.index_cast %arg2 : i32 to index
    %c0_11 = arith.constant 0 : index
    %c0_12 = arith.constant 0 : index
    %c0_13 = arith.constant 0 : index
    %20 = vector.load %arg6[%19, %c0_11, %c0_12, %c0_13] : memref<2x4x32x16xbf16, #tpu.memory_space<vmem>>, vector<1x1x32x16xbf16>
    %21 = vector.shape_cast %20 : vector<1x1x32x16xbf16> to vector<32x16xbf16>
    %cst_14 = arith.constant dense<0.000000e+00> : vector<64x16xf32>
    %22 = tpu.matmul %7, %21, %cst_14 {dimension_numbers = #tpu.dot_dimension_numbers<[1], [0], [0], [1], [0, 0, 1, 1], [], []>} : vector<64x32xbf16>, vector<32x16xbf16>, vector<64x16xf32> -> vector<64x16xf32>
    %23 = arith.index_cast %arg2 : i32 to index
    %c4 = arith.constant 4 : index
    %c0_15 = arith.constant 0 : index
    %c0_16 = arith.constant 0 : index
    %24 = vector.load %arg11[%23, %c4, %c0_15, %c0_16] : memref<2x12x1x16xf32, #tpu.memory_space<vmem>>, vector<1x1x1x16xf32>
    %25 = vector.shape_cast %24 : vector<1x1x1x16xf32> to vector<1x16xf32>
    %26 = vector.broadcast %25 : vector<1x16xf32> to vector<64x16xf32>
    %27 = arith.addf %22, %26 : vector<64x16xf32>
    %28 = arith.index_cast %arg2 : i32 to index
    %c0_17 = arith.constant 0 : index
    %c0_18 = arith.constant 0 : index
    %c0_19 = arith.constant 0 : index
    %29 = vector.load %arg7[%28, %c0_17, %c0_18, %c0_19] : memref<2x4x32x16xbf16, #tpu.memory_space<vmem>>, vector<1x1x32x16xbf16>
    %30 = vector.shape_cast %29 : vector<1x1x32x16xbf16> to vector<32x16xbf16>
    %cst_20 = arith.constant dense<0.000000e+00> : vector<64x16xf32>
    %31 = tpu.matmul %8, %30, %cst_20 {dimension_numbers = #tpu.dot_dimension_numbers<[1], [0], [0], [1], [0, 0, 1, 1], [], []>} : vector<64x32xbf16>, vector<32x16xbf16>, vector<64x16xf32> -> vector<64x16xf32>
    %32 = arith.index_cast %arg2 : i32 to index
    %c8 = arith.constant 8 : index
    %c0_21 = arith.constant 0 : index
    %c0_22 = arith.constant 0 : index
    %33 = vector.load %arg11[%32, %c8, %c0_21, %c0_22] : memref<2x12x1x16xf32, #tpu.memory_space<vmem>>, vector<1x1x1x16xf32>
    %34 = vector.shape_cast %33 : vector<1x1x1x16xf32> to vector<1x16xf32>
    %35 = vector.broadcast %34 : vector<1x16xf32> to vector<64x16xf32>
    %36 = arith.addf %31, %35 : vector<64x16xf32>
    %37 = vector.shape_cast %18 : vector<64x16xf32> to vector<8x8x16xf32>
    %38 = arith.truncf %37 : vector<8x8x16xf32> to vector<8x8x16xbf16>
    %39 = vector.shape_cast %27 : vector<64x16xf32> to vector<8x8x16xf32>
    %40 = arith.truncf %39 : vector<8x8x16xf32> to vector<8x8x16xbf16>
    %41 = vector.shape_cast %36 : vector<64x16xf32> to vector<8x8x16xf32>
    %42 = arith.truncf %41 : vector<8x8x16xf32> to vector<8x8x16xbf16>
    "tpu.trace_start"() <{level = 10 : i32, message = "twd,tvd->twv"}> : () -> ()
    %cst_23 = arith.constant dense<0.000000e+00> : vector<8x8x8xf32>
    %43 = tpu.matmul %38, %40, %cst_23 {dimension_numbers = #tpu.dot_dimension_numbers<[2], [2], [1], [1], [0, 0, 0, 1, 1, 1], [0], [0]>} : vector<8x8x16xbf16>, vector<8x8x16xbf16>, vector<8x8x8xf32> -> vector<8x8x8xf32>
    "tpu.trace_stop"() : () -> ()
    %cst_24 = arith.constant dense<0xFF800000> : vector<8x8xf32>
    %44 = vector.multi_reduction <maximumf>, %43, %cst_24 [2] : vector<8x8x8xf32> to vector<8x8xf32>
    %45 = vector.shape_cast %44 : vector<8x8xf32> to vector<8x8x1xf32>
    %46 = vector.broadcast %45 : vector<8x8x1xf32> to vector<8x8x8xf32>
    %47 = arith.subf %43, %46 : vector<8x8x8xf32>
    %48 = math.exp %47 : vector<8x8x8xf32>
    %cst_25 = arith.constant dense<0.000000e+00> : vector<8x8xf32>
    %49 = vector.multi_reduction <add>, %48, %cst_25 [2] : vector<8x8x8xf32> to vector<8x8xf32>
    %50 = vector.shape_cast %49 : vector<8x8xf32> to vector<8x8x1xf32>
    %51 = arith.truncf %48 : vector<8x8x8xf32> to vector<8x8x8xbf16>
    "tpu.trace_start"() <{level = 10 : i32, message = "twv,tvd->twd"}> : () -> ()
    %cst_26 = arith.constant dense<0.000000e+00> : vector<8x8x16xf32>
    %52 = tpu.matmul %51, %42, %cst_26 {dimension_numbers = #tpu.dot_dimension_numbers<[2], [1], [1], [2], [0, 0, 0, 1, 1, 2], [0], [0]>} : vector<8x8x8xbf16>, vector<8x8x16xbf16>, vector<8x8x16xf32> -> vector<8x8x16xf32>
    "tpu.trace_stop"() : () -> ()
    %53 = tpu.reciprocal %50 {approx = true} : vector<8x8x1xf32> -> vector<8x8x1xf32>
    %54 = vector.broadcast %53 : vector<8x8x1xf32> to vector<8x8x16xf32>
    %55 = arith.mulf %52, %54 : vector<8x8x16xf32>
    %56 = vector.shape_cast %55 : vector<8x8x16xf32> to vector<64x16xf32>
    %57 = arith.truncf %56 : vector<64x16xf32> to vector<64x16xbf16>
    %58 = arith.index_cast %arg2 : i32 to index
    %c0_27 = arith.constant 0 : index
    %c0_28 = arith.constant 0 : index
    %c0_29 = arith.constant 0 : index
    %59 = vector.load %arg8[%58, %c0_27, %c0_28, %c0_29] : memref<2x4x16x32xbf16, #tpu.memory_space<vmem>>, vector<1x1x16x32xbf16>
    %60 = vector.shape_cast %59 : vector<1x1x16x32xbf16> to vector<16x32xbf16>
    %cst_30 = arith.constant dense<0.000000e+00> : vector<64x32xf32>
    %61 = tpu.matmul %57, %60, %cst_30 {dimension_numbers = #tpu.dot_dimension_numbers<[1], [0], [0], [1], [0, 0, 1, 1], [], []>} : vector<64x16xbf16>, vector<16x32xbf16>, vector<64x32xf32> -> vector<64x32xf32>
    %62 = arith.addf %9, %61 : vector<64x32xf32>
    %63 = arith.index_cast %arg2 : i32 to index
    %c1 = arith.constant 1 : index
    %c0_31 = arith.constant 0 : index
    %c0_32 = arith.constant 0 : index
    %64 = vector.load %arg5[%63, %c1, %c0_31, %c0_32] : memref<2x4x32x16xbf16, #tpu.memory_space<vmem>>, vector<1x1x32x16xbf16>
    %65 = vector.shape_cast %64 : vector<1x1x32x16xbf16> to vector<32x16xbf16>
    %cst_33 = arith.constant dense<0.000000e+00> : vector<64x16xf32>
    %66 = tpu.matmul %7, %65, %cst_33 {dimension_numbers = #tpu.dot_dimension_numbers<[1], [0], [0], [1], [0, 0, 1, 1], [], []>} : vector<64x32xbf16>, vector<32x16xbf16>, vector<64x16xf32> -> vector<64x16xf32>
    %67 = arith.index_cast %arg2 : i32 to index
    %c1_34 = arith.constant 1 : index
    %c0_35 = arith.constant 0 : index
    %c0_36 = arith.constant 0 : index
    %68 = vector.load %arg11[%67, %c1_34, %c0_35, %c0_36] : memref<2x12x1x16xf32, #tpu.memory_space<vmem>>, vector<1x1x1x16xf32>
    %69 = vector.shape_cast %68 : vector<1x1x1x16xf32> to vector<1x16xf32>
    %70 = vector.broadcast %69 : vector<1x16xf32> to vector<64x16xf32>
    %71 = arith.addf %66, %70 : vector<64x16xf32>
    %72 = arith.index_cast %arg2 : i32 to index
    %c1_37 = arith.constant 1 : index
    %c0_38 = arith.constant 0 : index
    %c0_39 = arith.constant 0 : index
    %73 = vector.load %arg6[%72, %c1_37, %c0_38, %c0_39] : memref<2x4x32x16xbf16, #tpu.memory_space<vmem>>, vector<1x1x32x16xbf16>
    %74 = vector.shape_cast %73 : vector<1x1x32x16xbf16> to vector<32x16xbf16>
    %cst_40 = arith.constant dense<0.000000e+00> : vector<64x16xf32>
    %75 = tpu.matmul %7, %74, %cst_40 {dimension_numbers = #tpu.dot_dimension_numbers<[1], [0], [0], [1], [0, 0, 1, 1], [], []>} : vector<64x32xbf16>, vector<32x16xbf16>, vector<64x16xf32> -> vector<64x16xf32>
    %76 = arith.index_cast %arg2 : i32 to index
    %c5 = arith.constant 5 : index
    %c0_41 = arith.constant 0 : index
    %c0_42 = arith.constant 0 : index
    %77 = vector.load %arg11[%76, %c5, %c0_41, %c0_42] : memref<2x12x1x16xf32, #tpu.memory_space<vmem>>, vector<1x1x1x16xf32>
    %78 = vector.shape_cast %77 : vector<1x1x1x16xf32> to vector<1x16xf32>
    %79 = vector.broadcast %78 : vector<1x16xf32> to vector<64x16xf32>
    %80 = arith.addf %75, %79 : vector<64x16xf32>
    %81 = arith.index_cast %arg2 : i32 to index
    %c1_43 = arith.constant 1 : index
    %c0_44 = arith.constant 0 : index
    %c0_45 = arith.constant 0 : index
    %82 = vector.load %arg7[%81, %c1_43, %c0_44, %c0_45] : memref<2x4x32x16xbf16, #tpu.memory_space<vmem>>, vector<1x1x32x16xbf16>
    %83 = vector.shape_cast %82 : vector<1x1x32x16xbf16> to vector<32x16xbf16>
    %cst_46 = arith.constant dense<0.000000e+00> : vector<64x16xf32>
    %84 = tpu.matmul %8, %83, %cst_46 {dimension_numbers = #tpu.dot_dimension_numbers<[1], [0], [0], [1], [0, 0, 1, 1], [], []>} : vector<64x32xbf16>, vector<32x16xbf16>, vector<64x16xf32> -> vector<64x16xf32>
    %85 = arith.index_cast %arg2 : i32 to index
    %c9 = arith.constant 9 : index
    %c0_47 = arith.constant 0 : index
    %c0_48 = arith.constant 0 : index
    %86 = vector.load %arg11[%85, %c9, %c0_47, %c0_48] : memref<2x12x1x16xf32, #tpu.memory_space<vmem>>, vector<1x1x1x16xf32>
    %87 = vector.shape_cast %86 : vector<1x1x1x16xf32> to vector<1x16xf32>
    %88 = vector.broadcast %87 : vector<1x16xf32> to vector<64x16xf32>
    %89 = arith.addf %84, %88 : vector<64x16xf32>
    %90 = vector.shape_cast %71 : vector<64x16xf32> to vector<8x8x16xf32>
    %91 = arith.truncf %90 : vector<8x8x16xf32> to vector<8x8x16xbf16>
    %92 = vector.shape_cast %80 : vector<64x16xf32> to vector<8x8x16xf32>
    %93 = arith.truncf %92 : vector<8x8x16xf32> to vector<8x8x16xbf16>
    %94 = vector.shape_cast %89 : vector<64x16xf32> to vector<8x8x16xf32>
    %95 = arith.truncf %94 : vector<8x8x16xf32> to vector<8x8x16xbf16>
    "tpu.trace_start"() <{level = 10 : i32, message = "twd,tvd->twv"}> : () -> ()
    %cst_49 = arith.constant dense<0.000000e+00> : vector<8x8x8xf32>
    %96 = tpu.matmul %91, %93, %cst_49 {dimension_numbers = #tpu.dot_dimension_numbers<[2], [2], [1], [1], [0, 0, 0, 1, 1, 1], [0], [0]>} : vector<8x8x16xbf16>, vector<8x8x16xbf16>, vector<8x8x8xf32> -> vector<8x8x8xf32>
    "tpu.trace_stop"() : () -> ()
    %cst_50 = arith.constant dense<0xFF800000> : vector<8x8xf32>
    %97 = vector.multi_reduction <maximumf>, %96, %cst_50 [2] : vector<8x8x8xf32> to vector<8x8xf32>
    %98 = vector.shape_cast %97 : vector<8x8xf32> to vector<8x8x1xf32>
    %99 = vector.broadcast %98 : vector<8x8x1xf32> to vector<8x8x8xf32>
    %100 = arith.subf %96, %99 : vector<8x8x8xf32>
    %101 = math.exp %100 : vector<8x8x8xf32>
    %cst_51 = arith.constant dense<0.000000e+00> : vector<8x8xf32>
    %102 = vector.multi_reduction <add>, %101, %cst_51 [2] : vector<8x8x8xf32> to vector<8x8xf32>
    %103 = vector.shape_cast %102 : vector<8x8xf32> to vector<8x8x1xf32>
    %104 = arith.truncf %101 : vector<8x8x8xf32> to vector<8x8x8xbf16>
    "tpu.trace_start"() <{level = 10 : i32, message = "twv,tvd->twd"}> : () -> ()
    %cst_52 = arith.constant dense<0.000000e+00> : vector<8x8x16xf32>
    %105 = tpu.matmul %104, %95, %cst_52 {dimension_numbers = #tpu.dot_dimension_numbers<[2], [1], [1], [2], [0, 0, 0, 1, 1, 2], [0], [0]>} : vector<8x8x8xbf16>, vector<8x8x16xbf16>, vector<8x8x16xf32> -> vector<8x8x16xf32>
    "tpu.trace_stop"() : () -> ()
    %106 = tpu.reciprocal %103 {approx = true} : vector<8x8x1xf32> -> vector<8x8x1xf32>
    %107 = vector.broadcast %106 : vector<8x8x1xf32> to vector<8x8x16xf32>
    %108 = arith.mulf %105, %107 : vector<8x8x16xf32>
    %109 = vector.shape_cast %108 : vector<8x8x16xf32> to vector<64x16xf32>
    %110 = arith.truncf %109 : vector<64x16xf32> to vector<64x16xbf16>
    %111 = arith.index_cast %arg2 : i32 to index
    %c1_53 = arith.constant 1 : index
    %c0_54 = arith.constant 0 : index
    %c0_55 = arith.constant 0 : index
    %112 = vector.load %arg8[%111, %c1_53, %c0_54, %c0_55] : memref<2x4x16x32xbf16, #tpu.memory_space<vmem>>, vector<1x1x16x32xbf16>
    %113 = vector.shape_cast %112 : vector<1x1x16x32xbf16> to vector<16x32xbf16>
    %cst_56 = arith.constant dense<0.000000e+00> : vector<64x32xf32>
    %114 = tpu.matmul %110, %113, %cst_56 {dimension_numbers = #tpu.dot_dimension_numbers<[1], [0], [0], [1], [0, 0, 1, 1], [], []>} : vector<64x16xbf16>, vector<16x32xbf16>, vector<64x32xf32> -> vector<64x32xf32>
    %115 = arith.addf %62, %114 : vector<64x32xf32>
    %116 = arith.index_cast %arg2 : i32 to index
    %c2 = arith.constant 2 : index
    %c0_57 = arith.constant 0 : index
    %c0_58 = arith.constant 0 : index
    %117 = vector.load %arg5[%116, %c2, %c0_57, %c0_58] : memref<2x4x32x16xbf16, #tpu.memory_space<vmem>>, vector<1x1x32x16xbf16>
    %118 = vector.shape_cast %117 : vector<1x1x32x16xbf16> to vector<32x16xbf16>
    %cst_59 = arith.constant dense<0.000000e+00> : vector<64x16xf32>
    %119 = tpu.matmul %7, %118, %cst_59 {dimension_numbers = #tpu.dot_dimension_numbers<[1], [0], [0], [1], [0, 0, 1, 1], [], []>} : vector<64x32xbf16>, vector<32x16xbf16>, vector<64x16xf32> -> vector<64x16xf32>
    %120 = arith.index_cast %arg2 : i32 to index
    %c2_60 = arith.constant 2 : index
    %c0_61 = arith.constant 0 : index
    %c0_62 = arith.constant 0 : index
    %121 = vector.load %arg11[%120, %c2_60, %c0_61, %c0_62] : memref<2x12x1x16xf32, #tpu.memory_space<vmem>>, vector<1x1x1x16xf32>
    %122 = vector.shape_cast %121 : vector<1x1x1x16xf32> to vector<1x16xf32>
    %123 = vector.broadcast %122 : vector<1x16xf32> to vector<64x16xf32>
    %124 = arith.addf %119, %123 : vector<64x16xf32>
    %125 = arith.index_cast %arg2 : i32 to index
    %c2_63 = arith.constant 2 : index
    %c0_64 = arith.constant 0 : index
    %c0_65 = arith.constant 0 : index
    %126 = vector.load %arg6[%125, %c2_63, %c0_64, %c0_65] : memref<2x4x32x16xbf16, #tpu.memory_space<vmem>>, vector<1x1x32x16xbf16>
    %127 = vector.shape_cast %126 : vector<1x1x32x16xbf16> to vector<32x16xbf16>
    %cst_66 = arith.constant dense<0.000000e+00> : vector<64x16xf32>
    %128 = tpu.matmul %7, %127, %cst_66 {dimension_numbers = #tpu.dot_dimension_numbers<[1], [0], [0], [1], [0, 0, 1, 1], [], []>} : vector<64x32xbf16>, vector<32x16xbf16>, vector<64x16xf32> -> vector<64x16xf32>
    %129 = arith.index_cast %arg2 : i32 to index
    %c6 = arith.constant 6 : index
    %c0_67 = arith.constant 0 : index
    %c0_68 = arith.constant 0 : index
    %130 = vector.load %arg11[%129, %c6, %c0_67, %c0_68] : memref<2x12x1x16xf32, #tpu.memory_space<vmem>>, vector<1x1x1x16xf32>
    %131 = vector.shape_cast %130 : vector<1x1x1x16xf32> to vector<1x16xf32>
    %132 = vector.broadcast %131 : vector<1x16xf32> to vector<64x16xf32>
    %133 = arith.addf %128, %132 : vector<64x16xf32>
    %134 = arith.index_cast %arg2 : i32 to index
    %c2_69 = arith.constant 2 : index
    %c0_70 = arith.constant 0 : index
    %c0_71 = arith.constant 0 : index
    %135 = vector.load %arg7[%134, %c2_69, %c0_70, %c0_71] : memref<2x4x32x16xbf16, #tpu.memory_space<vmem>>, vector<1x1x32x16xbf16>
    %136 = vector.shape_cast %135 : vector<1x1x32x16xbf16> to vector<32x16xbf16>
    %cst_72 = arith.constant dense<0.000000e+00> : vector<64x16xf32>
    %137 = tpu.matmul %8, %136, %cst_72 {dimension_numbers = #tpu.dot_dimension_numbers<[1], [0], [0], [1], [0, 0, 1, 1], [], []>} : vector<64x32xbf16>, vector<32x16xbf16>, vector<64x16xf32> -> vector<64x16xf32>
    %138 = arith.index_cast %arg2 : i32 to index
    %c10 = arith.constant 10 : index
    %c0_73 = arith.constant 0 : index
    %c0_74 = arith.constant 0 : index
    %139 = vector.load %arg11[%138, %c10, %c0_73, %c0_74] : memref<2x12x1x16xf32, #tpu.memory_space<vmem>>, vector<1x1x1x16xf32>
    %140 = vector.shape_cast %139 : vector<1x1x1x16xf32> to vector<1x16xf32>
    %141 = vector.broadcast %140 : vector<1x16xf32> to vector<64x16xf32>
    %142 = arith.addf %137, %141 : vector<64x16xf32>
    %143 = vector.shape_cast %124 : vector<64x16xf32> to vector<8x8x16xf32>
    %144 = arith.truncf %143 : vector<8x8x16xf32> to vector<8x8x16xbf16>
    %145 = vector.shape_cast %133 : vector<64x16xf32> to vector<8x8x16xf32>
    %146 = arith.truncf %145 : vector<8x8x16xf32> to vector<8x8x16xbf16>
    %147 = vector.shape_cast %142 : vector<64x16xf32> to vector<8x8x16xf32>
    %148 = arith.truncf %147 : vector<8x8x16xf32> to vector<8x8x16xbf16>
    "tpu.trace_start"() <{level = 10 : i32, message = "twd,tvd->twv"}> : () -> ()
    %cst_75 = arith.constant dense<0.000000e+00> : vector<8x8x8xf32>
    %149 = tpu.matmul %144, %146, %cst_75 {dimension_numbers = #tpu.dot_dimension_numbers<[2], [2], [1], [1], [0, 0, 0, 1, 1, 1], [0], [0]>} : vector<8x8x16xbf16>, vector<8x8x16xbf16>, vector<8x8x8xf32> -> vector<8x8x8xf32>
    "tpu.trace_stop"() : () -> ()
    %cst_76 = arith.constant dense<0xFF800000> : vector<8x8xf32>
    %150 = vector.multi_reduction <maximumf>, %149, %cst_76 [2] : vector<8x8x8xf32> to vector<8x8xf32>
    %151 = vector.shape_cast %150 : vector<8x8xf32> to vector<8x8x1xf32>
    %152 = vector.broadcast %151 : vector<8x8x1xf32> to vector<8x8x8xf32>
    %153 = arith.subf %149, %152 : vector<8x8x8xf32>
    %154 = math.exp %153 : vector<8x8x8xf32>
    %cst_77 = arith.constant dense<0.000000e+00> : vector<8x8xf32>
    %155 = vector.multi_reduction <add>, %154, %cst_77 [2] : vector<8x8x8xf32> to vector<8x8xf32>
    %156 = vector.shape_cast %155 : vector<8x8xf32> to vector<8x8x1xf32>
    %157 = arith.truncf %154 : vector<8x8x8xf32> to vector<8x8x8xbf16>
    "tpu.trace_start"() <{level = 10 : i32, message = "twv,tvd->twd"}> : () -> ()
    %cst_78 = arith.constant dense<0.000000e+00> : vector<8x8x16xf32>
    %158 = tpu.matmul %157, %148, %cst_78 {dimension_numbers = #tpu.dot_dimension_numbers<[2], [1], [1], [2], [0, 0, 0, 1, 1, 2], [0], [0]>} : vector<8x8x8xbf16>, vector<8x8x16xbf16>, vector<8x8x16xf32> -> vector<8x8x16xf32>
    "tpu.trace_stop"() : () -> ()
    %159 = tpu.reciprocal %156 {approx = true} : vector<8x8x1xf32> -> vector<8x8x1xf32>
    %160 = vector.broadcast %159 : vector<8x8x1xf32> to vector<8x8x16xf32>
    %161 = arith.mulf %158, %160 : vector<8x8x16xf32>
    %162 = vector.shape_cast %161 : vector<8x8x16xf32> to vector<64x16xf32>
    %163 = arith.truncf %162 : vector<64x16xf32> to vector<64x16xbf16>
    %164 = arith.index_cast %arg2 : i32 to index
    %c2_79 = arith.constant 2 : index
    %c0_80 = arith.constant 0 : index
    %c0_81 = arith.constant 0 : index
    %165 = vector.load %arg8[%164, %c2_79, %c0_80, %c0_81] : memref<2x4x16x32xbf16, #tpu.memory_space<vmem>>, vector<1x1x16x32xbf16>
    %166 = vector.shape_cast %165 : vector<1x1x16x32xbf16> to vector<16x32xbf16>
    %cst_82 = arith.constant dense<0.000000e+00> : vector<64x32xf32>
    %167 = tpu.matmul %163, %166, %cst_82 {dimension_numbers = #tpu.dot_dimension_numbers<[1], [0], [0], [1], [0, 0, 1, 1], [], []>} : vector<64x16xbf16>, vector<16x32xbf16>, vector<64x32xf32> -> vector<64x32xf32>
    %168 = arith.addf %115, %167 : vector<64x32xf32>
    %169 = arith.index_cast %arg2 : i32 to index
    %c3 = arith.constant 3 : index
    %c0_83 = arith.constant 0 : index
    %c0_84 = arith.constant 0 : index
    %170 = vector.load %arg5[%169, %c3, %c0_83, %c0_84] : memref<2x4x32x16xbf16, #tpu.memory_space<vmem>>, vector<1x1x32x16xbf16>
    %171 = vector.shape_cast %170 : vector<1x1x32x16xbf16> to vector<32x16xbf16>
    %cst_85 = arith.constant dense<0.000000e+00> : vector<64x16xf32>
    %172 = tpu.matmul %7, %171, %cst_85 {dimension_numbers = #tpu.dot_dimension_numbers<[1], [0], [0], [1], [0, 0, 1, 1], [], []>} : vector<64x32xbf16>, vector<32x16xbf16>, vector<64x16xf32> -> vector<64x16xf32>
    %173 = arith.index_cast %arg2 : i32 to index
    %c3_86 = arith.constant 3 : index
    %c0_87 = arith.constant 0 : index
    %c0_88 = arith.constant 0 : index
    %174 = vector.load %arg11[%173, %c3_86, %c0_87, %c0_88] : memref<2x12x1x16xf32, #tpu.memory_space<vmem>>, vector<1x1x1x16xf32>
    %175 = vector.shape_cast %174 : vector<1x1x1x16xf32> to vector<1x16xf32>
    %176 = vector.broadcast %175 : vector<1x16xf32> to vector<64x16xf32>
    %177 = arith.addf %172, %176 : vector<64x16xf32>
    %178 = arith.index_cast %arg2 : i32 to index
    %c3_89 = arith.constant 3 : index
    %c0_90 = arith.constant 0 : index
    %c0_91 = arith.constant 0 : index
    %179 = vector.load %arg6[%178, %c3_89, %c0_90, %c0_91] : memref<2x4x32x16xbf16, #tpu.memory_space<vmem>>, vector<1x1x32x16xbf16>
    %180 = vector.shape_cast %179 : vector<1x1x32x16xbf16> to vector<32x16xbf16>
    %cst_92 = arith.constant dense<0.000000e+00> : vector<64x16xf32>
    %181 = tpu.matmul %7, %180, %cst_92 {dimension_numbers = #tpu.dot_dimension_numbers<[1], [0], [0], [1], [0, 0, 1, 1], [], []>} : vector<64x32xbf16>, vector<32x16xbf16>, vector<64x16xf32> -> vector<64x16xf32>
    %182 = arith.index_cast %arg2 : i32 to index
    %c7 = arith.constant 7 : index
    %c0_93 = arith.constant 0 : index
    %c0_94 = arith.constant 0 : index
    %183 = vector.load %arg11[%182, %c7, %c0_93, %c0_94] : memref<2x12x1x16xf32, #tpu.memory_space<vmem>>, vector<1x1x1x16xf32>
    %184 = vector.shape_cast %183 : vector<1x1x1x16xf32> to vector<1x16xf32>
    %185 = vector.broadcast %184 : vector<1x16xf32> to vector<64x16xf32>
    %186 = arith.addf %181, %185 : vector<64x16xf32>
    %187 = arith.index_cast %arg2 : i32 to index
    %c3_95 = arith.constant 3 : index
    %c0_96 = arith.constant 0 : index
    %c0_97 = arith.constant 0 : index
    %188 = vector.load %arg7[%187, %c3_95, %c0_96, %c0_97] : memref<2x4x32x16xbf16, #tpu.memory_space<vmem>>, vector<1x1x32x16xbf16>
    %189 = vector.shape_cast %188 : vector<1x1x32x16xbf16> to vector<32x16xbf16>
    %cst_98 = arith.constant dense<0.000000e+00> : vector<64x16xf32>
    %190 = tpu.matmul %8, %189, %cst_98 {dimension_numbers = #tpu.dot_dimension_numbers<[1], [0], [0], [1], [0, 0, 1, 1], [], []>} : vector<64x32xbf16>, vector<32x16xbf16>, vector<64x16xf32> -> vector<64x16xf32>
    %191 = arith.index_cast %arg2 : i32 to index
    %c11 = arith.constant 11 : index
    %c0_99 = arith.constant 0 : index
    %c0_100 = arith.constant 0 : index
    %192 = vector.load %arg11[%191, %c11, %c0_99, %c0_100] : memref<2x12x1x16xf32, #tpu.memory_space<vmem>>, vector<1x1x1x16xf32>
    %193 = vector.shape_cast %192 : vector<1x1x1x16xf32> to vector<1x16xf32>
    %194 = vector.broadcast %193 : vector<1x16xf32> to vector<64x16xf32>
    %195 = arith.addf %190, %194 : vector<64x16xf32>
    %196 = vector.shape_cast %177 : vector<64x16xf32> to vector<8x8x16xf32>
    %197 = arith.truncf %196 : vector<8x8x16xf32> to vector<8x8x16xbf16>
    %198 = vector.shape_cast %186 : vector<64x16xf32> to vector<8x8x16xf32>
    %199 = arith.truncf %198 : vector<8x8x16xf32> to vector<8x8x16xbf16>
    %200 = vector.shape_cast %195 : vector<64x16xf32> to vector<8x8x16xf32>
    %201 = arith.truncf %200 : vector<8x8x16xf32> to vector<8x8x16xbf16>
    "tpu.trace_start"() <{level = 10 : i32, message = "twd,tvd->twv"}> : () -> ()
    %cst_101 = arith.constant dense<0.000000e+00> : vector<8x8x8xf32>
    %202 = tpu.matmul %197, %199, %cst_101 {dimension_numbers = #tpu.dot_dimension_numbers<[2], [2], [1], [1], [0, 0, 0, 1, 1, 1], [0], [0]>} : vector<8x8x16xbf16>, vector<8x8x16xbf16>, vector<8x8x8xf32> -> vector<8x8x8xf32>
    "tpu.trace_stop"() : () -> ()
    %cst_102 = arith.constant dense<0xFF800000> : vector<8x8xf32>
    %203 = vector.multi_reduction <maximumf>, %202, %cst_102 [2] : vector<8x8x8xf32> to vector<8x8xf32>
    %204 = vector.shape_cast %203 : vector<8x8xf32> to vector<8x8x1xf32>
    %205 = vector.broadcast %204 : vector<8x8x1xf32> to vector<8x8x8xf32>
    %206 = arith.subf %202, %205 : vector<8x8x8xf32>
    %207 = math.exp %206 : vector<8x8x8xf32>
    %cst_103 = arith.constant dense<0.000000e+00> : vector<8x8xf32>
    %208 = vector.multi_reduction <add>, %207, %cst_103 [2] : vector<8x8x8xf32> to vector<8x8xf32>
    %209 = vector.shape_cast %208 : vector<8x8xf32> to vector<8x8x1xf32>
    %210 = arith.truncf %207 : vector<8x8x8xf32> to vector<8x8x8xbf16>
    "tpu.trace_start"() <{level = 10 : i32, message = "twv,tvd->twd"}> : () -> ()
    %cst_104 = arith.constant dense<0.000000e+00> : vector<8x8x16xf32>
    %211 = tpu.matmul %210, %201, %cst_104 {dimension_numbers = #tpu.dot_dimension_numbers<[2], [1], [1], [2], [0, 0, 0, 1, 1, 2], [0], [0]>} : vector<8x8x8xbf16>, vector<8x8x16xbf16>, vector<8x8x16xf32> -> vector<8x8x16xf32>
    "tpu.trace_stop"() : () -> ()
    %212 = tpu.reciprocal %209 {approx = true} : vector<8x8x1xf32> -> vector<8x8x1xf32>
    %213 = vector.broadcast %212 : vector<8x8x1xf32> to vector<8x8x16xf32>
    %214 = arith.mulf %211, %213 : vector<8x8x16xf32>
    %215 = vector.shape_cast %214 : vector<8x8x16xf32> to vector<64x16xf32>
    %216 = arith.truncf %215 : vector<64x16xf32> to vector<64x16xbf16>
    %217 = arith.index_cast %arg2 : i32 to index
    %c3_105 = arith.constant 3 : index
    %c0_106 = arith.constant 0 : index
    %c0_107 = arith.constant 0 : index
    %218 = vector.load %arg8[%217, %c3_105, %c0_106, %c0_107] : memref<2x4x16x32xbf16, #tpu.memory_space<vmem>>, vector<1x1x16x32xbf16>
    %219 = vector.shape_cast %218 : vector<1x1x16x32xbf16> to vector<16x32xbf16>
    %cst_108 = arith.constant dense<0.000000e+00> : vector<64x32xf32>
    %220 = tpu.matmul %216, %219, %cst_108 {dimension_numbers = #tpu.dot_dimension_numbers<[1], [0], [0], [1], [0, 0, 1, 1], [], []>} : vector<64x16xbf16>, vector<16x32xbf16>, vector<64x32xf32> -> vector<64x32xf32>
    %221 = arith.addf %168, %220 : vector<64x32xf32>
    %222 = arith.addf %221, %3 : vector<64x32xf32>
    %cst_109 = arith.constant dense<0.000000e+00> : vector<64xf32>
    %223 = vector.multi_reduction <add>, %222, %cst_109 [1] : vector<64x32xf32> to vector<64xf32>
    %224 = vector.shape_cast %223 : vector<64xf32> to vector<64x1xf32>
    %cst_110 = arith.constant 3.200000e+01 : f32
    %225 = vector.broadcast %cst_110 : f32 to vector<64x1xf32>
    %226 = arith.divf %224, %225 : vector<64x1xf32>
    %227 = vector.broadcast %226 : vector<64x1xf32> to vector<64x32xf32>
    %228 = arith.subf %222, %227 : vector<64x32xf32>
    %229 = arith.mulf %228, %228 : vector<64x32xf32>
    %cst_111 = arith.constant dense<0.000000e+00> : vector<64xf32>
    %230 = vector.multi_reduction <add>, %229, %cst_111 [1] : vector<64x32xf32> to vector<64xf32>
    %231 = vector.shape_cast %230 : vector<64xf32> to vector<64x1xf32>
    %cst_112 = arith.constant 3.200000e+01 : f32
    %232 = vector.broadcast %cst_112 : f32 to vector<64x1xf32>
    %233 = arith.divf %231, %232 : vector<64x1xf32>
    %234 = vector.broadcast %226 : vector<64x1xf32> to vector<64x32xf32>
    %235 = arith.subf %222, %234 : vector<64x32xf32>
    %cst_113 = arith.constant 9.99999974E-6 : f32
    %236 = vector.broadcast %cst_113 : f32 to vector<64x1xf32>
    %237 = arith.addf %233, %236 : vector<64x1xf32>
    %238 = math.rsqrt %237 : vector<64x1xf32>
    %239 = vector.broadcast %238 : vector<64x1xf32> to vector<64x32xf32>
    %240 = arith.mulf %235, %239 : vector<64x32xf32>
    %241 = arith.index_cast %arg2 : i32 to index
    %c0_114 = arith.constant 0 : index
    %c0_115 = arith.constant 0 : index
    %c0_116 = arith.constant 0 : index
    %242 = vector.load %arg12[%241, %c0_114, %c0_115, %c0_116] : memref<2x5x1x32xf32, #tpu.memory_space<vmem>>, vector<1x1x1x32xf32>
    %243 = vector.shape_cast %242 : vector<1x1x1x32xf32> to vector<1x32xf32>
    %244 = vector.broadcast %243 : vector<1x32xf32> to vector<64x32xf32>
    %245 = arith.mulf %240, %244 : vector<64x32xf32>
    %246 = arith.index_cast %arg2 : i32 to index
    %c1_117 = arith.constant 1 : index
    %c0_118 = arith.constant 0 : index
    %c0_119 = arith.constant 0 : index
    %247 = vector.load %arg12[%246, %c1_117, %c0_118, %c0_119] : memref<2x5x1x32xf32, #tpu.memory_space<vmem>>, vector<1x1x1x32xf32>
    %248 = vector.shape_cast %247 : vector<1x1x1x32xf32> to vector<1x32xf32>
    %249 = vector.broadcast %248 : vector<1x32xf32> to vector<64x32xf32>
    %250 = arith.addf %245, %249 : vector<64x32xf32>
    %251 = arith.truncf %250 : vector<64x32xf32> to vector<64x32xbf16>
    %252 = arith.index_cast %arg2 : i32 to index
    %c0_120 = arith.constant 0 : index
    %c0_121 = arith.constant 0 : index
    %253 = vector.load %arg9[%252, %c0_120, %c0_121] : memref<2x32x64xbf16, #tpu.memory_space<vmem>>, vector<1x32x64xbf16>
    %254 = vector.shape_cast %253 : vector<1x32x64xbf16> to vector<32x64xbf16>
    %cst_122 = arith.constant dense<0.000000e+00> : vector<64x64xf32>
    %255 = tpu.matmul %251, %254, %cst_122 {dimension_numbers = #tpu.dot_dimension_numbers<[1], [0], [0], [1], [0, 0, 1, 1], [], []>} : vector<64x32xbf16>, vector<32x64xbf16>, vector<64x64xf32> -> vector<64x64xf32>
    %256 = arith.index_cast %arg2 : i32 to index
    %c0_123 = arith.constant 0 : index
    %c0_124 = arith.constant 0 : index
    %257 = vector.load %arg13[%256, %c0_123, %c0_124] : memref<2x1x64xf32, #tpu.memory_space<vmem>>, vector<1x1x64xf32>
    %258 = vector.shape_cast %257 : vector<1x1x64xf32> to vector<1x64xf32>
    %259 = vector.broadcast %258 : vector<1x64xf32> to vector<64x64xf32>
    %260 = arith.addf %255, %259 : vector<64x64xf32>
    %cst_125 = arith.constant 0.000000e+00 : f32
    %261 = vector.broadcast %cst_125 : f32 to vector<64x64xf32>
    %262 = arith.maximumf %260, %261 : vector<64x64xf32>
    %263 = arith.truncf %262 : vector<64x64xf32> to vector<64x64xbf16>
    %264 = arith.index_cast %arg2 : i32 to index
    %c0_126 = arith.constant 0 : index
    %c0_127 = arith.constant 0 : index
    %265 = vector.load %arg10[%264, %c0_126, %c0_127] : memref<2x64x32xbf16, #tpu.memory_space<vmem>>, vector<1x64x32xbf16>
    %266 = vector.shape_cast %265 : vector<1x64x32xbf16> to vector<64x32xbf16>
    %cst_128 = arith.constant dense<0.000000e+00> : vector<64x32xf32>
    %267 = tpu.matmul %263, %266, %cst_128 {dimension_numbers = #tpu.dot_dimension_numbers<[1], [0], [0], [1], [0, 0, 1, 1], [], []>} : vector<64x64xbf16>, vector<64x32xbf16>, vector<64x32xf32> -> vector<64x32xf32>
    %268 = arith.index_cast %arg2 : i32 to index
    %c4_129 = arith.constant 4 : index
    %c0_130 = arith.constant 0 : index
    %c0_131 = arith.constant 0 : index
    %269 = vector.load %arg12[%268, %c4_129, %c0_130, %c0_131] : memref<2x5x1x32xf32, #tpu.memory_space<vmem>>, vector<1x1x1x32xf32>
    %270 = vector.shape_cast %269 : vector<1x1x1x32xf32> to vector<1x32xf32>
    %271 = vector.broadcast %270 : vector<1x32xf32> to vector<64x32xf32>
    %272 = arith.addf %267, %271 : vector<64x32xf32>
    %273 = arith.addf %250, %272 : vector<64x32xf32>
    %cst_132 = arith.constant dense<0.000000e+00> : vector<64xf32>
    %274 = vector.multi_reduction <add>, %273, %cst_132 [1] : vector<64x32xf32> to vector<64xf32>
    %275 = vector.shape_cast %274 : vector<64xf32> to vector<64x1xf32>
    %cst_133 = arith.constant 3.200000e+01 : f32
    %276 = vector.broadcast %cst_133 : f32 to vector<64x1xf32>
    %277 = arith.divf %275, %276 : vector<64x1xf32>
    %278 = vector.broadcast %277 : vector<64x1xf32> to vector<64x32xf32>
    %279 = arith.subf %273, %278 : vector<64x32xf32>
    %280 = arith.mulf %279, %279 : vector<64x32xf32>
    %cst_134 = arith.constant dense<0.000000e+00> : vector<64xf32>
    %281 = vector.multi_reduction <add>, %280, %cst_134 [1] : vector<64x32xf32> to vector<64xf32>
    %282 = vector.shape_cast %281 : vector<64xf32> to vector<64x1xf32>
    %cst_135 = arith.constant 3.200000e+01 : f32
    %283 = vector.broadcast %cst_135 : f32 to vector<64x1xf32>
    %284 = arith.divf %282, %283 : vector<64x1xf32>
    %285 = vector.broadcast %277 : vector<64x1xf32> to vector<64x32xf32>
    %286 = arith.subf %273, %285 : vector<64x32xf32>
    %cst_136 = arith.constant 9.99999974E-6 : f32
    %287 = vector.broadcast %cst_136 : f32 to vector<64x1xf32>
    %288 = arith.addf %284, %287 : vector<64x1xf32>
    %289 = math.rsqrt %288 : vector<64x1xf32>
    %290 = vector.broadcast %289 : vector<64x1xf32> to vector<64x32xf32>
    %291 = arith.mulf %286, %290 : vector<64x32xf32>
    %292 = arith.index_cast %arg2 : i32 to index
    %c2_137 = arith.constant 2 : index
    %c0_138 = arith.constant 0 : index
    %c0_139 = arith.constant 0 : index
    %293 = vector.load %arg12[%292, %c2_137, %c0_138, %c0_139] : memref<2x5x1x32xf32, #tpu.memory_space<vmem>>, vector<1x1x1x32xf32>
    %294 = vector.shape_cast %293 : vector<1x1x1x32xf32> to vector<1x32xf32>
    %295 = vector.broadcast %294 : vector<1x32xf32> to vector<64x32xf32>
    %296 = arith.mulf %291, %295 : vector<64x32xf32>
    %297 = arith.index_cast %arg2 : i32 to index
    %c3_140 = arith.constant 3 : index
    %c0_141 = arith.constant 0 : index
    %c0_142 = arith.constant 0 : index
    %298 = vector.load %arg12[%297, %c3_140, %c0_141, %c0_142] : memref<2x5x1x32xf32, #tpu.memory_space<vmem>>, vector<1x1x1x32xf32>
    %299 = vector.shape_cast %298 : vector<1x1x1x32xf32> to vector<1x32xf32>
    %300 = vector.broadcast %299 : vector<1x32xf32> to vector<64x32xf32>
    %301 = arith.addf %296, %300 : vector<64x32xf32>
    %c0_143 = arith.constant 0 : index
    %c0_144 = arith.constant 0 : index
    %302 = vector.load %arg15[%c0_143, %c0_144] : memref<64x32xf32, #tpu.memory_space<vmem>>, vector<64x32xf32>
    tpu.vector_store %arg15[%c0_143, %c0_144], %301 {strides = array<i32>} : memref<64x32xf32, #tpu.memory_space<vmem>>, vector<64x32xf32>,
    %c1_i32 = arith.constant 1 : i32
    %303 = arith.cmpi eq, %arg2, %c1_i32 : i32
    %304 = arith.extui %303 : i1 to i32
    %c0_i32_145 = arith.constant 0 : i32
    %305 = arith.cmpi ne, %304, %c0_i32_145 : i32
    scf.if %305 {
      %306 = arith.truncf %301 : vector<64x32xf32> to vector<64x32xbf16>
      %c0_146 = arith.constant 0 : index
      %c0_147 = arith.constant 0 : index
      %c0_148 = arith.constant 0 : index
      %307 = vector.load %arg14[%c0_146, %c0_147, %c0_148] : memref<1x64x32xbf16, #tpu.memory_space<vmem>>, vector<1x64x32xbf16>
      %308 = vector.shape_cast %307 : vector<1x64x32xbf16> to vector<64x32xbf16>
      %309 = vector.shape_cast %306 : vector<64x32xbf16> to vector<1x64x32xbf16>
      tpu.vector_store %arg14[%c0_146, %c0_147, %c0_148], %309 {strides = array<i32>} : memref<1x64x32xbf16, #tpu.memory_space<vmem>>, vector<1x64x32xbf16>,
    } else {
    }
    return
  }
  func.func @transform_0(%arg0: i32, %arg1: i32, %arg2: i32) -> (i32, i32, i32) {
    %c0_i32 = arith.constant 0 : i32
    %c0_i32_0 = arith.constant 0 : i32
    return %arg0, %arg1, %c0_i32 : i32, i32, i32
  }
  func.func @transform_1(%arg0: i32, %arg1: i32, %arg2: i32) -> (i32, i32) {
    %c0_i32 = arith.constant 0 : i32
    %c0_i32_0 = arith.constant 0 : i32
    return %arg1, %c0_i32 : i32, i32
  }
  func.func @transform_2(%arg0: i32, %arg1: i32, %arg2: i32) -> (i32, i32, i32, i32) {
    %c0_i32 = arith.constant 0 : i32
    %c0_i32_0 = arith.constant 0 : i32
    %c0_i32_1 = arith.constant 0 : i32
    %c0_i32_2 = arith.constant 0 : i32
    %c0_i32_3 = arith.constant 0 : i32
    return %c0_i32, %c0_i32_0, %c0_i32_1, %c0_i32_2 : i32, i32, i32, i32
  }
  func.func @transform_3(%arg0: i32, %arg1: i32, %arg2: i32) -> (i32, i32, i32, i32) {
    %c0_i32 = arith.constant 0 : i32
    %c0_i32_0 = arith.constant 0 : i32
    %c0_i32_1 = arith.constant 0 : i32
    %c0_i32_2 = arith.constant 0 : i32
    %c0_i32_3 = arith.constant 0 : i32
    return %c0_i32, %c0_i32_0, %c0_i32_1, %c0_i32_2 : i32, i32, i32, i32
  }
  func.func @transform_4(%arg0: i32, %arg1: i32, %arg2: i32) -> (i32, i32, i32, i32) {
    %c0_i32 = arith.constant 0 : i32
    %c0_i32_0 = arith.constant 0 : i32
    %c0_i32_1 = arith.constant 0 : i32
    %c0_i32_2 = arith.constant 0 : i32
    %c0_i32_3 = arith.constant 0 : i32
    return %c0_i32, %c0_i32_0, %c0_i32_1, %c0_i32_2 : i32, i32, i32, i32
  }
  func.func @transform_5(%arg0: i32, %arg1: i32, %arg2: i32) -> (i32, i32, i32, i32) {
    %c0_i32 = arith.constant 0 : i32
    %c0_i32_0 = arith.constant 0 : i32
    %c0_i32_1 = arith.constant 0 : i32
    %c0_i32_2 = arith.constant 0 : i32
    %c0_i32_3 = arith.constant 0 : i32
    return %c0_i32, %c0_i32_0, %c0_i32_1, %c0_i32_2 : i32, i32, i32, i32
  }
  func.func @transform_6(%arg0: i32, %arg1: i32, %arg2: i32) -> (i32, i32, i32) {
    %c0_i32 = arith.constant 0 : i32
    %c0_i32_0 = arith.constant 0 : i32
    %c0_i32_1 = arith.constant 0 : i32
    %c0_i32_2 = arith.constant 0 : i32
    return %c0_i32, %c0_i32_0, %c0_i32_1 : i32, i32, i32
  }
  func.func @transform_7(%arg0: i32, %arg1: i32, %arg2: i32) -> (i32, i32, i32) {
    %c0_i32 = arith.constant 0 : i32
    %c0_i32_0 = arith.constant 0 : i32
    %c0_i32_1 = arith.constant 0 : i32
    %c0_i32_2 = arith.constant 0 : i32
    return %c0_i32, %c0_i32_0, %c0_i32_1 : i32, i32, i32
  }
  func.func @transform_8(%arg0: i32, %arg1: i32, %arg2: i32) -> (i32, i32, i32, i32) {
    %c0_i32 = arith.constant 0 : i32
    %c0_i32_0 = arith.constant 0 : i32
    %c0_i32_1 = arith.constant 0 : i32
    %c0_i32_2 = arith.constant 0 : i32
    %c0_i32_3 = arith.constant 0 : i32
    return %c0_i32, %c0_i32_0, %c0_i32_1, %c0_i32_2 : i32, i32, i32, i32
  }
  func.func @transform_9(%arg0: i32, %arg1: i32, %arg2: i32) -> (i32, i32, i32, i32) {
    %c0_i32 = arith.constant 0 : i32
    %c0_i32_0 = arith.constant 0 : i32
    %c0_i32_1 = arith.constant 0 : i32
    %c0_i32_2 = arith.constant 0 : i32
    %c0_i32_3 = arith.constant 0 : i32
    return %c0_i32, %c0_i32_0, %c0_i32_1, %c0_i32_2 : i32, i32, i32, i32
  }
  func.func @transform_10(%arg0: i32, %arg1: i32, %arg2: i32) -> (i32, i32, i32) {
    %c0_i32 = arith.constant 0 : i32
    %c0_i32_0 = arith.constant 0 : i32
    %c0_i32_1 = arith.constant 0 : i32
    %c0_i32_2 = arith.constant 0 : i32
    return %c0_i32, %c0_i32_0, %c0_i32_1 : i32, i32, i32
  }
  func.func @transform_11(%arg0: i32, %arg1: i32, %arg2: i32) -> (i32, i32, i32) {
    %c0_i32 = arith.constant 0 : i32
    %c0_i32_0 = arith.constant 0 : i32
    return %arg0, %arg1, %c0_i32 : i32, i32, i32
  }
}

</mosaic_0001>

<bundles_post_ra>
// kernel: proj_k_forward.1
= control target key start
LH: loop header
LB: loop body
LE: loop exit
PB: predicated region body
PF: predicated region fallthrough
CT: control target
= control target key end

     0   :  { %s4774_s17 = smov 0   ;;  %s4776_s18 = smov 0   ;;  %s5842_s0 = inlined_call_operand.vmem [shape: bf16[2,64,32], index: 0, kind: input, shape index: {}]   ;;  %s5843_s1 = inlined_call_operand.vmem [shape: bf16[64,32], index: 1, kind: input, shape index: {}]   ;;  %s5844_s2 = inlined_call_operand.vmem [shape: bf16[2,4,32,16], index: 2, kind: input, shape index: {}]   ;;  %s5845_s3 = inlined_call_operand.vmem [shape: bf16[2,4,32,16], index: 3, kind: input, shape index: {}]   ;;  %s5846_s4 = inlined_call_operand.vmem [shape: bf16[2,4,32,16], index: 4, kind: input, shape index: {}]   ;;  %s5847_s5 = inlined_call_operand.vmem [shape: bf16[2,4,16,32], index: 5, kind: input, shape index: {}]   ;;  %s5848_s6 = inlined_call_operand.vmem [shape: bf16[2,32,64], index: 6, kind: input, shape index: {}]   ;;  %s5849_s7 = inlined_call_operand.vmem [shape: bf16[2,64,32], index: 7, kind: input, shape index: {}]   ;;  %s5850_s8 = inlined_call_operand.vmem [shape: f32[2,12,1,16], index: 8, kind: input, shape index: {}]   ;;  %s5851_s9 = inlined_call_operand.vmem [shape: f32[2,5,1,32], index: 9, kind: input, shape index: {}]   ;;  %s5852_s10 = inlined_call_operand.vmem [shape: f32[2,1,64], index: 10, kind: input, shape index: {}]   ;;  %s5853_s11 = inlined_call_operand.vmem [shape: bf16[2,64,32], index: 11, kind: output, shape index: {}]  }
   0x1   :  { %s4778_s19 = smov 0   ;;  %s4780_s20 = smov 0  }
   0x2   :  { %s4782_s21 = smov 0  }
   0x3 LB: > { %s33_s22 = sadd.s32 1, %s4703_s19  ;;  %s40_s23 = sadd.s32 1, %s4707_s20  ;;  %s4711_s21 = sphi %s4782_s21, %s21_s21   ;;  %s4707_s20 = sphi %s4780_s20, %s5857_s20   ;;  %s4703_s19 = sphi %s4778_s19, %s5856_s19   ;;  %s4699_s18 = sphi %s4776_s18, %s5855_s18   ;;  %s4695_s17 = sphi %s4774_s17, %s5854_s17  }
   0x4   : > { %p34_p0 = scmp.ge.s32.totalorder %s33_s22, 2  ;;  %p3975_p1 = scmp.ge.s32.totalorder %s4711_s21, 1 }
   0x5   : > { %p376_p2 = scmp.lt.s32.totalorder %s4711_s21, 5 }
   0x6   : > { %s5859_s22 = smov (%p34_p0, %s33_s22), 0  ;;  %s5861_s23 = smov (!%p34_p0, %s40_s23), %s4707_s20 }
   0x7   : > { %p377_p3 = pnand %p3975_p1, %p376_p2  ;;  %p42_p4 = scmp.ge.s32.totalorder %s5861_s23, 2 }
   0x8   : > { %p430_p5 = scmp.lt.s32.totalorder (!%p377_p3), %s4699_s18, 1  ;;  %p3980_p6 = scmp.ne.s32.totalorder (!%p377_p3), %s4695_s17, 0 }
   0x9   : > { %s5863_s23 = smov (%p42_p4, %s5861_s23), 0  ;;  %380 = sbr.rel (%p377_p3) target bundleno = 3081 (0xc09), region = 64 }
   0xe   : > { %s5865_s18 = smov (!%p430_p5, %s4699_s18), 1  ;;  %459 = sbr.rel (%p3980_p6) target bundleno = 30 (0x1e), region = 68 }
   0xf   : > { %s4346_s24 = sshll.u32 %s5865_s18, 5 }
  0x10   : > { %s437_s27 = scalar_lea.vmem %s5842_s0, %s4346_s24  ;;  %s4812_s30 = scalar_lea.vmem %s5853_s11, %s4346_s24 }
  0x13   : > { %v4401_v0 = vld [vmem:[%s437_s27] sm:$0xff]   ;;  %vm476_vm0 = vcmask 261120   ;;  %v4432_v1 = vld [vmem:[%s437_s27 + $0x8] sm:$0xff]   ;;  %v4433_v2 = vld [vmem:[%s437_s27 + $0x10] sm:$0xff]  }
  0x14   : > { %v4402_v3 = vunpack.c.l.bf16 %v4401_v0  ;;  %v4403_v4 = vunpack.c.h.bf16 %v4401_v0  ;;  %v4406_v5 = vunpack.c.l.bf16 %v4432_v1  ;;  %v4407_v6 = vunpack.c.h.bf16 %v4432_v1  ;;  %v4434_v7 = vld [vmem:[%s437_s27 + $0x18] sm:$0xff]  }
  0x15   : > { %v4410_v8 = vunpack.c.l.bf16 %v4433_v2  ;;  %v4411_v9 = vunpack.c.h.bf16 %v4433_v2  ;;  %v4414_v10 = vunpack.c.l.bf16 %v4434_v7  ;;  %v4415_v11 = vunpack.c.h.bf16 %v4434_v7 }
  0x16   : > { %477 = vst.msk [vmem:[#allocation2] sm:$0xff] %vm476_vm0, %v4402_v3 }
  0x17   : > { %478 = vst.msk [vmem:[#allocation2 + $0x8] sm:$0xff] %vm476_vm0, %v4403_v4 }
  0x18   : > { %479 = vst.msk [vmem:[#allocation2 + $0x10] sm:$0xff] %vm476_vm0, %v4406_v5 }
  0x19   : > { %480 = vst.msk [vmem:[#allocation2 + $0x18] sm:$0xff] %vm476_vm0, %v4407_v6 }
  0x1a   : > { %481 = vst.msk [vmem:[#allocation2 + $0x20] sm:$0xff] %vm476_vm0, %v4410_v8 }
  0x1b   : > { %482 = vst.msk [vmem:[#allocation2 + $0x28] sm:$0xff] %vm476_vm0, %v4411_v9 }
  0x1c   : > { %483 = vst.msk [vmem:[#allocation2 + $0x30] sm:$0xff] %vm476_vm0, %v4414_v10 }
  0x1d   : > { %484 = vst.msk [vmem:[#allocation2 + $0x38] sm:$0xff] %vm476_vm0, %v4415_v11 }
  0x1e PF: > { %s4824_s12 = sshll.u32 %s4695_s17, 6  ;;  %v4826_v12 = vld [vmem:[#allocation2] sm:$0xff]  ;;  %v4828_v13 = vld [vmem:[#allocation2 + $0x8] sm:$0xff]  ;;  %s532_s15 = smul.u32 12, %s4695_s17  ;;  %vm550_vm1 = vcmask 261120   ;;  %v4436_v32 = vld [vmem:[%s5843_s1 + $0x10] sm:$0xff]  }
  0x1f   : > { %v4417_v14 = vld [vmem:[%s5843_s1] sm:$0xff]   ;;  %s4838_s24 = scalar_lea.vmem %s5844_s2, %s4824_s12  ;;  %s4844_s27 = scalar_lea.vmem %s5845_s3, %s4824_s12  ;;  %v487_v17 = vld [vmem:[#allocation2 + $0x10] sm:$0xff]  ;;  %v4435_v19 = vld [vmem:[%s5843_s1 + $0x8] sm:$0xff]   ;;  %v4426_v35 = vunpack.c.l.bf16 %v4436_v32  ;;  %v4427_v36 = vunpack.c.h.bf16 %v4436_v32  ;;  %v4908_v52 = vpack.c.bf16 %v4828_v13, %v4826_v12  ;;  %vm734_vm2 = vcmask 130048  }
  0x20   : > { %v4418_v15 = vunpack.c.l.bf16 %v4417_v14  ;;  %v4419_v16 = vunpack.c.h.bf16 %v4417_v14  ;;  %v488_v18 = vld [vmem:[#allocation2 + $0x18] sm:$0xff]  ;;  %v4350_v20 = vld [vmem:[%s4838_s24 + $0x8] sm:$0xff]  ;;  %v4422_v22 = vunpack.c.l.bf16 %v4435_v19  ;;  %v4423_v23 = vunpack.c.h.bf16 %v4435_v19  ;;  %v4349_v26 = vld [vmem:[%s4838_s24] sm:$0xff]  ;;  %s4858_s16 = scalar_lea.vmem %s5850_s8, %s532_s15  ;;  %s4868_s26 = scalar_lea.vmem %s5846_s4, %s4824_s12 }
  0x21   : > { %v4353_v21 = vld [vmem:[%s4844_s27 + $0x8] sm:$0xff]  ;;  %569 = vmatpush.bf16.msra.mxu0 %v4350_v20  ;;  %v4352_v27 = vld [vmem:[%s4844_s27] sm:$0xff]  ;;  %4438 = vmatpush.bf16.msra.mxu3 %v4350_v20  ;;  %v4881_v39 = vpack.c.bf16 %v488_v18, %v487_v17  ;;  %v4437_v43 = vld [vmem:[%s5843_s1 + $0x18] sm:$0xff]   ;;  %vm971_vm3 = vcmask 1043456   ;;  %vm887_vm4 = vcmask 64512   ;;  %s4357_s13 = sshll.u32 %s4695_s17, 5 }
  0x22   : > { %v509_v24 = vadd.f32 %v4418_v15, %v4826_v12  ;;  %v510_v25 = vadd.f32 %v4419_v16, %v4828_v13  ;;  %4440 = vmatpush.bf16.msra.mxu1 %v4353_v21  ;;  %v511_v28 = vadd.f32 %v4422_v22, %v487_v17  ;;  %v512_v29 = vadd.f32 %v4423_v23, %v488_v18  ;;  %v4356_v33 = vld [vmem:[%s4868_s26 + $0x8] sm:$0xff]  ;;  %v4355_v34 = vld [vmem:[%s4868_s26] sm:$0xff]  ;;  %s5189_s25 = scalar_lea.vmem %s5847_s5, %s4357_s13  ;;  %s4392_s15 = sshll.u32 %s4695_s17, 4 }
  0x23   : > { %4442 = vmatpush.bf16.msra.mxu2 %v4356_v33  ;;  %v489_v37 = vld [vmem:[#allocation2 + $0x20] sm:$0xff]  ;;  %v490_v38 = vld [vmem:[#allocation2 + $0x28] sm:$0xff]  ;;  %v4430_v44 = vunpack.c.l.bf16 %v4437_v43  ;;  %v4431_v45 = vunpack.c.h.bf16 %v4437_v43  ;;  %v491_v46 = vld [vmem:[#allocation2 + $0x30] sm:$0xff]  ;;  %s3354_s29 = scalar_lea.vmem %s5848_s6, %s4392_s15  ;;  %p4343_p7 = scmp.ne.s32.totalorder %s4695_s17, 1 }
  0x24   : > { %v4860_v30 = vpack.c.bf16 %v510_v25, %v509_v24  ;;  %v4862_v31 = vpack.c.bf16 %v512_v29, %v511_v28  ;;  %v513_v40 = vadd.f32 %v4426_v35, %v489_v37  ;;  %v514_v41 = vadd.f32 %v4427_v36, %v490_v38  ;;  %v492_v47 = vld [vmem:[#allocation2 + $0x38] sm:$0xff]  ;;  %v4486_v59 = vld [vmem:[%s4858_s16 + $0x4] ss:$0 sm:$0xff]  ;;  %v4920_v1 = vld [vmem:[%s4858_s16] ss:$0 sm:$0xff] }
  0x25   : > { %570 = vmatpush.bf16.msra.mxu0 %v4349_v26  ;;  %4439 = vmatpush.bf16.msra.mxu3 %v4349_v26  ;;  %v515_v48 = vadd.f32 %v4430_v44, %v491_v46  ;;  %v516_v49 = vadd.f32 %v4431_v45, %v492_v47  ;;  %v4902_v51 = vpack.c.bf16 %v490_v38, %v489_v37 }
  0x26   : > { %4441 = vmatpush.bf16.msra.mxu1 %v4352_v27  ;;  %v4885_v42 = vpack.c.bf16 %v514_v41, %v513_v40  ;;  %v4912_v53 = vpack.c.bf16 %v492_v47, %v491_v46  ;;  %v4943_v47 = vld [vmem:[%s4858_s16 + $0x8] ss:$0 sm:$0xff] }
  0x27   : > { %4443 = vmatpush.bf16.msra.mxu2 %v4355_v34  ;;  %v4896_v50 = vpack.c.bf16 %v516_v49, %v515_v48 }
  0x28   : > { %3991 = vmatmul.msk.bf16.vlgmr.msra.gmra.mxu0 %vm550_vm1, %v4860_v30  ;;  %3992 = vmatmul.msk.bf16.vlgmr.msra.gmra.mxu3 %vm550_vm1, %v4862_v31 }
  0x29   : > { %622 = vmatpush.bf16.msrb.mxu0 %v4353_v21  ;;  %4006 = vmatmul.msk.bf16.vlgmr.msra.gmra.mxu1 %vm550_vm1, %v4862_v31 }
  0x2a   : > { %4020 = vmatmul.msk.bf16.vlgmr.msra.gmra.mxu2 %vm550_vm1, %v4881_v39 }
  0x2d   : > { %623 = vmatpush.bf16.msrb.mxu0 %v4352_v27 }
  0x31   : > { %687 = vmatpush.bf16.msra.mxu0 %v4356_v33 }
  0x35   : > { %688 = vmatpush.bf16.msra.mxu0 %v4355_v34 }
  0x38   : > { %4005 = vmatmul.msk.bf16.vlgmr.msrb.gmra.mxu0 %vm550_vm1, %v4860_v30  ;;  %3993 = vmatmul.msk.bf16.gmra.mxu3 %vm550_vm1, %v4885_v42 }
  0x39   : > { %4007 = vmatmul.msk.bf16.gmra.mxu1 %vm550_vm1, %v4885_v42 }
  0x3a   : > { %4021 = vmatmul.msk.bf16.gmra.mxu2 %vm550_vm1, %v4902_v51 }
  0x48   : > { %3994 = vmatmul.msk.bf16.gmra.mxu3 %vm550_vm1, %v4896_v50  ;;  %4019 = vmatmul.msk.bf16.vlgmr.msra.gmra.mxu0 %vm550_vm1, %v4908_v52 }
  0x49   : > { %4008 = vmatmul.msk.bf16.gmra.mxu1 %vm550_vm1, %v4896_v50 }
  0x4a   : > { %4022 = vmatmul.msk.bf16.gmra.mxu2 %vm550_vm1, %v4912_v53 }
  0xa5   : > { %v572_v54 = vpop.f32.mrf.mxu0 }
  0xa6   : > { %v630_v55 = vpop.f32.mrf.mxu1  ;;  %v573_v7 = vadd.f32 %v4920_v1, %v572_v54 }
  0xa7   : > { %v631_v4 = vadd.f32 %v4486_v59, %v630_v55 }
  0xa8   : > { %v710_v16 = vpack.c.bf16 %v573_v7, %v573_v7 }
  0xa9   : > { %v720_v9 = vpack.c.bf16 %v631_v4, %v631_v4 }
  0xab   : > { %v577_v56 = vpop.f32.mrf.mxu3  ;;  %v777_v19 = vsel %vm734_vm2, %v720_v9, 0 }
  0xac   : > { %v578_v43 = vadd.f32 %v4920_v1, %v577_v56 }
  0xad   : > { %v574_v57 = vpop.f32.mrf.mxu0  ;;  %v695_v48 = vpop.f32.mrf.mxu2 }
  0xae   : > { %v632_v58 = vpop.f32.mrf.mxu1  ;;  %v575_v32 = vadd.f32 %v4920_v1, %v574_v57  ;;  %v712_v45 = vpack.c.bf16 %v578_v43, %v578_v43  ;;  %v696_v49 = vadd.f32 %v4943_v47, %v695_v48 }
  0xaf   : > { %v633_v28 = vadd.f32 %v4486_v59, %v632_v58 }
  0xb0   : > { %v711_v37 = vpack.c.bf16 %v575_v32, %v575_v32  ;;  %v728_v54 = vpack.c.bf16 %v696_v49, %v696_v49 }
  0xb1   : > { %v721_v35 = vpack.c.bf16 %v633_v28, %v633_v28 }
  0xb2   : > { %v1011_v55 = vsel %vm971_vm3, %v728_v54, 0 }
  0xb3   : > { %v4917_v60 = vpop.f32.mrf.mxu3  ;;  %v796_v38 = vsel %vm734_vm2, %v721_v35, 0 }
  0xb4   : > { %v580_v56 = vadd.f32 %v4920_v1, %v4917_v60 }
  0xb5   : > { %v625_v61 = vpop.f32.mrf.mxu0 }
  0xb6   : > { %v635_v62 = vpop.f32.mrf.mxu1  ;;  %v626_v63 = vadd.f32 %v4486_v59, %v625_v61  ;;  %v713_v57 = vpack.c.bf16 %v580_v56, %v580_v56 }
  0xb7   : > { %v636_v0 = vadd.f32 %v4486_v59, %v635_v62  ;;  %v697_v62 = vpop.f32.mrf.mxu2 }
  0xb8   : > { %v718_v2 = vpack.c.bf16 %v626_v63, %v626_v63 }
  0xb9   : > { %v722_v3 = vpack.c.bf16 %v636_v0, %v636_v0 }
  0xba   : > { %v739_v6 = vsel %vm734_vm2, %v718_v2, 0 }
  0xbb   : > { %v815_v5 = vsel %vm734_vm2, %v722_v3, 0  ;;  %748 = vmatpush.bf16.xpose.msrb.mxu3 %v739_v6  ;;  %v582_v8 = vpop.f32.mrf.mxu3 }
  0xbc   : > { %824 = vmatpush.bf16.xpose.msrb.mxu0 %v815_v5  ;;  %v583_v10 = vadd.f32 %v4920_v1, %v582_v8 }
  0xbd   : > { %v627_v11 = vpop.f32.mrf.mxu0 }
  0xbe   : > { %v637_v12 = vpop.f32.mrf.mxu1  ;;  %v628_v13 = vadd.f32 %v4486_v59, %v627_v11  ;;  %v714_v15 = vpack.c.bf16 %v583_v10, %v583_v10 }
  0xbf   : > { %v638_v14 = vadd.f32 %v4486_v59, %v637_v12  ;;  %v700_v63 = vpop.f32.mrf.mxu2 }
  0xc0   : > { %v719_v17 = vpack.c.bf16 %v628_v13, %v628_v13  ;;  %v701_v0 = vadd.f32 %v4943_v47, %v700_v63 }
  0xc1   : > { %v723_v18 = vpack.c.bf16 %v638_v14, %v638_v14 }
  0xc2   : > { %4023 = vmatmul.msk.bf16.vlgmr.msrb.gmra.mxu3 %vm734_vm2, %v710_v16  ;;  %v758_v20 = vsel %vm734_vm2, %v719_v17, 0  ;;  %v730_v3 = vpack.c.bf16 %v701_v0, %v701_v0 }
  0xc3   : > { %v834_v21 = vsel %vm734_vm2, %v723_v18, 0  ;;  %4027 = vmatmul.msk.bf16.vlgmr.msrb.gmra.mxu0 %vm734_vm2, %v714_v15  ;;  %767 = vmatpush.bf16.xpose.msra.mxu3 %v758_v20  ;;  %v584_v22 = vpop.f32.mrf.mxu3 }
  0xc4   : > { %843 = vmatpush.bf16.xpose.msrb.mxu1 %v834_v21  ;;  %v585_v23 = vadd.f32 %v4920_v1, %v584_v22  ;;  %v1049_v60 = vsel %vm971_vm3, %v730_v3, 0 }
  0xc5   : > { %v690_v4 = vpop.f32.mrf.mxu0 }
  0xc6   : > { %v640_v24 = vpop.f32.mrf.mxu1  ;;  %v715_v26 = vpack.c.bf16 %v585_v23, %v585_v23  ;;  %v691_v5 = vadd.f32 %v4943_v47, %v690_v4 }
  0xc7   : > { %v641_v25 = vadd.f32 %v4486_v59, %v640_v24  ;;  %v702_v2 = vpop.f32.mrf.mxu2 }
  0xc8   : > { %v726_v6 = vpack.c.bf16 %v691_v5, %v691_v5  ;;  %v703_v48 = vadd.f32 %v4943_v47, %v702_v2  ;;  %v4364_v5 = vld [vmem:[%s4844_s27 + $0x18] sm:$0xff] }
  0xc9   : > { %v724_v27 = vpack.c.bf16 %v641_v25, %v641_v25 }
  0xca   : > { %v973_v7 = vsel %vm971_vm3, %v726_v6, 0  ;;  %v731_v49 = vpack.c.bf16 %v703_v48, %v703_v48 }
  0xcb   : > { %786 = vmatpush.bf16.xpose.msrb.mxu3 %v777_v19  ;;  %4028 = vmatmul.msk.bf16.vlgmr.msrb.gmra.mxu1 %vm734_vm2, %v715_v26  ;;  %v853_v29 = vsel %vm734_vm2, %v724_v27, 0  ;;  %v587_v33 = vpop.f32.mrf.mxu3 }
  0xcc   : > { %862 = vmatpush.bf16.xpose.msrb.mxu2 %v853_v29  ;;  %v588_v34 = vadd.f32 %v4920_v1, %v587_v33  ;;  %982 = vmatpush.bf16.msra.mxu0 %v973_v7  ;;  %v1068_v54 = vsel %vm971_vm3, %v731_v49, 0 }
  0xcd   : > { %v692_v11 = vpop.f32.mrf.mxu0 }
  0xce   : > { %v716_v36 = vpack.c.bf16 %v588_v34, %v588_v34  ;;  %v642_v40 = vpop.f32.mrf.mxu1  ;;  %v693_v12 = vadd.f32 %v4943_v47, %v692_v11 }
  0xcf   : > { %v643_v41 = vadd.f32 %v4486_v59, %v642_v40 }
  0xd0   : > { %1058 = vmatpush.bf16.msrb.mxu0 %v1049_v60  ;;  %v727_v13 = vpack.c.bf16 %v693_v12, %v693_v12  ;;  %v4363_v60 = vld [vmem:[%s4844_s27 + $0x10] sm:$0xff] }
  0xd1   : > { %v725_v44 = vpack.c.bf16 %v643_v41, %v643_v41  ;;  %v4360_v12 = vld [vmem:[%s4838_s24 + $0x10] sm:$0xff] }
  0xd2   : > { %4024 = vmatmul.msk.bf16.vlgmr.msra.gmra.mxu3 %vm734_vm2, %v711_v37  ;;  %v992_v15 = vsel %vm971_vm3, %v727_v13, 0 }
  0xd3   : > { %4029 = vmatmul.msk.bf16.vlgmr.msrb.gmra.mxu2 %vm734_vm2, %v716_v36  ;;  %805 = vmatpush.bf16.xpose.msra.mxu3 %v796_v38  ;;  %v872_v46 = vsel %vm734_vm2, %v725_v44, 0  ;;  %v589_v58 = vpop.f32.mrf.mxu3  ;;  %v698_v44 = vadd.f32 %v4943_v47, %v697_v62 }
  0xd4   : > { %1020 = vmatpush.bf16.msra.mxu2 %v1011_v55  ;;  %v590_v59 = vadd.f32 %v4920_v1, %v589_v58  ;;  %v705_v1 = vpop.f32.mrf.mxu2  ;;  %1001 = vmatpush.bf16.msra.mxu1 %v992_v15 }
  0xd5   : > { %v706_v8 = vadd.f32 %v4943_v47, %v705_v1 }
  0xd6   : > { %v717_v61 = vpack.c.bf16 %v590_v59, %v590_v59 }
  0xd7   : > { %v732_v9 = vpack.c.bf16 %v706_v8, %v706_v8 }
  0xd8   : > { %1077 = vmatpush.bf16.msrb.mxu1 %v1068_v54 }
  0xd9   : > { %v1087_v10 = vsel %vm971_vm3, %v732_v9, 0  ;;  %v4361_v9 = vld [vmem:[%s4838_s24 + $0x18] sm:$0xff] }
  0xda   : > { %1096 = vmatpush.bf16.msrb.mxu2 %v1087_v10 }
  0xdc   : > { %v707_v20 = vpop.f32.mrf.mxu2 }
  0xdd   : > { %v708_v55 = vadd.f32 %v4943_v47, %v707_v20 }
  0xdf   : > { %v733_v56 = vpack.c.bf16 %v708_v55, %v708_v55  ;;  %v5065_v55 = vld [vmem:[%s4858_s16 + $0x5] ss:$0 sm:$0xff] }
  0xe2   : > { %4025 = vmatmul.msk.bf16.vlgmr.msrb.gmra.mxu3 %vm734_vm2, %v712_v45  ;;  %v729_v45 = vpack.c.bf16 %v698_v44, %v698_v44 }
  0xe3   : > { %881 = vmatpush.bf16.xpose.msrb.mxu3 %v872_v46 }
  0xe4   : > { %v1030_v46 = vsel %vm971_vm3, %v729_v45, 0 }
  0xf2   : > { %4026 = vmatmul.msk.bf16.vlgmr.msra.gmra.mxu3 %vm734_vm2, %v713_v57 }
  0xf3   : > { %1039 = vmatpush.bf16.msra.mxu3 %v1030_v46 }
 0x102   : > { %4030 = vmatmul.msk.bf16.vlgmr.msrb.gmra.mxu3 %vm734_vm2, %v717_v61  ;;  %v1106_v61 = vsel %vm971_vm3, %v733_v56, 0 }
 0x103   : > { %1115 = vmatpush.bf16.msrb.mxu3 %v1106_v61 }
 0x140   : > { %v4959_v14 = vpop.f32.mrf.mxu0 }
 0x141   : > { %v900_v22 = vsel %vm887_vm4, %v4959_v14, -inf }
 0x145   : > { %v750_v16 = vpop.f32.mrf.mxu3 }
 0x146   : > { %v888_v32 = vsel %vm887_vm4, %v750_v16, -inf }
 0x148   : > { %v845_v17 = vpop.f32.mrf.mxu1  ;;  %v828_v18 = vpop.f32.mrf.mxu0 }
 0x149   : > { %v903_v19 = vsel %vm887_vm4, %v845_v17, -inf }
 0x14a   : > { %904 = vmax.xlane.f32.xlu1 %v903_v19 }
 0x14d   : > { %v752_v21 = vpop.f32.mrf.mxu3 }
 0x150   : > { %v847_v23 = vpop.f32.mrf.mxu1 }
 0x152   : > { %901 = vmax.xlane.f32.xlu1 %v900_v22 }
 0x155   : > { %v769_v24 = vpop.f32.mrf.mxu3 }
 0x156   : > { %v4965_v25 = vpop.f32.mrf.mxu2  ;;  %v891_v26 = vsel %vm887_vm4, %v769_v24, -inf }
 0x157   : > { %v906_v27 = vsel %vm887_vm4, %v4965_v25, -inf  ;;  %892 = vmax.xlane.f32.xlu0 %v891_v26 }
 0x15a   : > { %907 = vmax.xlane.f32.xlu1 %v906_v27 }
 0x15d   : > { %v771_v28 = vpop.f32.mrf.mxu3 }
 0x15e   : > { %v866_v29 = vpop.f32.mrf.mxu2 }
 0x15f   : > { %889 = vmax.xlane.f32.xlu0 %v888_v32 }
 0x165   : > { %v4971_v33 = vpop.f32.mrf.mxu3 }
 0x166   : > { %v894_v38 = vsel %vm887_vm4, %v4971_v33, -inf }
 0x16d   : > { %v790_v34 = vpop.f32.mrf.mxu3 }
 0x175   : > { %v807_v35 = vpop.f32.mrf.mxu3 }
 0x176   : > { %v897_v36 = vsel %vm887_vm4, %v807_v35, -inf }
 0x177   : > { %898 = vmax.xlane.f32.xlu2 %v897_v36 }
 0x17d   : > { %v809_v37 = vpop.f32.mrf.mxu3 }
 0x17f   : > { %895 = vmax.xlane.f32.xlu2 %v894_v38 }
 0x185   : > { %v4976_v40 = vpop.f32.mrf.mxu3 }
 0x186   : > { %v909_v41 = vsel %vm887_vm4, %v4976_v40, -inf }
 0x187   : > { %910 = vmax.xlane.f32.xlu0 %v909_v41  ;;  %v4366_v41 = vld [vmem:[%s4868_s26 + $0x10] sm:$0xff] }
 0x18d   : > { %v885_v43 = vpop.f32.mrf.mxu3 }
 0x1bd   : > { %v905_v62 = vpop.xlane.xlu1 %904 }
 0x1be   : > { %v917_v3 = vsub.f32 %v845_v17, %v905_v62  ;;  %v5072_v62 = vld [vmem:[%s4858_s16 + $0x1] ss:$0 sm:$0xff] }
 0x1c0   : > { %v930_v6 = vmul.f32 1.442695, %v917_v3 }
 0x1c5   : > { %v902_v7 = vpop.xlane.xlu1 %901 }
 0x1c6   : > { %v916_v8 = vsub.f32 %v4959_v14, %v902_v7 }
 0x1c8   : > { %v928_v11 = vmul.f32 1.442695, %v916_v8 }
 0x1ca   : > { %v893_v57 = vpop.xlane.xlu0 %892 }
 0x1cb   : > { %v913_v58 = vsub.f32 %v769_v24, %v893_v57 }
 0x1cd   : > { %v922_v59 = vmul.f32 1.442695, %v913_v58  ;;  %v908_v26 = vpop.xlane.xlu1 %907 }
 0x1ce   : > { %v918_v32 = vsub.f32 %v4965_v25, %v908_v26 }
 0x1cf   : > { %4503 = vpow2.f32 %v922_v59 }
 0x1d2   : > { %v890_v63 = vpop.xlane.xlu0 %889 }
 0x1d3   : > { %v912_v0 = vsub.f32 %v750_v16, %v890_v63 }
 0x1d5   : > { %v4986_v2 = vpop.eup %4503  ;;  %v920_v4 = vmul.f32 1.442695, %v912_v0 }
 0x1d6   : > { %v961_v47 = vpack.c.bf16 %v4986_v2, %v4986_v2 }
 0x1d7   : > { %4505 = vpow2.f32 %v920_v4 }
 0x1d8   : > { %4032 = vmatmul.msk.bf16.vlgmr.msra.gmra.mxu1 %vm887_vm4, %v961_v47  ;;  %4507 = vpow2.f32 %v930_v6 }
 0x1d9   : > { %1230 = vmatpush.bf16.msra.mxu1 %v4364_v5  ;;  %4509 = vpow2.f32 %v928_v11 }
 0x1dd   : > { %v4993_v1 = vpop.eup %4505  ;;  %1231 = vmatpush.bf16.msra.mxu1 %v4363_v60 }
 0x1de   : > { %v960_v10 = vpack.c.bf16 %v4993_v1, %v4993_v1  ;;  %v5001_v13 = vpop.eup %4507 }
 0x1df   : > { %v965_v15 = vpack.c.bf16 %v5001_v13, %v5001_v13  ;;  %v5006_v16 = vpop.eup %4509 }
 0x1e0   : > { %4031 = vmatmul.msk.bf16.vlgmr.msra.gmra.mxu0 %vm887_vm4, %v960_v10  ;;  %v964_v19 = vpack.c.bf16 %v5006_v16, %v5006_v16 }
 0x1e1   : > { %1177 = vmatpush.bf16.msra.mxu0 %v4361_v9 }
 0x1e5   : > { %1178 = vmatpush.bf16.msra.mxu0 %v4360_v12 }
 0x1e8   : > { %4036 = vmatmul.msk.bf16.vlgmr.msrb.gmra.mxu1 %vm887_vm4, %v965_v15 }
 0x1ea   : > { %v899_v14 = vpop.xlane.xlu2 %898 }
 0x1eb   : > { %v915_v17 = vsub.f32 %v807_v35, %v899_v14  ;;  %v932_v35 = vmul.f32 1.442695, %v918_v32 }
 0x1ed   : > { %v926_v18 = vmul.f32 1.442695, %v915_v17 }
 0x1ef   : > { %4511 = vpow2.f32 %v926_v18 }
 0x1f0   : > { %4035 = vmatmul.msk.bf16.vlgmr.msrb.gmra.mxu0 %vm887_vm4, %v964_v19 }
 0x1f2   : > { %v896_v20 = vpop.xlane.xlu2 %895 }
 0x1f3   : > { %v914_v21 = vsub.f32 %v4971_v33, %v896_v20 }
 0x1f5   : > { %v5012_v22 = vpop.eup %4511  ;;  %v924_v23 = vmul.f32 1.442695, %v914_v21 }
 0x1f6   : > { %v963_v24 = vpack.c.bf16 %v5012_v22, %v5012_v22 }
 0x1f7   : > { %4513 = vpow2.f32 %v924_v23 }
 0x1f8   : > { %4034 = vmatmul.msk.bf16.vlgmr.msra.gmra.mxu3 %vm887_vm4, %v963_v24  ;;  %4075 = vmatmul.msk.bf16.vlgmr.msra.gmra.mxu1 %vm550_vm1, %v4860_v30 }
 0x1fa   : > { %v911_v27 = vpop.xlane.xlu0 %910 }
 0x1fb   : > { %v919_v28 = vsub.f32 %v4976_v40, %v911_v27  ;;  %v4367_v40 = vld [vmem:[%s4868_s26 + $0x18] sm:$0xff] }
 0x1fd   : > { %v5020_v29 = vpop.eup %4513  ;;  %v934_v33 = vmul.f32 1.442695, %v919_v28 }
 0x1fe   : > { %v962_v34 = vpack.c.bf16 %v5020_v29, %v5020_v29 }
 0x1ff   : > { %4515 = vpow2.f32 %v934_v33 }
 0x200   : > { %4033 = vmatmul.msk.bf16.vlgmr.msra.gmra.mxu2 %vm887_vm4, %v962_v34  ;;  %4056 = vmatmul.msk.bf16.vlgmr.msra.gmra.mxu0 %vm550_vm1, %v4860_v30  ;;  %4517 = vpow2.f32 %v932_v35 }
 0x201   : > { %1283 = vmatpush.bf16.msra.mxu2 %v4367_v40 }
 0x205   : > { %v5028_v36 = vpop.eup %4515  ;;  %1284 = vmatpush.bf16.msra.mxu2 %v4366_v41 }
 0x206   : > { %v967_v37 = vpack.c.bf16 %v5028_v36, %v5028_v36  ;;  %v5035_v25 = vpop.eup %4517 }
 0x207   : > { %v966_v38 = vpack.c.bf16 %v5035_v25, %v5035_v25 }
 0x208   : > { %4038 = vmatmul.msk.bf16.vlgmr.msrb.gmra.mxu3 %vm887_vm4, %v967_v37  ;;  %4076 = vmatmul.msk.bf16.gmra.mxu1 %vm550_vm1, %v4862_v31 }
 0x210   : > { %4037 = vmatmul.msk.bf16.vlgmr.msrb.gmra.mxu2 %vm887_vm4, %v966_v38  ;;  %4057 = vmatmul.msk.bf16.gmra.mxu0 %vm550_vm1, %v4862_v31 }
 0x218   : > { %4077 = vmatmul.msk.bf16.gmra.mxu1 %vm550_vm1, %v4885_v42 }
 0x220   : > { %4058 = vmatmul.msk.bf16.gmra.mxu0 %vm550_vm1, %v4885_v42  ;;  %4094 = vmatmul.msk.bf16.vlgmr.msra.gmra.mxu2 %vm550_vm1, %v4908_v52 }
 0x228   : > { %4078 = vmatmul.msk.bf16.gmra.mxu1 %vm550_vm1, %v4896_v50 }
 0x230   : > { %4059 = vmatmul.msk.bf16.gmra.mxu0 %vm550_vm1, %v4896_v50  ;;  %4095 = vmatmul.msk.bf16.gmra.mxu2 %vm550_vm1, %v4881_v39 }
 0x240   : > { %4096 = vmatmul.msk.bf16.gmra.mxu2 %vm550_vm1, %v4902_v51 }
 0x250   : > { %4097 = vmatmul.msk.bf16.gmra.mxu2 %vm550_vm1, %v4912_v53 }
 0x255   : > { %v5054_v43 = vpop.f32.mrf.mxu1 }
 0x25d   : > { %v5056_v44 = vpop.f32.mrf.mxu0  ;;  %v1005_v45 = vpop.f32.mrf.mxu1 }
 0x265   : > { %v986_v46 = vpop.f32.mrf.mxu0  ;;  %v5060_v48 = vpop.f32.mrf.mxu1 }
 0x26d   : > { %v5062_v49 = vpop.f32.mrf.mxu0  ;;  %v1081_v54 = vpop.f32.mrf.mxu1 }
 0x275   : > { %v1062_v56 = vpop.f32.mrf.mxu0  ;;  %v1233_v57 = vpop.f32.mrf.mxu1 }
 0x276   : > { %v1234_v58 = vadd.f32 %v5065_v55, %v1233_v57 }
 0x278   : > { %v1314_v59 = vpack.c.bf16 %v1234_v58, %v1234_v58 }
 0x27a   : > { %v1334_v61 = vsel %vm734_vm2, %v1314_v59, 0 }
 0x27b   : > { %v5074_v63 = vpop.f32.mrf.mxu3  ;;  %1343 = vmatpush.bf16.xpose.msra.mxu3 %v1334_v61 }
 0x27d   : > { %v1180_v0 = vpop.f32.mrf.mxu0  ;;  %v1235_v3 = vpop.f32.mrf.mxu1 }
 0x27e   : > { %v1181_v4 = vadd.f32 %v5072_v62, %v1180_v0  ;;  %v1236_v5 = vadd.f32 %v5065_v55, %v1235_v3 }
 0x280   : > { %v1306_v47 = vpack.c.bf16 %v1181_v4, %v1181_v4  ;;  %v1315_v6 = vpack.c.bf16 %v1236_v5, %v1236_v5 }
 0x282   : > { %4098 = vmatmul.msk.bf16.vlgmr.msra.gmra.mxu3 %vm734_vm2, %v1306_v47  ;;  %v1353_v60 = vsel %vm734_vm2, %v1315_v6, 0 }
 0x283   : > { %v5082_v7 = vpop.f32.mrf.mxu2  ;;  %v1043_v8 = vpop.f32.mrf.mxu3  ;;  %1362 = vmatpush.bf16.xpose.msrb.mxu3 %v1353_v60 }
 0x285   : > { %v1182_v9 = vpop.f32.mrf.mxu0  ;;  %v1238_v10 = vpop.f32.mrf.mxu1 }
 0x286   : > { %v1239_v11 = vadd.f32 %v5065_v55, %v1238_v10  ;;  %v1183_v18 = vadd.f32 %v5072_v62, %v1182_v9 }
 0x288   : > { %v1316_v12 = vpack.c.bf16 %v1239_v11, %v1239_v11  ;;  %v1307_v23 = vpack.c.bf16 %v1183_v18, %v1183_v18 }
 0x28a   : > { %v1372_v15 = vsel %vm734_vm2, %v1316_v12, 0 }
 0x28b   : > { %v1024_v14 = vpop.f32.mrf.mxu2  ;;  %v5086_v17 = vpop.f32.mrf.mxu3  ;;  %1381 = vmatpush.bf16.xpose.msra.mxu3 %v1372_v15 }
 0x28d   : > { %v1185_v19 = vpop.f32.mrf.mxu0  ;;  %v1240_v20 = vpop.f32.mrf.mxu1 }
 0x28e   : > { %v1241_v21 = vadd.f32 %v5065_v55, %v1240_v20  ;;  %v1186_v40 = vadd.f32 %v5072_v62, %v1185_v19 }
 0x290   : > { %v1317_v24 = vpack.c.bf16 %v1241_v21, %v1241_v21  ;;  %v1308_v56 = vpack.c.bf16 %v1186_v40, %v1186_v40 }
 0x292   : > { %4099 = vmatmul.msk.bf16.vlgmr.msrb.gmra.mxu3 %vm734_vm2, %v1307_v23  ;;  %v1391_v26 = vsel %vm734_vm2, %v1317_v24, 0  ;;  %v4490_v23 = vld [vmem:[%s4858_s16 + $0x9] ss:$0 sm:$0xff] }
 0x293   : > { %v5092_v27 = vpop.f32.mrf.mxu2  ;;  %v1119_v28 = vpop.f32.mrf.mxu3  ;;  %1400 = vmatpush.bf16.xpose.msrb.mxu3 %v1391_v26 }
 0x295   : > { %v1187_v32 = vpop.f32.mrf.mxu0  ;;  %v1243_v33 = vpop.f32.mrf.mxu1 }
 0x296   : > { %v1244_v34 = vadd.f32 %v5065_v55, %v1243_v33  ;;  %v1188_v60 = vadd.f32 %v5072_v62, %v1187_v32 }
 0x298   : > { %v1318_v35 = vpack.c.bf16 %v1244_v34, %v1244_v34  ;;  %v1309_v12 = vpack.c.bf16 %v1188_v60, %v1188_v60 }
 0x29a   : > { %v1410_v37 = vsel %vm734_vm2, %v1318_v35, 0 }
 0x29b   : > { %v1100_v38 = vpop.f32.mrf.mxu2  ;;  %1419 = vmatpush.bf16.xpose.msrb.mxu0 %v1410_v37 }
 0x29d   : > { %v1190_v41 = vpop.f32.mrf.mxu0  ;;  %v1245_v45 = vpop.f32.mrf.mxu1 }
 0x29e   : > { %v1191_v46 = vadd.f32 %v5072_v62, %v1190_v41  ;;  %v1246_v54 = vadd.f32 %v5065_v55, %v1245_v45 }
 0x2a0   : > { %v1310_v57 = vpack.c.bf16 %v1191_v46, %v1191_v46  ;;  %v1319_v58 = vpack.c.bf16 %v1246_v54, %v1246_v54 }
 0x2a2   : > { %4100 = vmatmul.msk.bf16.vlgmr.msra.gmra.mxu3 %vm734_vm2, %v1308_v56  ;;  %4102 = vmatmul.msk.bf16.vlgmr.msrb.gmra.mxu0 %vm734_vm2, %v1310_v57  ;;  %v1429_v59 = vsel %vm734_vm2, %v1319_v58, 0 }
 0x2a3   : > { %1438 = vmatpush.bf16.xpose.msrb.mxu1 %v1429_v59  ;;  %v1286_v24 = vpop.f32.mrf.mxu2 }
 0x2a4   : > { %v1287_v26 = vadd.f32 %v4490_v23, %v1286_v24 }
 0x2a5   : > { %v1192_v61 = vpop.f32.mrf.mxu0  ;;  %v1248_v0 = vpop.f32.mrf.mxu1 }
 0x2a6   : > { %v1193_v3 = vadd.f32 %v5072_v62, %v1192_v61  ;;  %v1249_v4 = vadd.f32 %v5065_v55, %v1248_v0 }
 0x2a8   : > { %v1311_v5 = vpack.c.bf16 %v1193_v3, %v1193_v3  ;;  %v1320_v47 = vpack.c.bf16 %v1249_v4, %v1249_v4 }
 0x2aa   : > { %v1448_v6 = vsel %vm734_vm2, %v1320_v47, 0  ;;  %4103 = vmatmul.msk.bf16.vlgmr.msrb.gmra.mxu1 %vm734_vm2, %v1311_v5 }
 0x2ab   : > { %1457 = vmatpush.bf16.xpose.msrb.mxu2 %v1448_v6  ;;  %v1288_v32 = vpop.f32.mrf.mxu2 }
 0x2ac   : > { %v1289_v33 = vadd.f32 %v4490_v23, %v1288_v32 }
 0x2ad   : > { %v1195_v8 = vpop.f32.mrf.mxu0  ;;  %v1250_v9 = vpop.f32.mrf.mxu1 }
 0x2ae   : > { %v1196_v10 = vadd.f32 %v5072_v62, %v1195_v8  ;;  %v1251_v11 = vadd.f32 %v5065_v55, %v1250_v9  ;;  %v1322_v55 = vpack.c.bf16 %v1287_v26, %v1287_v26  ;;  %v1323_v38 = vpack.c.bf16 %v1289_v33, %v1289_v33 }
 0x2b0   : > { %v1312_v15 = vpack.c.bf16 %v1196_v10, %v1196_v10  ;;  %v1321_v14 = vpack.c.bf16 %v1251_v11, %v1251_v11  ;;  %v1566_v28 = vsel %vm971_vm3, %v1322_v55, 0  ;;  %v1585_v41 = vsel %vm971_vm3, %v1323_v38, 0 }
 0x2b1   : > { %1575 = vmatpush.bf16.msra.mxu0 %v1566_v28  ;;  %1594 = vmatpush.bf16.msra.mxu1 %v1585_v41 }
 0x2b2   : > { %4101 = vmatmul.msk.bf16.vlgmr.msrb.gmra.mxu3 %vm734_vm2, %v1309_v12  ;;  %4104 = vmatmul.msk.bf16.vlgmr.msrb.gmra.mxu2 %vm734_vm2, %v1312_v15  ;;  %v1467_v18 = vsel %vm734_vm2, %v1321_v14, 0 }
 0x2b3   : > { %1476 = vmatpush.bf16.xpose.msra.mxu3 %v1467_v18  ;;  %v1291_v34 = vpop.f32.mrf.mxu2 }
 0x2b4   : > { %v1292_v35 = vadd.f32 %v4490_v23, %v1291_v34 }
 0x2b5   : > { %v1197_v19 = vpop.f32.mrf.mxu0 }
 0x2b6   : > { %v1198_v20 = vadd.f32 %v5072_v62, %v1197_v19  ;;  %v1324_v37 = vpack.c.bf16 %v1292_v35, %v1292_v35 }
 0x2b8   : > { %v1313_v21 = vpack.c.bf16 %v1198_v20, %v1198_v20  ;;  %v1604_v40 = vsel %vm971_vm3, %v1324_v37, 0 }
 0x2b9   : > { %1613 = vmatpush.bf16.msra.mxu2 %v1604_v40 }
 0x2bb   : > { %v1293_v62 = vpop.f32.mrf.mxu2 }
 0x2bc   : > { %v1294_v54 = vadd.f32 %v4490_v23, %v1293_v62  ;;  %v942_v62 = vsel %vm887_vm4, %v5020_v29, 0.0  ;;  %v936_v29 = vsel %vm887_vm4, %v4993_v1, 0.0 }
 0x2be   : > { %v1325_v58 = vpack.c.bf16 %v1294_v54, %v1294_v54 }
 0x2c0   : > { %v1623_v61 = vsel %vm971_vm3, %v1325_v58, 0  ;;  %v945_v58 = vsel %vm887_vm4, %v5012_v22, 0.0 }
 0x2c1   : > { %1632 = vmatpush.bf16.msrb.mxu3 %v1623_v61 }
 0x2c2   : > { %4105 = vmatmul.msk.bf16.vlgmr.msra.gmra.mxu3 %vm734_vm2, %v1313_v21 }
 0x2c3   : > { %v1296_v45 = vpop.f32.mrf.mxu2 }
 0x2c4   : > { %v1297_v46 = vadd.f32 %v4490_v23, %v1296_v45 }
 0x2c6   : > { %v1326_v56 = vpack.c.bf16 %v1297_v46, %v1297_v46 }
 0x2c8   : > { %v1642_v57 = vsel %vm971_vm3, %v1326_v56, 0  ;;  %v939_v56 = vsel %vm887_vm4, %v4986_v2, 0.0 }
 0x2c9   : > { %1651 = vmatpush.bf16.msrb.mxu0 %v1642_v57 }
 0x2cb   : > { %v1298_v59 = vpop.f32.mrf.mxu2 }
 0x2cc   : > { %v1299_v5 = vadd.f32 %v4490_v23, %v1298_v59  ;;  %v948_v59 = vsel %vm887_vm4, %v5006_v16, 0.0 }
 0x2ce   : > { %v1327_v60 = vpack.c.bf16 %v1299_v5, %v1299_v5 }
 0x2d0   : > { %v1661_v9 = vsel %vm971_vm3, %v1327_v60, 0 }
 0x2d1   : > { %1670 = vmatpush.bf16.msrb.mxu1 %v1661_v9 }
 0x2d3   : > { %v1301_v3 = vpop.f32.mrf.mxu2 }
 0x2d4   : > { %v1302_v4 = vadd.f32 %v4490_v23, %v1301_v3 }
 0x2d6   : > { %v1328_v47 = vpack.c.bf16 %v1302_v4, %v1302_v4 }
 0x2d8   : > { %v1680_v6 = vsel %vm971_vm3, %v1328_v47, 0 }
 0x2d9   : > { %1689 = vmatpush.bf16.msrb.mxu2 %v1680_v6 }
 0x2db   : > { %v1303_v11 = vpop.f32.mrf.mxu2 }
 0x2dc   : > { %v1304_v12 = vadd.f32 %v4490_v23, %v1303_v11 }
 0x2de   : > { %v1329_v15 = vpack.c.bf16 %v1304_v12, %v1304_v12 }
 0x2e0   : > { %v1699_v19 = vsel %vm971_vm3, %v1329_v15, 0 }
 0x2e1   : > { %1708 = vmatpush.bf16.msra.mxu3 %v1699_v19  ;;  %v4371_v19 = vld [vmem:[%s4838_s24 + $0x20] sm:$0xff] }
 0x305   : > { %v5120_v0 = vpop.f32.mrf.mxu3 }
 0x306   : > { %v1482_v28 = vsel %vm887_vm4, %v5120_v0, -inf }
 0x30d   : > { %v1347_v8 = vpop.f32.mrf.mxu3 }
 0x315   : > { %v5124_v10 = vpop.f32.mrf.mxu3 }
 0x316   : > { %v1485_v57 = vsel %vm887_vm4, %v5124_v10, -inf }
 0x31d   : > { %v1366_v14 = vpop.f32.mrf.mxu3 }
 0x31f   : > { %v5126_v18 = vpop.f32.mrf.mxu0 }
 0x320   : > { %v1494_v45 = vsel %vm887_vm4, %v5126_v18, -inf }
 0x325   : > { %v1383_v20 = vpop.f32.mrf.mxu3 }
 0x326   : > { %v1488_v21 = vsel %vm887_vm4, %v1383_v20, -inf }
 0x327   : > { %v1423_v24 = vpop.f32.mrf.mxu0  ;;  %v5130_v26 = vpop.f32.mrf.mxu1  ;;  %1489 = vmax.xlane.f32.xlu0 %v1488_v21 }
 0x328   : > { %v1497_v34 = vsel %vm887_vm4, %v5130_v26, -inf }
 0x32d   : > { %v1385_v55 = vpop.f32.mrf.mxu3 }
 0x32e   : > { %v951_v55 = vsel %vm887_vm4, %v5001_v13, 0.0 }
 0x32f   : > { %v1442_v32 = vpop.f32.mrf.mxu1  ;;  %1483 = vmax.xlane.f32.xlu0 %v1482_v28  ;;  %v4375_v28 = vld [vmem:[%s4844_s27 + $0x28] sm:$0xff] }
 0x335   : > { %v1402_v23 = vpop.f32.mrf.mxu3  ;;  %v1459_v33 = vpop.f32.mrf.mxu2 }
 0x336   : > { %v1491_v35 = vsel %vm887_vm4, %v1402_v23, -inf  ;;  %v1500_v37 = vsel %vm887_vm4, %v1459_v33, -inf }
 0x337   : > { %1498 = vmax.xlane.f32.xlu0 %v1497_v34  ;;  %1492 = vmax.xlane.f32.xlu2 %v1491_v35 }
 0x33d   : > { %v1404_v38 = vpop.f32.mrf.mxu3  ;;  %v1461_v40 = vpop.f32.mrf.mxu2 }
 0x33f   : > { %943 = vadd.xlane.f32.xlu0 %v942_v62  ;;  %1501 = vmax.xlane.f32.xlu2 %v1500_v37 }
 0x345   : > { %v5140_v41 = vpop.f32.mrf.mxu3 }
 0x346   : > { %v1503_v46 = vsel %vm887_vm4, %v5140_v41, -inf }
 0x347   : > { %1495 = vmax.xlane.f32.xlu2 %v1494_v45  ;;  %1504 = vmax.xlane.f32.xlu1 %v1503_v46  ;;  %v954_v46 = vsel %vm887_vm4, %v5035_v25, 0.0 }
 0x34d   : > { %v1480_v54 = vpop.f32.mrf.mxu3 }
 0x34f   : > { %940 = vadd.xlane.f32.xlu2 %v939_v56  ;;  %1486 = vmax.xlane.f32.xlu1 %v1485_v57 }
 0x357   : > { %937 = vadd.xlane.f32.xlu1 %v936_v29 }
 0x35f   : > { %946 = vadd.xlane.f32.xlu1 %v945_v58 }
 0x367   : > { %949 = vadd.xlane.f32.xlu1 %v948_v59 }
 0x39a   : > { %v1490_v61 = vpop.xlane.xlu0 %1489 }
 0x39b   : > { %v1508_v3 = vsub.f32 %v1383_v20, %v1490_v61 }
 0x39d   : > { %v1518_v2 = vmul.f32 1.442695, %v1508_v3  ;;  %v4358_v3 = vld [vmem:[%s5189_s25] sm:$0xff] }
 0x39f   : > { %4519 = vpow2.f32 %v1518_v2 }
 0x3a2   : > { %v1484_v4 = vpop.xlane.xlu0 %1483 }
 0x3a3   : > { %v1506_v5 = vsub.f32 %v5120_v0, %v1484_v4  ;;  %v4372_v0 = vld [vmem:[%s4838_s24 + $0x28] sm:$0xff] }
 0x3a5   : > { %v5157_v47 = vpop.eup %4519  ;;  %v1514_v1 = vmul.f32 1.442695, %v1506_v5 }
 0x3a6   : > { %v1556_v6 = vpack.c.bf16 %v5157_v47, %v5157_v47 }
 0x3a7   : > { %4521 = vpow2.f32 %v1514_v1  ;;  %v1536_v1 = vsel %vm887_vm4, %v5157_v47, 0.0 }
 0x3a8   : > { %4108 = vmatmul.msk.bf16.vlgmr.msra.gmra.mxu2 %vm887_vm4, %v1556_v6 }
 0x3a9   : > { %1864 = vmatpush.bf16.msra.mxu2 %v4372_v0 }
 0x3aa   : > { %v1493_v16 = vpop.xlane.xlu2 %1492  ;;  %v1499_v12 = vpop.xlane.xlu0 %1498 }
 0x3ab   : > { %v1509_v22 = vsub.f32 %v1402_v23, %v1493_v16  ;;  %v1511_v20 = vsub.f32 %v5130_v26, %v1499_v12  ;;  %v4374_v26 = vld [vmem:[%s4844_s27 + $0x20] sm:$0xff] }
 0x3ad   : > { %v4522_v60 = vpop.eup %4521  ;;  %v1520_v8 = vmul.f32 1.442695, %v1509_v22  ;;  %1865 = vmatpush.bf16.msra.mxu2 %v4371_v19  ;;  %v1524_v34 = vmul.f32 1.442695, %v1511_v20  ;;  %v957_v22 = vsel %vm887_vm4, %v5028_v36, 0.0 }
 0x3ae   : > { %v1554_v9 = vpack.c.bf16 %v4522_v60, %v4522_v60  ;;  %v1530_v11 = vsel %vm887_vm4, %v4522_v60, 0.0 }
 0x3af   : > { %1531 = vadd.xlane.f32.xlu2 %v1530_v11  ;;  %4523 = vpow2.f32 %v1520_v8 }
 0x3b0   : > { %4106 = vmatmul.msk.bf16.vlgmr.msra.gmra.mxu0 %vm887_vm4, %v1554_v9 }
 0x3b2   : > { %v1502_v15 = vpop.xlane.xlu2 %1501 }
 0x3b3   : > { %v1512_v14 = vsub.f32 %v1459_v33, %v1502_v15  ;;  %v944_v15 = vpop.xlane.xlu0 %943 }
 0x3b5   : > { %v1526_v21 = vmul.f32 1.442695, %v1512_v14  ;;  %v4524_v24 = vpop.eup %4523 }
 0x3b6   : > { %v1557_v32 = vpack.c.bf16 %v4524_v24, %v4524_v24  ;;  %v1539_v23 = vsel %vm887_vm4, %v4524_v24, 0.0 }
 0x3b7   : > { %4525 = vpow2.f32 %v1526_v21  ;;  %952 = vadd.xlane.f32.xlu2 %v951_v55  ;;  %1540 = vadd.xlane.f32.xlu1 %v1539_v23  ;;  %v4369_v23 = vld [vmem:[%s5189_s25 + $0x8] sm:$0xff] }
 0x3b8   : > { %4109 = vmatmul.msk.bf16.vlgmr.msrb.gmra.mxu3 %vm887_vm4, %v1557_v32  ;;  %4527 = vpow2.f32 %v1524_v34  ;;  %1764 = vmatpush.bf16.msra.mxu0 %v4369_v23 }
 0x3b9   : > { %1917 = vmatpush.bf16.msrb.mxu3 %v4375_v28 }
 0x3ba   : > { %v1496_v33 = vpop.xlane.xlu2 %1495  ;;  %v1505_v35 = vpop.xlane.xlu1 %1504 }
 0x3bb   : > { %v1510_v37 = vsub.f32 %v5126_v18, %v1496_v33  ;;  %v1513_v38 = vsub.f32 %v5140_v41, %v1505_v35 }
 0x3bd   : > { %v4526_v13 = vpop.eup %4525  ;;  %v1522_v40 = vmul.f32 1.442695, %v1510_v37  ;;  %v1528_v62 = vmul.f32 1.442695, %v1513_v38  ;;  %1918 = vmatpush.bf16.msrb.mxu3 %v4374_v26 }
 0x3be   : > { %v1560_v45 = vpack.c.bf16 %v4526_v13, %v4526_v13  ;;  %v4528_v18 = vpop.eup %4527  ;;  %v1548_v47 = vsel %vm887_vm4, %v4526_v13, 0.0 }
 0x3bf   : > { %4529 = vpow2.f32 %v1522_v40  ;;  %955 = vadd.xlane.f32.xlu2 %v954_v46  ;;  %v1545_v59 = vsel %vm887_vm4, %v4528_v18, 0.0  ;;  %v1559_v6 = vpack.c.bf16 %v4528_v18, %v4528_v18 }
 0x3c0   : > { %4531 = vpow2.f32 %v1528_v62  ;;  %4112 = vmatmul.msk.bf16.vlgmr.msrb.gmra.mxu2 %vm887_vm4, %v1560_v45 }
 0x3c2   : > { %v1487_v54 = vpop.xlane.xlu1 %1486  ;;  %v941_v60 = vpop.xlane.xlu2 %940 }
 0x3c3   : > { %v1507_v41 = vsub.f32 %v5124_v10, %v1487_v54 }
 0x3c5   : > { %v4530_v56 = vpop.eup %4529  ;;  %v1516_v57 = vmul.f32 1.442695, %v1507_v41 }
 0x3c6   : > { %v4532_v29 = vpop.eup %4531  ;;  %v1558_v58 = vpack.c.bf16 %v4530_v56, %v4530_v56  ;;  %v1542_v25 = vsel %vm887_vm4, %v4530_v56, 0.0 }
 0x3c7   : > { %v1561_v61 = vpack.c.bf16 %v4532_v29, %v4532_v29  ;;  %4533 = vpow2.f32 %v1516_v57  ;;  %1546 = vadd.xlane.f32.xlu2 %v1545_v59  ;;  %1543 = vadd.xlane.f32.xlu1 %v1542_v25  ;;  %v1551_v4 = vsel %vm887_vm4, %v4532_v29, 0.0 }
 0x3c8   : > { %4110 = vmatmul.msk.bf16.vlgmr.msrb.gmra.mxu0 %vm887_vm4, %v1558_v58 }
 0x3c9   : > { %4113 = vmatmul.msk.bf16.vlgmr.msra.gmra.mxu3 %vm887_vm4, %v1561_v61 }
 0x3ca   : > { %v938_v16 = vpop.xlane.xlu1 %937 }
 0x3cb   : > { %4535 = vrcp.f32 %v938_v16 }
 0x3cc   : > { %4537 = vrcp.f32 %v941_v60 }
 0x3cd   : > { %v4534_v10 = vpop.eup %4533 }
 0x3ce   : > { %v1555_v2 = vpack.c.bf16 %v4534_v10, %v4534_v10  ;;  %v1533_v5 = vsel %vm887_vm4, %v4534_v10, 0.0 }
 0x3cf   : > { %1552 = vadd.xlane.f32.xlu1 %v1551_v4  ;;  %1534 = vadd.xlane.f32.xlu0 %v1533_v5 }
 0x3d0   : > { %4107 = vmatmul.msk.bf16.vlgmr.msra.gmra.mxu1 %vm887_vm4, %v1555_v2  ;;  %4149 = vmatmul.msk.bf16.vlgmr.msra.gmra.mxu2 %vm550_vm1, %v4860_v30 }
 0x3d1   : > { %1811 = vmatpush.bf16.msra.mxu1 %v4358_v3  ;;  %v4536_v8 = vpop.eup %4535 }
 0x3d2   : > { %v4538_v9 = vpop.eup %4537  ;;  %v1129_v11 = vmul.f32 %v4536_v8, %v5056_v44  ;;  %v947_v12 = vpop.xlane.xlu1 %946 }
 0x3d3   : > { %v1130_v36 = vmul.f32 %v4538_v9, %v5054_v43  ;;  %4539 = vrcp.f32 %v947_v12 }
 0x3d4   : > { %4541 = vrcp.f32 %v944_v15 }
 0x3d5   : > { %v1137_v0 = vpack.c.bf16 %v1130_v36, %v1129_v11 }
 0x3d7   : > { %1537 = vadd.xlane.f32.xlu0 %v1536_v1 }
 0x3d9   : > { %4168 = vmatmul.msk.bf16.vlgmr.msrb.gmra.mxu3 %vm550_vm1, %v4860_v30  ;;  %v4540_v14 = vpop.eup %4539 }
 0x3da   : > { %v4542_v19 = vpop.eup %4541  ;;  %v1132_v44 = vmul.f32 %v4540_v14, %v5074_v63  ;;  %v950_v24 = vpop.xlane.xlu1 %949 }
 0x3db   : > { %v1131_v43 = vmul.f32 %v4542_v19, %v5082_v7  ;;  %4543 = vrcp.f32 %v950_v24 }
 0x3dd   : > { %v1138_v20 = vpack.c.bf16 %v1132_v44, %v1131_v43 }
 0x3df   : > { %958 = vadd.xlane.f32.xlu0 %v957_v22 }
 0x3e0   : > { %4111 = vmatmul.msk.bf16.vlgmr.msrb.gmra.mxu1 %vm887_vm4, %v1559_v6  ;;  %4150 = vmatmul.msk.bf16.gmra.mxu2 %vm550_vm1, %v4862_v31  ;;  %v5235_v6 = vld [vmem:[%s4858_s16 + $0x6] ss:$0 sm:$0xff] }
 0x3e1   : > { %v4544_v63 = vpop.eup %4543 }
 0x3e2   : > { %v1133_v34 = vmul.f32 %v4544_v63, %v5062_v49 }
 0x3e7   : > { %1549 = vadd.xlane.f32.xlu0 %v1548_v47 }
 0x3e9   : > { %4169 = vmatmul.msk.bf16.gmra.mxu3 %vm550_vm1, %v4862_v31 }
 0x3f0   : > { %4130 = vmatmul.msk.bf16.vlgmr.msra.gmra.mxu1 %vm734_vm2, %v1137_v0  ;;  %4151 = vmatmul.msk.bf16.gmra.mxu2 %vm550_vm1, %v4885_v42 }
 0x3f9   : > { %4170 = vmatmul.msk.bf16.gmra.mxu3 %vm550_vm1, %v4885_v42 }
 0x400   : > { %4131 = vmatmul.msk.bf16.gmra.mxu1 %vm734_vm2, %v1138_v20  ;;  %4152 = vmatmul.msk.bf16.gmra.mxu2 %vm550_vm1, %v4896_v50 }
 0x409   : > { %4171 = vmatmul.msk.bf16.gmra.mxu3 %vm550_vm1, %v4896_v50 }
 0x422   : > { %v1532_v21 = vpop.xlane.xlu2 %1531 }
 0x42a   : > { %v953_v55 = vpop.xlane.xlu2 %952  ;;  %v1541_v10 = vpop.xlane.xlu1 %1540 }
 0x42b   : > { %4545 = vrcp.f32 %v953_v55  ;;  %v1615_v28 = vpop.f32.mrf.mxu2 }
 0x42c   : > { %4547 = vrcp.f32 %v1532_v21 }
 0x42d   : > { %v1577_v32 = vpop.f32.mrf.mxu0 }
 0x431   : > { %v4546_v7 = vpop.eup %4545 }
 0x432   : > { %v1134_v33 = vmul.f32 %v4546_v7, %v5060_v48  ;;  %v4548_v18 = vpop.eup %4547  ;;  %v956_v29 = vpop.xlane.xlu2 %955 }
 0x433   : > { %v1617_v35 = vpop.f32.mrf.mxu2  ;;  %v1722_v57 = vmul.f32 %v4548_v18, %v1577_v32 }
 0x434   : > { %v1139_v26 = vpack.c.bf16 %v1134_v33, %v1133_v34 }
 0x435   : > { %v1579_v37 = vpop.f32.mrf.mxu0 }
 0x436   : > { %4132 = vmatmul.msk.bf16.gmra.mxu1 %vm734_vm2, %v1139_v26 }
 0x43a   : > { %v1547_v44 = vpop.xlane.xlu2 %1546 }
 0x43b   : > { %v1634_v38 = vpop.f32.mrf.mxu3 }
 0x442   : > { %v1535_v13 = vpop.xlane.xlu0 %1534 }
 0x443   : > { %v5227_v40 = vpop.f32.mrf.mxu2  ;;  %v1636_v62 = vpop.f32.mrf.mxu3  ;;  %4549 = vrcp.f32 %v1535_v13 }
 0x444   : > { %4551 = vrcp.f32 %v956_v29 }
 0x445   : > { %v5229_v45 = vpop.f32.mrf.mxu0 }
 0x449   : > { %v4550_v48 = vpop.eup %4549 }
 0x44a   : > { %v1538_v46 = vpop.xlane.xlu0 %1537  ;;  %v4552_v4 = vpop.eup %4551 }
 0x44b   : > { %v1693_v54 = vpop.f32.mrf.mxu2  ;;  %4553 = vrcp.f32 %v1538_v46  ;;  %v1135_v16 = vmul.f32 %v4552_v4, %v5092_v27  ;;  %v5244_v27 = vld [vmem:[%s4858_s16 + $0x2] ss:$0 sm:$0xff] }
 0x44c   : > { %v5231_v49 = vpop.f32.mrf.mxu3 }
 0x44d   : > { %v1596_v41 = vpop.f32.mrf.mxu1  ;;  %v1655_v56 = vpop.f32.mrf.mxu0 }
 0x44e   : > { %v1723_v58 = vmul.f32 %v4550_v48, %v1596_v41 }
 0x450   : > { %v1730_v59 = vpack.c.bf16 %v1723_v58, %v1722_v57 }
 0x451   : > { %v4554_v5 = vpop.eup %4553 }
 0x452   : > { %4122 = vmatmul.msk.bf16.vlgmr.msra.gmra.mxu0 %vm734_vm2, %v1730_v59  ;;  %v959_v25 = vpop.xlane.xlu0 %958  ;;  %v1724_v60 = vmul.f32 %v4554_v5, %v1615_v28 }
 0x453   : > { %4555 = vrcp.f32 %v959_v25  ;;  %v1867_v61 = vpop.f32.mrf.mxu2 }
 0x454   : > { %v1712_v3 = vpop.f32.mrf.mxu3  ;;  %4557 = vrcp.f32 %v1541_v10  ;;  %v1868_v28 = vadd.f32 %v5244_v27, %v1867_v61 }
 0x455   : > { %v1598_v2 = vpop.f32.mrf.mxu1  ;;  %4559 = vrcp.f32 %v1547_v44 }
 0x456   : > { %v1993_v7 = vpack.c.bf16 %v1868_v28, %v1868_v28 }
 0x459   : > { %v4556_v1 = vpop.eup %4555 }
 0x45a   : > { %v1136_v22 = vmul.f32 %v4556_v1, %v5086_v17  ;;  %v4558_v11 = vpop.eup %4557  ;;  %v1544_v17 = vpop.xlane.xlu1 %1543 }
 0x45b   : > { %v1869_v9 = vpop.f32.mrf.mxu2  ;;  %v1725_v12 = vmul.f32 %v4558_v11, %v1634_v38  ;;  %4561 = vrcp.f32 %v1544_v17  ;;  %v4560_v23 = vpop.eup %4559 }
 0x45c   : > { %v1920_v47 = vpop.f32.mrf.mxu3  ;;  %v1140_v8 = vpack.c.bf16 %v1136_v22, %v1135_v16  ;;  %v1870_v63 = vadd.f32 %v5244_v27, %v1869_v9  ;;  %v1550_v62 = vpop.xlane.xlu0 %1549 }
 0x45d   : > { %v1921_v36 = vadd.f32 %v5235_v6, %v1920_v47  ;;  %v1672_v0 = vpop.f32.mrf.mxu1  ;;  %v1731_v14 = vpack.c.bf16 %v1725_v12, %v1724_v60  ;;  %4563 = vrcp.f32 %v1550_v62 }
 0x45e   : > { %4133 = vmatmul.msk.bf16.gmra.mxu1 %vm734_vm2, %v1140_v8  ;;  %v1727_v34 = vmul.f32 %v4560_v23, %v1672_v0  ;;  %v1994_v38 = vpack.c.bf16 %v1870_v63, %v1870_v63 }
 0x45f   : > { %v2001_v15 = vpack.c.bf16 %v1921_v36, %v1921_v36 }
 0x461   : > { %v2021_v19 = vsel %vm734_vm2, %v2001_v15, 0  ;;  %v4562_v35 = vpop.eup %4561 }
 0x462   : > { %2030 = vmatpush.bf16.xpose.msrb.mxu1 %v2021_v19  ;;  %4123 = vmatmul.msk.bf16.gmra.mxu0 %vm734_vm2, %v1731_v14  ;;  %v1726_v37 = vmul.f32 %v4562_v35, %v5229_v45  ;;  %v1553_v41 = vpop.xlane.xlu1 %1552  ;;  %v4377_v35 = vld [vmem:[%s4868_s26 + $0x20] sm:$0xff] }
 0x463   : > { %v1872_v24 = vpop.f32.mrf.mxu2  ;;  %4565 = vrcp.f32 %v1553_v41  ;;  %v4564_v58 = vpop.eup %4563 }
 0x464   : > { %v1922_v43 = vpop.f32.mrf.mxu3  ;;  %v1732_v46 = vpack.c.bf16 %v1727_v34, %v1726_v37  ;;  %v1873_v18 = vadd.f32 %v5244_v27, %v1872_v24  ;;  %v1728_v10 = vmul.f32 %v4564_v58, %v5227_v40 }
 0x465   : > { %v1923_v20 = vadd.f32 %v5235_v6, %v1922_v43  ;;  %v1674_v21 = vpop.f32.mrf.mxu1 }
 0x466   : > { %v1995_v45 = vpack.c.bf16 %v1873_v18, %v1873_v18 }
 0x467   : > { %v2002_v55 = vpack.c.bf16 %v1923_v20, %v1923_v20 }
 0x469   : > { %v2040_v32 = vsel %vm734_vm2, %v2002_v55, 0  ;;  %v4566_v2 = vpop.eup %4565 }
 0x46a   : > { %2049 = vmatpush.bf16.xpose.msrb.mxu2 %v2040_v32  ;;  %v1729_v5 = vmul.f32 %v4566_v2, %v5231_v49 }
 0x46b   : > { %v1874_v54 = vpop.f32.mrf.mxu2 }
 0x46c   : > { %v1925_v33 = vpop.f32.mrf.mxu3  ;;  %v1875_v61 = vadd.f32 %v5244_v27, %v1874_v54  ;;  %v1733_v22 = vpack.c.bf16 %v1729_v5, %v1728_v10 }
 0x46d   : > { %v1926_v26 = vadd.f32 %v5235_v6, %v1925_v33  ;;  %v4378_v33 = vld [vmem:[%s4868_s26 + $0x28] sm:$0xff] }
 0x46e   : > { %4191 = vmatmul.msk.bf16.vlgmr.msrb.gmra.mxu1 %vm734_vm2, %v1993_v7  ;;  %v1996_v1 = vpack.c.bf16 %v1875_v61, %v1875_v61  ;;  %v5281_v7 = vpop.f32.mrf.mxu1  ;;  %1970 = vmatpush.bf16.msrb.mxu0 %v4378_v33 }
 0x46f   : > { %v2003_v13 = vpack.c.bf16 %v1926_v26, %v1926_v26 }
 0x471   : > { %v2059_v48 = vsel %vm734_vm2, %v2003_v13, 0  ;;  %4192 = vmatmul.msk.bf16.vlgmr.msrb.gmra.mxu2 %vm734_vm2, %v1994_v38 }
 0x472   : > { %2068 = vmatpush.bf16.xpose.msra.mxu3 %v2059_v48  ;;  %4124 = vmatmul.msk.bf16.gmra.mxu0 %vm734_vm2, %v1732_v46 }
 0x473   : > { %v1877_v25 = vpop.f32.mrf.mxu2  ;;  %1971 = vmatpush.bf16.msrb.mxu0 %v4377_v35 }
 0x474   : > { %v1927_v56 = vpop.f32.mrf.mxu3  ;;  %v1878_v60 = vadd.f32 %v5244_v27, %v1877_v25 }
 0x475   : > { %v1928_v57 = vadd.f32 %v5235_v6, %v1927_v56 }
 0x476   : > { %v1997_v9 = vpack.c.bf16 %v1878_v60, %v1878_v60  ;;  %v5283_v34 = vpop.f32.mrf.mxu1 }
 0x477   : > { %v2004_v29 = vpack.c.bf16 %v1928_v57, %v1928_v57 }
 0x479   : > { %4193 = vmatmul.msk.bf16.vlgmr.msra.gmra.mxu3 %vm734_vm2, %v1995_v45  ;;  %v2078_v59 = vsel %vm734_vm2, %v2004_v29, 0 }
 0x47a   : > { %2087 = vmatpush.bf16.xpose.msra.mxu1 %v2078_v59 }
 0x47b   : > { %v1879_v8 = vpop.f32.mrf.mxu2 }
 0x47c   : > { %v1930_v3 = vpop.f32.mrf.mxu3  ;;  %v1880_v0 = vadd.f32 %v5244_v27, %v1879_v8 }
 0x47d   : > { %v1931_v4 = vadd.f32 %v5235_v6, %v1930_v3 }
 0x47e   : > { %v1998_v19 = vpack.c.bf16 %v1880_v0, %v1880_v0 }
 0x47f   : > { %v2005_v16 = vpack.c.bf16 %v1931_v4, %v1931_v4 }
 0x481   : > { %v2097_v47 = vsel %vm734_vm2, %v2005_v16, 0  ;;  %4194 = vmatmul.msk.bf16.vlgmr.msra.gmra.mxu1 %vm734_vm2, %v1996_v1 }
 0x482   : > { %2106 = vmatpush.bf16.xpose.msra.mxu2 %v2097_v47  ;;  %4125 = vmatmul.msk.bf16.gmra.mxu0 %vm734_vm2, %v1733_v22 }
 0x483   : > { %v1882_v14 = vpop.f32.mrf.mxu2 }
 0x484   : > { %v1932_v40 = vpop.f32.mrf.mxu3  ;;  %v1883_v17 = vadd.f32 %v5244_v27, %v1882_v14 }
 0x485   : > { %v1933_v11 = vadd.f32 %v5235_v6, %v1932_v40 }
 0x486   : > { %v1999_v21 = vpack.c.bf16 %v1883_v17, %v1883_v17 }
 0x487   : > { %v2006_v36 = vpack.c.bf16 %v1933_v11, %v1933_v11 }
 0x489   : > { %4195 = vmatmul.msk.bf16.vlgmr.msra.gmra.mxu2 %vm734_vm2, %v1997_v9  ;;  %v2116_v49 = vsel %vm734_vm2, %v2006_v36, 0 }
 0x48a   : > { %2125 = vmatpush.bf16.xpose.msrb.mxu3 %v2116_v49 }
 0x48b   : > { %v1884_v28 = vpop.f32.mrf.mxu2 }
 0x48c   : > { %v1935_v12 = vpop.f32.mrf.mxu3  ;;  %v1885_v23 = vadd.f32 %v5244_v27, %v1884_v28 }
 0x48d   : > { %v1936_v15 = vadd.f32 %v5235_v6, %v1935_v12 }
 0x48e   : > { %v2000_v63 = vpack.c.bf16 %v1885_v23, %v1885_v23 }
 0x48f   : > { %v2007_v44 = vpack.c.bf16 %v1936_v15, %v1936_v15 }
 0x491   : > { %v2135_v43 = vsel %vm734_vm2, %v2007_v44, 0  ;;  %4196 = vmatmul.msk.bf16.vlgmr.msrb.gmra.mxu3 %vm734_vm2, %v1998_v19  ;;  %v4493_v19 = vld [vmem:[%s4858_s16 + $0xa] ss:$0 sm:$0xff] }
 0x492   : > { %2144 = vmatpush.bf16.xpose.msrb.mxu1 %v2135_v43  ;;  %4187 = vmatmul.msk.bf16.vlgmr.msrb.gmra.mxu0 %vm550_vm1, %v4908_v52 }
 0x494   : > { %v1937_v20 = vpop.f32.mrf.mxu3 }
 0x495   : > { %v1938_v24 = vadd.f32 %v5235_v6, %v1937_v20  ;;  %v5287_v6 = vpop.f32.mrf.mxu1 }
 0x497   : > { %v2008_v55 = vpack.c.bf16 %v1938_v24, %v1938_v24 }
 0x499   : > { %4197 = vmatmul.msk.bf16.vlgmr.msrb.gmra.mxu1 %vm734_vm2, %v1999_v21  ;;  %v2154_v32 = vsel %vm734_vm2, %v2008_v55, 0 }
 0x49a   : > { %2163 = vmatpush.bf16.xpose.msrb.mxu2 %v2154_v32 }
 0x49d   : > { %v5291_v26 = vpop.f32.mrf.mxu1 }
 0x4a1   : > { %4198 = vmatmul.msk.bf16.vlgmr.msrb.gmra.mxu2 %vm734_vm2, %v2000_v63 }
 0x4a2   : > { %4188 = vmatmul.msk.bf16.gmra.mxu0 %vm550_vm1, %v4881_v39 }
 0x4b2   : > { %4189 = vmatmul.msk.bf16.gmra.mxu0 %vm550_vm1, %v4902_v51 }
 0x4b3   : > { %v1823_v37 = vpop.f32.mrf.mxu1 }
 0x4bb   : > { %v5297_v38 = vpop.f32.mrf.mxu1 }
 0x4c2   : > { %4190 = vmatmul.msk.bf16.gmra.mxu0 %vm550_vm1, %v4912_v53 }
 0x4cf   : > { %v5295_v27 = vpop.f32.mrf.mxu0 }
 0x4d7   : > { %v5299_v13 = vpop.f32.mrf.mxu0 }
 0x4db   : > { %v1828_v62 = vpop.f32.mrf.mxu1 }
 0x4df   : > { %v5303_v46 = vpop.f32.mrf.mxu0 }
 0x4e3   : > { %v5305_v54 = vpop.f32.mrf.mxu1 }
 0x4e7   : > { %v5307_v18 = vpop.f32.mrf.mxu0 }
 0x4eb   : > { %v5309_v48 = vpop.f32.mrf.mxu1 }
 0x4ec   : > { %v2169_v41 = vsel %vm887_vm4, %v5309_v48, -inf }
 0x4ed   : > { %2170 = vmax.xlane.f32.xlu2 %v2169_v41 }
 0x4ef   : > { %v1776_v56 = vpop.f32.mrf.mxu0 }
 0x4f0   : > { %v5315_v45 = vadd.f32 %v1823_v37, %v1776_v56 }
 0x4f3   : > { %v2034_v57 = vpop.f32.mrf.mxu1 }
 0x4f4   : > { %v5317_v29 = vpop.f32.mrf.mxu2 }
 0x4f5   : > { %v2172_v58 = vsel %vm887_vm4, %v5317_v29, -inf }
 0x4f6   : > { %2173 = vmax.xlane.f32.xlu1 %v2172_v58 }
 0x4f7   : > { %v5321_v59 = vpop.f32.mrf.mxu0 }
 0x4fc   : > { %v2053_v25 = vpop.f32.mrf.mxu2  ;;  %v5323_v61 = vpop.f32.mrf.mxu3 }
 0x4fd   : > { %v2175_v10 = vsel %vm887_vm4, %v5323_v61, -inf }
 0x4fe   : > { %2176 = vmax.xlane.f32.xlu0 %v2175_v10  ;;  %v5327_v3 = vpop.f32.mrf.mxu1 }
 0x4ff   : > { %v1781_v2 = vpop.f32.mrf.mxu0  ;;  %v2178_v4 = vsel %vm887_vm4, %v5327_v3, -inf }
 0x500   : > { %v5331_v5 = vadd.f32 %v1828_v62, %v1781_v2  ;;  %2179 = vmax.xlane.f32.xlu2 %v2178_v4 }
 0x504   : > { %v2072_v1 = vpop.f32.mrf.mxu3 }
 0x506   : > { %v2091_v16 = vpop.f32.mrf.mxu1 }
 0x507   : > { %v5349_v14 = vpop.f32.mrf.mxu0 }
 0x50c   : > { %v5333_v22 = vpop.f32.mrf.mxu2 }
 0x50d   : > { %v2181_v60 = vsel %vm887_vm4, %v5333_v22, -inf }
 0x50e   : > { %2182 = vmax.xlane.f32.xlu2 %v2181_v60 }
 0x50f   : > { %v1973_v44 = vpop.f32.mrf.mxu0 }
 0x510   : > { %v1974_v17 = vadd.f32 %v4493_v19, %v1973_v44 }
 0x512   : > { %v2009_v43 = vpack.c.bf16 %v1974_v17, %v1974_v17 }
 0x514   : > { %v2110_v47 = vpop.f32.mrf.mxu2  ;;  %v5337_v8 = vpop.f32.mrf.mxu3  ;;  %v2253_v20 = vsel %vm971_vm3, %v2009_v43, 0 }
 0x515   : > { %v2184_v40 = vsel %vm887_vm4, %v5337_v8, -inf  ;;  %2262 = vmatpush.bf16.msra.mxu3 %v2253_v20 }
 0x516   : > { %2185 = vmax.xlane.f32.xlu1 %v2184_v40  ;;  %v5341_v9 = vpop.f32.mrf.mxu1 }
 0x517   : > { %v2187_v11 = vsel %vm887_vm4, %v5341_v9, -inf  ;;  %v1975_v21 = vpop.f32.mrf.mxu0 }
 0x518   : > { %2188 = vmax.xlane.f32.xlu0 %v2187_v11  ;;  %v1976_v24 = vadd.f32 %v4493_v19, %v1975_v21 }
 0x51a   : > { %v2010_v55 = vpack.c.bf16 %v1976_v24, %v1976_v24 }
 0x51c   : > { %v2129_v36 = vpop.f32.mrf.mxu3  ;;  %v2272_v28 = vsel %vm971_vm3, %v2010_v55, 0 }
 0x51d   : > { %2281 = vmatpush.bf16.msra.mxu1 %v2272_v28 }
 0x51e   : > { %v2148_v49 = vpop.f32.mrf.mxu1 }
 0x51f   : > { %v1978_v32 = vpop.f32.mrf.mxu0 }
 0x520   : > { %v1979_v23 = vadd.f32 %v4493_v19, %v1978_v32 }
 0x522   : > { %v2011_v63 = vpack.c.bf16 %v1979_v23, %v1979_v23 }
 0x524   : > { %v5345_v0 = vpop.f32.mrf.mxu2  ;;  %v2291_v33 = vsel %vm971_vm3, %v2011_v63, 0 }
 0x525   : > { %v2190_v12 = vsel %vm887_vm4, %v5345_v0, -inf  ;;  %2300 = vmatpush.bf16.msra.mxu2 %v2291_v33 }
 0x526   : > { %2191 = vmax.xlane.f32.xlu0 %v2190_v12 }
 0x527   : > { %v1980_v35 = vpop.f32.mrf.mxu0 }
 0x528   : > { %v1981_v37 = vadd.f32 %v4493_v19, %v1980_v35 }
 0x52a   : > { %v2012_v62 = vpack.c.bf16 %v1981_v37, %v1981_v37 }
 0x52c   : > { %v2167_v15 = vpop.f32.mrf.mxu2  ;;  %v2310_v41 = vsel %vm971_vm3, %v2012_v62, 0 }
 0x52d   : > { %2319 = vmatpush.bf16.msrb.mxu3 %v2310_v41 }
 0x52f   : > { %v1983_v56 = vpop.f32.mrf.mxu0 }
 0x530   : > { %v1984_v57 = vadd.f32 %v4493_v19, %v1983_v56 }
 0x532   : > { %v2013_v2 = vpack.c.bf16 %v1984_v57, %v1984_v57 }
 0x534   : > { %v2329_v16 = vsel %vm971_vm3, %v2013_v2, 0 }
 0x535   : > { %2338 = vmatpush.bf16.msra.mxu0 %v2329_v16 }
 0x537   : > { %v1985_v25 = vpop.f32.mrf.mxu0 }
 0x538   : > { %v1986_v4 = vadd.f32 %v4493_v19, %v1985_v25 }
 0x53a   : > { %v2014_v60 = vpack.c.bf16 %v1986_v4, %v1986_v4  ;;  %v4385_v4 = vld [vmem:[%s4844_s27 + $0x30] sm:$0xff] }
 0x53c   : > { %v2348_v47 = vsel %vm971_vm3, %v2014_v60, 0  ;;  %v4382_v60 = vld [vmem:[%s4838_s24 + $0x30] sm:$0xff] }
 0x53d   : > { %2357 = vmatpush.bf16.msrb.mxu1 %v2348_v47 }
 0x53f   : > { %v1988_v40 = vpop.f32.mrf.mxu0 }
 0x540   : > { %v1989_v44 = vadd.f32 %v4493_v19, %v1988_v40 }
 0x542   : > { %v2015_v17 = vpack.c.bf16 %v1989_v44, %v1989_v44 }
 0x544   : > { %v2367_v21 = vsel %vm971_vm3, %v2015_v17, 0 }
 0x545   : > { %2376 = vmatpush.bf16.msrb.mxu2 %v2367_v21 }
 0x547   : > { %v1990_v43 = vpop.f32.mrf.mxu0 }
 0x548   : > { %v1991_v24 = vadd.f32 %v4493_v19, %v1990_v43 }
 0x54a   : > { %v2016_v28 = vpack.c.bf16 %v1991_v24, %v1991_v24 }
 0x54c   : > { %v2386_v37 = vsel %vm971_vm3, %v2016_v28, 0 }
 0x560   : > { %v2171_v58 = vpop.xlane.xlu2 %2170 }
 0x561   : > { %v2193_v10 = vsub.f32 %v5309_v48, %v2171_v58  ;;  %v4386_v58 = vld [vmem:[%s4844_s27 + $0x38] sm:$0xff] }
 0x563   : > { %v2201_v1 = vmul.f32 1.442695, %v2193_v10 }
 0x565   : > { %4567 = vpow2.f32 %v2201_v1  ;;  %v4383_v1 = vld [vmem:[%s4838_s24 + $0x38] sm:$0xff]  ;;  %s3320_s24 = smul.u32 5, %s4695_s17 }
 0x569   : > { %v2174_v11 = vpop.xlane.xlu1 %2173 }
 0x56a   : > { %v2194_v36 = vsub.f32 %v5317_v29, %v2174_v11 }
 0x56b   : > { %v4568_v49 = vpop.eup %4567 }
 0x56c   : > { %v2241_v12 = vpack.c.bf16 %v4568_v49, %v4568_v49  ;;  %v2203_v15 = vmul.f32 1.442695, %v2194_v36  ;;  %v2217_v48 = vsel %vm887_vm4, %v4568_v49, 0.0 }
 0x56d   : > { %2218 = vadd.xlane.f32.xlu1 %v2217_v48 }
 0x56e   : > { %4569 = vpow2.f32 %v2203_v15  ;;  %4199 = vmatmul.msk.bf16.vlgmr.msra.gmra.mxu3 %vm887_vm4, %v2241_v12 }
 0x56f   : > { %2395 = vmatpush.bf16.msra.mxu3 %v2386_v37 }
 0x571   : > { %v2177_v20 = vpop.xlane.xlu0 %2176 }
 0x572   : > { %v2195_v55 = vsub.f32 %v5323_v61, %v2177_v20 }
 0x573   : > { %v2180_v29 = vpop.xlane.xlu2 %2179 }
 0x574   : > { %v4570_v32 = vpop.eup %4569  ;;  %v2205_v23 = vmul.f32 1.442695, %v2195_v55  ;;  %v2196_v63 = vsub.f32 %v5327_v3, %v2180_v29 }
 0x575   : > { %v2242_v33 = vpack.c.bf16 %v4570_v32, %v4570_v32  ;;  %v2220_v35 = vsel %vm887_vm4, %v4570_v32, 0.0 }
 0x576   : > { %4571 = vpow2.f32 %v2205_v23  ;;  %v2207_v62 = vmul.f32 1.442695, %v2196_v63  ;;  %2221 = vadd.xlane.f32.xlu2 %v2220_v35  ;;  %v4388_v63 = vld [vmem:[%s4868_s26 + $0x30] sm:$0xff] }
 0x577   : > { %4200 = vmatmul.msk.bf16.vlgmr.msra.gmra.mxu1 %vm887_vm4, %v2242_v33 }
 0x578   : > { %4573 = vpow2.f32 %v2207_v62  ;;  %2512 = vmatpush.bf16.msra.mxu1 %v4383_v1 }
 0x57c   : > { %v4572_v61 = vpop.eup %4571  ;;  %2513 = vmatpush.bf16.msra.mxu1 %v4382_v60 }
 0x57d   : > { %v2243_v19 = vpack.c.bf16 %v4572_v61, %v4572_v61  ;;  %v2223_v41 = vsel %vm887_vm4, %v4572_v61, 0.0 }
 0x57e   : > { %v4574_v3 = vpop.eup %4573  ;;  %2224 = vadd.xlane.f32.xlu0 %v2223_v41 }
 0x57f   : > { %v2244_v56 = vpack.c.bf16 %v4574_v3, %v4574_v3  ;;  %4201 = vmatmul.msk.bf16.vlgmr.msra.gmra.mxu2 %vm887_vm4, %v2243_v19  ;;  %v2226_v57 = vsel %vm887_vm4, %v4574_v3, 0.0 }
 0x580   : > { %2227 = vadd.xlane.f32.xlu1 %v2226_v57  ;;  %2565 = vmatpush.bf16.msra.mxu2 %v4386_v58 }
 0x581   : > { %4202 = vmatmul.msk.bf16.vlgmr.msrb.gmra.mxu3 %vm887_vm4, %v2244_v56  ;;  %v2183_v25 = vpop.xlane.xlu2 %2182 }
 0x582   : > { %v2197_v10 = vsub.f32 %v5333_v22, %v2183_v25 }
 0x584   : > { %v2209_v2 = vmul.f32 1.442695, %v2197_v10  ;;  %2566 = vmatpush.bf16.msra.mxu2 %v4385_v4 }
 0x586   : > { %4575 = vpow2.f32 %v2209_v2 }
 0x589   : > { %v2186_v16 = vpop.xlane.xlu1 %2185 }
 0x58a   : > { %v2198_v47 = vsub.f32 %v5337_v8, %v2186_v16 }
 0x58b   : > { %v2189_v40 = vpop.xlane.xlu0 %2188 }
 0x58c   : > { %v4576_v11 = vpop.eup %4575  ;;  %v2211_v36 = vmul.f32 1.442695, %v2198_v47  ;;  %v2199_v49 = vsub.f32 %v5341_v9, %v2189_v40 }
 0x58d   : > { %v2245_v12 = vpack.c.bf16 %v4576_v11, %v4576_v11  ;;  %v2229_v22 = vsel %vm887_vm4, %v4576_v11, 0.0 }
 0x58e   : > { %4577 = vpow2.f32 %v2211_v36  ;;  %v2213_v15 = vmul.f32 1.442695, %v2199_v49  ;;  %2230 = vadd.xlane.f32.xlu2 %v2229_v22 }
 0x58f   : > { %4203 = vmatmul.msk.bf16.vlgmr.msra.gmra.mxu0 %vm887_vm4, %v2245_v12 }
 0x590   : > { %4579 = vpow2.f32 %v2213_v15 }
 0x594   : > { %v4578_v48 = vpop.eup %4577 }
 0x595   : > { %v2246_v44 = vpack.c.bf16 %v4578_v48, %v4578_v48  ;;  %v2232_v17 = vsel %vm887_vm4, %v4578_v48, 0.0 }
 0x596   : > { %v4580_v8 = vpop.eup %4579  ;;  %2233 = vadd.xlane.f32.xlu0 %v2232_v17 }
 0x597   : > { %v2247_v43 = vpack.c.bf16 %v4580_v8, %v4580_v8  ;;  %4204 = vmatmul.msk.bf16.vlgmr.msrb.gmra.mxu1 %vm887_vm4, %v2246_v44  ;;  %v2235_v9 = vsel %vm887_vm4, %v4580_v8, 0.0 }
 0x598   : > { %2236 = vadd.xlane.f32.xlu1 %v2235_v9  ;;  %v5419_v9 = vld [vmem:[%s4858_s16 + $0x7] ss:$0 sm:$0xff] }
 0x599   : > { %4205 = vmatmul.msk.bf16.vlgmr.msrb.gmra.mxu2 %vm887_vm4, %v2247_v43  ;;  %v2192_v20 = vpop.xlane.xlu0 %2191 }
 0x59a   : > { %v2200_v21 = vsub.f32 %v5345_v0, %v2192_v20  ;;  %v4380_v0 = vld [vmem:[%s5189_s25 + $0x10] sm:$0xff] }
 0x59b   : > { %2451 = vmatpush.bf16.msrb.mxu0 %v4380_v0 }
 0x59c   : > { %v2215_v24 = vmul.f32 1.442695, %v2200_v21 }
 0x59e   : > { %4581 = vpow2.f32 %v2215_v24 }
 0x5a4   : > { %v4582_v55 = vpop.eup %4581 }
 0x5a5   : > { %v2248_v29 = vpack.c.bf16 %v4582_v55, %v4582_v55  ;;  %v2238_v28 = vsel %vm887_vm4, %v4582_v55, 0.0 }
 0x5a6   : > { %2239 = vadd.xlane.f32.xlu2 %v2238_v28 }
 0x5a7   : > { %4206 = vmatmul.msk.bf16.vlgmr.msra.gmra.mxu3 %vm887_vm4, %v2248_v29  ;;  %4234 = vmatmul.msk.bf16.vlgmr.msra.gmra.mxu1 %vm550_vm1, %v4860_v30 }
 0x5a9   : > { %4253 = vmatmul.msk.bf16.vlgmr.msra.gmra.mxu2 %vm550_vm1, %v4860_v30  ;;  %v4389_v30 = vld [vmem:[%s4868_s26 + $0x38] sm:$0xff]  ;;  %s5541_s26 = scalar_lea.vmem %s5851_s9, %s3320_s24 }
 0x5aa   : > { %2618 = vmatpush.bf16.msrb.mxu3 %v4389_v30 }
 0x5ae   : > { %2619 = vmatpush.bf16.msrb.mxu3 %v4388_v63 }
 0x5b7   : > { %4235 = vmatmul.msk.bf16.gmra.mxu1 %vm550_vm1, %v4862_v31  ;;  %4272 = vmatmul.msk.bf16.vlgmr.msrb.gmra.mxu3 %vm550_vm1, %v4908_v52 }
 0x5b9   : > { %4254 = vmatmul.msk.bf16.gmra.mxu2 %vm550_vm1, %v4862_v31 }
 0x5c7   : > { %4236 = vmatmul.msk.bf16.gmra.mxu1 %vm550_vm1, %v4885_v42  ;;  %4273 = vmatmul.msk.bf16.gmra.mxu3 %vm550_vm1, %v4881_v39 }
 0x5c9   : > { %4255 = vmatmul.msk.bf16.gmra.mxu2 %vm550_vm1, %v4885_v42 }
 0x5d7   : > { %4237 = vmatmul.msk.bf16.gmra.mxu1 %vm550_vm1, %v4896_v50  ;;  %4274 = vmatmul.msk.bf16.gmra.mxu3 %vm550_vm1, %v4902_v51 }
 0x5d9   : > { %4256 = vmatmul.msk.bf16.gmra.mxu2 %vm550_vm1, %v4896_v50 }
 0x5e0   : > { %v2219_v32 = vpop.xlane.xlu1 %2218 }
 0x5e1   : > { %4583 = vrcp.f32 %v2219_v32 }
 0x5e7   : > { %v4584_v42 = vpop.eup %4583  ;;  %4275 = vmatmul.msk.bf16.gmra.mxu3 %vm550_vm1, %v4912_v53 }
 0x5e9   : > { %v2222_v23 = vpop.xlane.xlu2 %2221 }
 0x5ea   : > { %4585 = vrcp.f32 %v2222_v23 }
 0x5f0   : > { %v4586_v33 = vpop.eup %4585 }
 0x5f1   : > { %v2264_v31 = vpop.f32.mrf.mxu3  ;;  %v2225_v19 = vpop.xlane.xlu0 %2224 }
 0x5f2   : > { %v2409_v37 = vmul.f32 %v4584_v42, %v2264_v31  ;;  %4587 = vrcp.f32 %v2225_v19  ;;  %v4495_v42 = vld [vmem:[%s4858_s16 + $0x3] ss:$0 sm:$0xff] }
 0x5f3   : > { %v2228_v41 = vpop.xlane.xlu1 %2227 }
 0x5f4   : > { %v2283_v35 = vpop.f32.mrf.mxu1  ;;  %4589 = vrcp.f32 %v2228_v41 }
 0x5f5   : > { %v2410_v62 = vmul.f32 %v4586_v33, %v2283_v35 }
 0x5f7   : > { %v2417_v61 = vpack.c.bf16 %v2410_v62, %v2409_v37 }
 0x5f8   : > { %v4588_v57 = vpop.eup %4587 }
 0x5f9   : > { %4215 = vmatmul.msk.bf16.vlgmr.msrb.gmra.mxu0 %vm734_vm2, %v2417_v61  ;;  %v2266_v50 = vpop.f32.mrf.mxu3 }
 0x5fa   : > { %v4590_v52 = vpop.eup %4589 }
 0x5fc   : > { %v2285_v3 = vpop.f32.mrf.mxu1 }
 0x601   : > { %v2231_v4 = vpop.xlane.xlu2 %2230 }
 0x602   : > { %v2302_v56 = vpop.f32.mrf.mxu2  ;;  %4591 = vrcp.f32 %v2231_v4 }
 0x603   : > { %v2411_v25 = vmul.f32 %v4588_v57, %v2302_v56 }
 0x604   : > { %v2321_v58 = vpop.f32.mrf.mxu3 }
 0x605   : > { %v2412_v10 = vmul.f32 %v4590_v52, %v2321_v58 }
 0x607   : > { %v2418_v2 = vpack.c.bf16 %v2412_v10, %v2411_v25 }
 0x608   : > { %v4592_v39 = vpop.eup %4591 }
 0x609   : > { %4216 = vmatmul.msk.bf16.gmra.mxu0 %vm734_vm2, %v2418_v2  ;;  %v2234_v16 = vpop.xlane.xlu0 %2233 }
 0x60a   : > { %v2304_v1 = vpop.f32.mrf.mxu2  ;;  %4593 = vrcp.f32 %v2234_v16 }
 0x60b   : > { %v2237_v44 = vpop.xlane.xlu1 %2236 }
 0x60c   : > { %v2323_v60 = vpop.f32.mrf.mxu3  ;;  %v2340_v47 = vpop.f32.mrf.mxu0  ;;  %4595 = vrcp.f32 %v2237_v44 }
 0x60d   : > { %v2413_v49 = vmul.f32 %v4592_v39, %v2340_v47 }
 0x610   : > { %v4594_v40 = vpop.eup %4593 }
 0x612   : > { %v4596_v43 = vpop.eup %4595 }
 0x614   : > { %v2342_v11 = vpop.f32.mrf.mxu0  ;;  %v2359_v36 = vpop.f32.mrf.mxu1 }
 0x615   : > { %v2414_v12 = vmul.f32 %v4594_v40, %v2359_v36 }
 0x617   : > { %v2419_v22 = vpack.c.bf16 %v2414_v12, %v2413_v49 }
 0x619   : > { %4217 = vmatmul.msk.bf16.gmra.mxu0 %vm734_vm2, %v2419_v22  ;;  %v2240_v17 = vpop.xlane.xlu2 %2239 }
 0x61a   : > { %4597 = vrcp.f32 %v2240_v17 }
 0x61c   : > { %v2361_v15 = vpop.f32.mrf.mxu1  ;;  %v2378_v48 = vpop.f32.mrf.mxu2 }
 0x61d   : > { %v2415_v24 = vmul.f32 %v4596_v43, %v2378_v48 }
 0x620   : > { %v4598_v20 = vpop.eup %4597 }
 0x624   : > { %v2380_v51 = vpop.f32.mrf.mxu2  ;;  %v2515_v8 = vpop.f32.mrf.mxu1 }
 0x625   : > { %v2516_v37 = vadd.f32 %v4495_v42, %v2515_v8 }
 0x627   : > { %v2641_v19 = vpack.c.bf16 %v2516_v37, %v2516_v37  ;;  %v1814_v37 = vadd.f32 %v5281_v7, %v5295_v27  ;;  %v1819_v7 = vadd.f32 %v5287_v6, %v5303_v46 }
 0x62a   : > { %v2397_v21 = vpop.f32.mrf.mxu3 }
 0x62b   : > { %v2416_v55 = vmul.f32 %v4598_v20, %v2397_v21 }
 0x62c   : > { %v2568_v29 = vpop.f32.mrf.mxu2  ;;  %v2517_v28 = vpop.f32.mrf.mxu1 }
 0x62d   : > { %v2420_v0 = vpack.c.bf16 %v2416_v55, %v2415_v24  ;;  %v2569_v30 = vadd.f32 %v5419_v9, %v2568_v29  ;;  %v2518_v61 = vadd.f32 %v4495_v42, %v2517_v28 }
 0x62f   : > { %v2649_v32 = vpack.c.bf16 %v2569_v30, %v2569_v30  ;;  %4218 = vmatmul.msk.bf16.gmra.mxu0 %vm734_vm2, %v2420_v0  ;;  %v2642_v56 = vpack.c.bf16 %v2518_v61, %v2518_v61 }
 0x631   : > { %v2669_v53 = vsel %vm734_vm2, %v2649_v32, 0 }
 0x632   : > { %v2399_v23 = vpop.f32.mrf.mxu3  ;;  %2678 = vmatpush.bf16.xpose.msra.mxu0 %v2669_v53 }
 0x634   : > { %v2570_v63 = vpop.f32.mrf.mxu2  ;;  %v2520_v31 = vpop.f32.mrf.mxu1 }
 0x635   : > { %v2571_v33 = vadd.f32 %v5419_v9, %v2570_v63  ;;  %v2521_v58 = vadd.f32 %v4495_v42, %v2520_v31 }
 0x637   : > { %v2650_v35 = vpack.c.bf16 %v2571_v33, %v2571_v33  ;;  %v2643_v10 = vpack.c.bf16 %v2521_v58, %v2521_v58  ;;  %v4496_v33 = vld [vmem:[%s4858_s16 + $0xb] ss:$0 sm:$0xff]  ;;  %s3430_s16 = scalar_lea.vmem %s5849_s7, %s4357_s13 }
 0x639   : > { %v2688_v62 = vsel %vm734_vm2, %v2650_v35, 0 }
 0x63a   : > { %2697 = vmatpush.bf16.xpose.msrb.mxu1 %v2688_v62  ;;  %v2621_v35 = vpop.f32.mrf.mxu3 }
 0x63b   : > { %v2622_v62 = vadd.f32 %v4496_v33, %v2621_v35 }
 0x63c   : > { %v2573_v50 = vpop.f32.mrf.mxu2  ;;  %v2522_v3 = vpop.f32.mrf.mxu1 }
 0x63d   : > { %v2574_v41 = vadd.f32 %v5419_v9, %v2573_v50  ;;  %v2523_v60 = vadd.f32 %v4495_v42, %v2522_v3 }
 0x63f   : > { %v2651_v57 = vpack.c.bf16 %v2574_v41, %v2574_v41  ;;  %4276 = vmatmul.msk.bf16.vlgmr.msra.gmra.mxu0 %vm734_vm2, %v2641_v19  ;;  %v2644_v39 = vpack.c.bf16 %v2523_v60, %v2523_v60 }
 0x641   : > { %v2707_v52 = vsel %vm734_vm2, %v2651_v57, 0  ;;  %4277 = vmatmul.msk.bf16.vlgmr.msrb.gmra.mxu1 %vm734_vm2, %v2642_v56 }
 0x642   : > { %2716 = vmatpush.bf16.xpose.msrb.mxu2 %v2707_v52  ;;  %v2623_v41 = vpop.f32.mrf.mxu3 }
 0x643   : > { %v2624_v3 = vadd.f32 %v4496_v33, %v2623_v41 }
 0x644   : > { %v2575_v25 = vpop.f32.mrf.mxu2  ;;  %v2525_v1 = vpop.f32.mrf.mxu1 }
 0x645   : > { %v2576_v2 = vadd.f32 %v5419_v9, %v2575_v25  ;;  %v2526_v49 = vadd.f32 %v4495_v42, %v2525_v1  ;;  %v2658_v56 = vpack.c.bf16 %v2624_v3, %v2624_v3 }
 0x647   : > { %v2652_v4 = vpack.c.bf16 %v2576_v2, %v2576_v2  ;;  %v2645_v15 = vpack.c.bf16 %v2526_v49, %v2526_v49  ;;  %v2920_v57 = vsel %vm971_vm3, %v2658_v56, 0 }
 0x649   : > { %v2726_v16 = vsel %vm734_vm2, %v2652_v4, 0  ;;  %4278 = vmatmul.msk.bf16.vlgmr.msrb.gmra.mxu2 %vm734_vm2, %v2643_v10 }
 0x64a   : > { %2735 = vmatpush.bf16.xpose.msra.mxu3 %v2726_v16  ;;  %v2626_v52 = vpop.f32.mrf.mxu3 }
 0x64b   : > { %v2627_v27 = vadd.f32 %v4496_v33, %v2626_v52 }
 0x64c   : > { %v2578_v47 = vpop.f32.mrf.mxu2  ;;  %v2527_v12 = vpop.f32.mrf.mxu1 }
 0x64d   : > { %v2579_v40 = vadd.f32 %v5419_v9, %v2578_v47  ;;  %v2528_v51 = vadd.f32 %v4495_v42, %v2527_v12  ;;  %v2659_v10 = vpack.c.bf16 %v2627_v27, %v2627_v27 }
 0x64f   : > { %v2653_v11 = vpack.c.bf16 %v2579_v40, %v2579_v40  ;;  %v2646_v20 = vpack.c.bf16 %v2528_v51, %v2528_v51  ;;  %v2939_v2 = vsel %vm971_vm3, %v2659_v10, 0 }
 0x651   : > { %v2745_v36 = vsel %vm734_vm2, %v2653_v11, 0  ;;  %4279 = vmatmul.msk.bf16.vlgmr.msra.gmra.mxu3 %vm734_vm2, %v2644_v39 }
 0x652   : > { %2754 = vmatpush.bf16.xpose.msrb.mxu0 %v2745_v36  ;;  %v2628_v4 = vpop.f32.mrf.mxu3 }
 0x653   : > { %v2629_v1 = vadd.f32 %v4496_v33, %v2628_v4 }
 0x654   : > { %v2580_v22 = vpop.f32.mrf.mxu2  ;;  %v2530_v43 = vpop.f32.mrf.mxu1 }
 0x655   : > { %v2581_v48 = vadd.f32 %v5419_v9, %v2580_v22  ;;  %v2531_v29 = vadd.f32 %v4495_v42, %v2530_v43  ;;  %v2660_v60 = vpack.c.bf16 %v2629_v1, %v2629_v1 }
 0x657   : > { %v2654_v44 = vpack.c.bf16 %v2581_v48, %v2581_v48  ;;  %v2647_v0 = vpack.c.bf16 %v2531_v29, %v2531_v29  ;;  %v2958_v47 = vsel %vm971_vm3, %v2660_v60, 0 }
 0x659   : > { %v2764_v17 = vsel %vm734_vm2, %v2654_v44, 0  ;;  %4280 = vmatmul.msk.bf16.vlgmr.msrb.gmra.mxu0 %vm734_vm2, %v2645_v15 }
 0x65a   : > { %2773 = vmatpush.bf16.xpose.msra.mxu1 %v2764_v17  ;;  %v2631_v39 = vpop.f32.mrf.mxu3 }
 0x65b   : > { %v2632_v40 = vadd.f32 %v4496_v33, %v2631_v39 }
 0x65c   : > { %v2583_v8 = vpop.f32.mrf.mxu2  ;;  %v2532_v32 = vpop.f32.mrf.mxu1 }
 0x65d   : > { %v2584_v21 = vadd.f32 %v5419_v9, %v2583_v8  ;;  %v2533_v63 = vadd.f32 %v4495_v42, %v2532_v32  ;;  %v2661_v46 = vpack.c.bf16 %v2632_v40, %v2632_v40 }
 0x65f   : > { %v2655_v24 = vpack.c.bf16 %v2584_v21, %v2584_v21  ;;  %v2648_v31 = vpack.c.bf16 %v2533_v63, %v2533_v63  ;;  %v2977_v36 = vsel %vm971_vm3, %v2661_v46, 0 }
 0x661   : > { %v2783_v55 = vsel %vm734_vm2, %v2655_v24, 0  ;;  %4281 = vmatmul.msk.bf16.vlgmr.msra.gmra.mxu1 %vm734_vm2, %v2646_v20 }
 0x662   : > { %2792 = vmatpush.bf16.xpose.msra.mxu2 %v2783_v55  ;;  %2929 = vmatpush.bf16.msrb.mxu1 %v2920_v57  ;;  %v2633_v49 = vpop.f32.mrf.mxu3 }
 0x663   : > { %v2634_v12 = vadd.f32 %v4496_v33, %v2633_v49 }
 0x664   : > { %v2585_v28 = vpop.f32.mrf.mxu2 }
 0x665   : > { %v2586_v30 = vadd.f32 %v5419_v9, %v2585_v28  ;;  %v2657_v9 = vpack.c.bf16 %v2622_v62, %v2622_v62  ;;  %v2662_v22 = vpack.c.bf16 %v2634_v12, %v2634_v12 }
 0x667   : > { %v2656_v53 = vpack.c.bf16 %v2586_v30, %v2586_v30  ;;  %v2901_v19 = vsel %vm971_vm3, %v2657_v9, 0  ;;  %v2996_v15 = vsel %vm971_vm3, %v2662_v22, 0 }
 0x668   : > { %2910 = vmatpush.bf16.msra.mxu0 %v2901_v19  ;;  %3005 = vmatpush.bf16.msra.mxu1 %v2996_v15 }
 0x669   : > { %v2802_v23 = vsel %vm734_vm2, %v2656_v53, 0  ;;  %4282 = vmatmul.msk.bf16.vlgmr.msra.gmra.mxu2 %vm734_vm2, %v2647_v0 }
 0x66a   : > { %2811 = vmatpush.bf16.xpose.msrb.mxu3 %v2802_v23  ;;  %2948 = vmatpush.bf16.msrb.mxu2 %v2939_v2  ;;  %v2636_v44 = vpop.f32.mrf.mxu3 }
 0x66b   : > { %v2637_v17 = vadd.f32 %v4496_v33, %v2636_v44 }
 0x66c   : > { %2986 = vmatpush.bf16.msrb.mxu0 %v2977_v36 }
 0x66d   : > { %v2663_v51 = vpack.c.bf16 %v2637_v17, %v2637_v17 }
 0x66f   : > { %v3015_v8 = vsel %vm971_vm3, %v2663_v51, 0 }
 0x670   : > { %3024 = vmatpush.bf16.msra.mxu2 %v3015_v8 }
 0x671   : > { %4283 = vmatmul.msk.bf16.vlgmr.msrb.gmra.mxu3 %vm734_vm2, %v2648_v31 }
 0x672   : > { %2967 = vmatpush.bf16.msra.mxu3 %v2958_v47  ;;  %v2638_v43 = vpop.f32.mrf.mxu3 }
 0x673   : > { %v2639_v21 = vadd.f32 %v4496_v33, %v2638_v43 }
 0x675   : > { %v2664_v24 = vpack.c.bf16 %v2639_v21, %v2639_v21 }
 0x676   : > { %v2453_v61 = vpop.f32.mrf.mxu0 }
 0x677   : > { %v5450_v50 = vadd.f32 %v2453_v61, %v1814_v37  ;;  %v3034_v55 = vsel %vm971_vm3, %v2664_v24, 0 }
 0x678   : > { %3043 = vmatpush.bf16.msrb.mxu3 %v3034_v55 }
 0x67e   : > { %v5453_v42 = vpop.f32.mrf.mxu0 }
 0x686   : > { %v2458_v58 = vpop.f32.mrf.mxu0 }
 0x687   : > { %v5458_v25 = vadd.f32 %v2458_v58, %v1819_v7 }
 0x68e   : > { %v5461_v16 = vpop.f32.mrf.mxu0 }
 0x696   : > { %v2463_v11 = vpop.f32.mrf.mxu0 }
 0x697   : > { %v5465_v6 = vadd.f32 %v2463_v11, %v5315_v45 }
 0x69e   : > { %v5469_v48 = vpop.f32.mrf.mxu0 }
 0x6ac   : > { %v2468_v45 = vpop.f32.mrf.mxu0 }
 0x6ad   : > { %v5473_v20 = vadd.f32 %v2468_v45, %v5331_v5 }
 0x6b4   : > { %v5476_v29 = vpop.f32.mrf.mxu0 }
 0x6bc   : > { %v2680_v28 = vpop.f32.mrf.mxu0 }
 0x6bd   : > { %v2817_v0 = vsel %vm887_vm4, %v2680_v28, -inf }
 0x6be   : > { %v2699_v30 = vpop.f32.mrf.mxu1  ;;  %2818 = vmax.xlane.f32.xlu0 %v2817_v0 }
 0x6bf   : > { %v2820_v32 = vsel %vm887_vm4, %v2699_v30, -inf }
 0x6c0   : > { %2821 = vmax.xlane.f32.xlu1 %v2820_v32 }
 0x6c4   : > { %v2682_v53 = vpop.f32.mrf.mxu0 }
 0x6c6   : > { %v2701_v23 = vpop.f32.mrf.mxu1 }
 0x6cc   : > { %v2718_v63 = vpop.f32.mrf.mxu2 }
 0x6cd   : > { %v2823_v5 = vsel %vm887_vm4, %v2718_v63, -inf }
 0x6ce   : > { %2824 = vmax.xlane.f32.xlu2 %v2823_v5 }
 0x6d4   : > { %v2737_v31 = vpop.f32.mrf.mxu3  ;;  %v2720_v33 = vpop.f32.mrf.mxu2 }
 0x6d5   : > { %v2826_v35 = vsel %vm887_vm4, %v2737_v31, -inf }
 0x6d6   : > { %2827 = vmax.xlane.f32.xlu0 %v2826_v35  ;;  %v2756_v37 = vpop.f32.mrf.mxu0 }
 0x6d7   : > { %v2829_v62 = vsel %vm887_vm4, %v2756_v37, -inf }
 0x6d8   : > { %2830 = vmax.xlane.f32.xlu1 %v2829_v62 }
 0x6dc   : > { %v2739_v61 = vpop.f32.mrf.mxu3 }
 0x6de   : > { %v2775_v9 = vpop.f32.mrf.mxu1  ;;  %v2758_v19 = vpop.f32.mrf.mxu0 }
 0x6df   : > { %v2832_v41 = vsel %vm887_vm4, %v2775_v9, -inf }
 0x6e0   : > { %2833 = vmax.xlane.f32.xlu2 %v2832_v41 }
 0x6e6   : > { %v2777_v3 = vpop.f32.mrf.mxu1 }
 0x6ec   : > { %v5484_v56 = vpop.f32.mrf.mxu2 }
 0x6ed   : > { %v2835_v57 = vsel %vm887_vm4, %v5484_v56, -inf }
 0x6ee   : > { %2836 = vmax.xlane.f32.xlu0 %v2835_v57 }
 0x6f4   : > { %v5488_v52 = vpop.f32.mrf.mxu3  ;;  %v2796_v7 = vpop.f32.mrf.mxu2 }
 0x6f5   : > { %v2838_v27 = vsel %vm887_vm4, %v5488_v52, -inf }
 0x6f6   : > { %2839 = vmax.xlane.f32.xlu1 %v2838_v27 }
 0x6fc   : > { %v2815_v58 = vpop.f32.mrf.mxu3 }
 0x731   : > { %v2819_v10 = vpop.xlane.xlu0 %2818 }
 0x732   : > { %v2841_v2 = vsub.f32 %v2680_v28, %v2819_v10 }
 0x733   : > { %v2822_v4 = vpop.xlane.xlu1 %2821 }
 0x734   : > { %v2849_v1 = vmul.f32 1.442695, %v2841_v2  ;;  %v2842_v60 = vsub.f32 %v2699_v30, %v2822_v4 }
 0x736   : > { %4599 = vpow2.f32 %v2849_v1  ;;  %v2851_v47 = vmul.f32 1.442695, %v2842_v60 }
 0x738   : > { %4601 = vpow2.f32 %v2851_v47 }
 0x73c   : > { %v4600_v39 = vpop.eup %4599 }
 0x73d   : > { %v2889_v40 = vpack.c.bf16 %v4600_v39, %v4600_v39  ;;  %v2865_v11 = vsel %vm887_vm4, %v4600_v39, 0.0 }
 0x73e   : > { %v4602_v46 = vpop.eup %4601  ;;  %2866 = vadd.xlane.f32.xlu2 %v2865_v11 }
 0x73f   : > { %v2890_v36 = vpack.c.bf16 %v4602_v46, %v4602_v46  ;;  %4284 = vmatmul.msk.bf16.vlgmr.msra.gmra.mxu0 %vm887_vm4, %v2889_v40  ;;  %v2868_v49 = vsel %vm887_vm4, %v4602_v46, 0.0 }
 0x740   : > { %2869 = vadd.xlane.f32.xlu0 %v2868_v49 }
 0x741   : > { %v2825_v12 = vpop.xlane.xlu2 %2824  ;;  %4285 = vmatmul.msk.bf16.vlgmr.msrb.gmra.mxu1 %vm887_vm4, %v2890_v36 }
 0x742   : > { %v2843_v22 = vsub.f32 %v2718_v63, %v2825_v12 }
 0x744   : > { %v2853_v15 = vmul.f32 1.442695, %v2843_v22 }
 0x746   : > { %4603 = vpow2.f32 %v2853_v15 }
 0x749   : > { %v2828_v44 = vpop.xlane.xlu0 %2827 }
 0x74a   : > { %v2844_v17 = vsub.f32 %v2737_v31, %v2828_v44 }
 0x74b   : > { %v2831_v51 = vpop.xlane.xlu1 %2830 }
 0x74c   : > { %v4604_v8 = vpop.eup %4603  ;;  %v2855_v45 = vmul.f32 1.442695, %v2844_v17  ;;  %v2845_v43 = vsub.f32 %v2756_v37, %v2831_v51 }
 0x74d   : > { %v2891_v21 = vpack.c.bf16 %v4604_v8, %v4604_v8  ;;  %v2871_v24 = vsel %vm887_vm4, %v4604_v8, 0.0 }
 0x74e   : > { %4605 = vpow2.f32 %v2855_v45  ;;  %v2857_v55 = vmul.f32 1.442695, %v2845_v43  ;;  %2872 = vadd.xlane.f32.xlu1 %v2871_v24 }
 0x74f   : > { %4286 = vmatmul.msk.bf16.vlgmr.msrb.gmra.mxu2 %vm887_vm4, %v2891_v21 }
 0x750   : > { %4607 = vpow2.f32 %v2857_v55 }
 0x753   : > { %v2834_v28 = vpop.xlane.xlu2 %2833 }
 0x754   : > { %v4606_v0 = vpop.eup %4605  ;;  %v2846_v30 = vsub.f32 %v2775_v9, %v2834_v28 }
 0x755   : > { %v2892_v32 = vpack.c.bf16 %v4606_v0, %v4606_v0  ;;  %v2874_v53 = vsel %vm887_vm4, %v4606_v0, 0.0 }
 0x756   : > { %v4608_v23 = vpop.eup %4607  ;;  %v2859_v63 = vmul.f32 1.442695, %v2846_v30  ;;  %2875 = vadd.xlane.f32.xlu2 %v2874_v53 }
 0x757   : > { %v2893_v5 = vpack.c.bf16 %v4608_v23, %v4608_v23  ;;  %4287 = vmatmul.msk.bf16.vlgmr.msra.gmra.mxu3 %vm887_vm4, %v2892_v32  ;;  %v2877_v31 = vsel %vm887_vm4, %v4608_v23, 0.0 }
 0x758   : > { %4609 = vpow2.f32 %v2859_v63  ;;  %2878 = vadd.xlane.f32.xlu0 %v2877_v31 }
 0x759   : > { %4288 = vmatmul.msk.bf16.vlgmr.msrb.gmra.mxu0 %vm887_vm4, %v2893_v5 }
 0x75e   : > { %v4610_v33 = vpop.eup %4609 }
 0x75f   : > { %v2894_v35 = vpack.c.bf16 %v4610_v33, %v4610_v33  ;;  %v2880_v37 = vsel %vm887_vm4, %v4610_v33, 0.0 }
 0x760   : > { %2881 = vadd.xlane.f32.xlu1 %v2880_v37 }
 0x761   : > { %4289 = vmatmul.msk.bf16.vlgmr.msra.gmra.mxu1 %vm887_vm4, %v2894_v35  ;;  %v2837_v62 = vpop.xlane.xlu0 %2836 }
 0x762   : > { %v2847_v61 = vsub.f32 %v5484_v56, %v2837_v62  ;;  %v4391_v56 = vld [vmem:[%s5189_s25 + $0x18] sm:$0xff]  ;;  %s3359_s25 = scalar_lea.vmem %s5852_s10, %s4695_s17 }
 0x763   : > { %3099 = vmatpush.bf16.msra.mxu0 %v4391_v56 }
 0x764   : > { %v2861_v9 = vmul.f32 1.442695, %v2847_v61 }
 0x766   : > { %4611 = vpow2.f32 %v2861_v9 }
 0x769   : > { %v2840_v19 = vpop.xlane.xlu1 %2839 }
 0x76a   : > { %v2848_v41 = vsub.f32 %v5488_v52, %v2840_v19 }
 0x76c   : > { %v4612_v3 = vpop.eup %4611  ;;  %v2863_v57 = vmul.f32 1.442695, %v2848_v41 }
 0x76d   : > { %v2895_v7 = vpack.c.bf16 %v4612_v3, %v4612_v3  ;;  %v2883_v27 = vsel %vm887_vm4, %v4612_v3, 0.0 }
 0x76e   : > { %4613 = vpow2.f32 %v2863_v57  ;;  %2884 = vadd.xlane.f32.xlu2 %v2883_v27 }
 0x76f   : > { %4290 = vmatmul.msk.bf16.vlgmr.msra.gmra.mxu2 %vm887_vm4, %v2895_v7 }
 0x774   : > { %v4614_v58 = vpop.eup %4613 }
 0x775   : > { %v2896_v10 = vpack.c.bf16 %v4614_v58, %v4614_v58  ;;  %v2886_v2 = vsel %vm887_vm4, %v4614_v58, 0.0 }
 0x776   : > { %2887 = vadd.xlane.f32.xlu0 %v2886_v2  ;;  %v4665_v2 = vld [vmem:[#allocation2] sm:$0xff] }
 0x777   : > { %4291 = vmatmul.msk.bf16.vlgmr.msrb.gmra.mxu3 %vm887_vm4, %v2896_v10 }
 0x7b1   : > { %v2867_v4 = vpop.xlane.xlu2 %2866 }
 0x7b2   : > { %4615 = vrcp.f32 %v2867_v4  ;;  %v1816_v4 = vadd.f32 %v5283_v34, %v5299_v13  ;;  %v1821_v34 = vadd.f32 %v5291_v26, %v5307_v18  ;;  %v1826_v26 = vadd.f32 %v5297_v38, %v5321_v59 }
 0x7b3   : > { %v2870_v52 = vpop.xlane.xlu0 %2869  ;;  %v4713_v59 = vmov 32.0  }
 0x7b4   : > { %4617 = vrcp.f32 %v2870_v52 }
 0x7b8   : > { %v4616_v60 = vpop.eup %4615 }
 0x7ba   : > { %v4618_v47 = vpop.eup %4617 }
 0x7bc   : > { %v2912_v1 = vpop.f32.mrf.mxu0 }
 0x7bd   : > { %v3057_v40 = vmul.f32 %v4616_v60, %v2912_v1  ;;  %v2474_v1 = vadd.f32 %v5453_v42, %v1816_v4  ;;  %v2476_v42 = vadd.f32 %v5461_v16, %v1821_v34  ;;  %v2478_v16 = vadd.f32 %v5469_v48, %v1826_v26 }
 0x7be   : > { %v2931_v39 = vpop.f32.mrf.mxu1 }
 0x7bf   : > { %v3058_v11 = vmul.f32 %v4618_v47, %v2931_v39  ;;  %v4666_v39 = vld [vmem:[#allocation2 + $0x8] sm:$0xff] }
 0x7c1   : > { %v3065_v46 = vpack.c.bf16 %v3058_v11, %v3057_v40  ;;  %v2873_v12 = vpop.xlane.xlu1 %2872 }
 0x7c2   : > { %4619 = vrcp.f32 %v2873_v12 }
 0x7c3   : > { %4300 = vmatmul.msk.bf16.vlgmr.msra.gmra.mxu0 %vm734_vm2, %v3065_v46 }
 0x7c4   : > { %v2914_v36 = vpop.f32.mrf.mxu0 }
 0x7c5   : > { %v4667_v36 = vld [vmem:[#allocation2 + $0x10] sm:$0xff] }
 0x7c6   : > { %v2933_v49 = vpop.f32.mrf.mxu1 }
 0x7c8   : > { %v4620_v17 = vpop.eup %4619 }
 0x7c9   : > { %v2876_v22 = vpop.xlane.xlu2 %2875 }
 0x7ca   : > { %4621 = vrcp.f32 %v2876_v22 }
 0x7cb   : > { %v2879_v30 = vpop.xlane.xlu0 %2878 }
 0x7d0   : > { %v4622_v51 = vpop.eup %4621 }
 0x7d2   : > { %v2950_v15 = vpop.f32.mrf.mxu2 }
 0x7d3   : > { %v3059_v43 = vmul.f32 %v4620_v17, %v2950_v15  ;;  %v2882_v0 = vpop.xlane.xlu1 %2881  ;;  %v4668_v15 = vld [vmem:[#allocation2 + $0x18] sm:$0xff] }
 0x7d4   : > { %4623 = vrcp.f32 %v2882_v0 }
 0x7d5   : > { %4625 = vrcp.f32 %v2879_v30  ;;  %v4671_v30 = vld [vmem:[#allocation2 + $0x30] sm:$0xff] }
 0x7d6   : > { %v2988_v44 = vpop.f32.mrf.mxu0 }
 0x7da   : > { %v2952_v8 = vpop.f32.mrf.mxu2  ;;  %v2969_v45 = vpop.f32.mrf.mxu3 }
 0x7db   : > { %v3060_v21 = vmul.f32 %v4622_v51, %v2969_v45  ;;  %v4624_v23 = vpop.eup %4623  ;;  %v4669_v8 = vld [vmem:[#allocation2 + $0x20] sm:$0xff] }
 0x7dc   : > { %v4626_v5 = vpop.eup %4625 }
 0x7dd   : > { %v3066_v24 = vpack.c.bf16 %v3060_v21, %v3059_v43  ;;  %v3061_v31 = vmul.f32 %v4626_v5, %v2988_v44 }
 0x7de   : > { %v2990_v55 = vpop.f32.mrf.mxu0  ;;  %v3007_v28 = vpop.f32.mrf.mxu1 }
 0x7df   : > { %4301 = vmatmul.msk.bf16.gmra.mxu0 %vm734_vm2, %v3066_v24  ;;  %v3062_v63 = vmul.f32 %v4624_v23, %v3007_v28  ;;  %v4670_v24 = vld [vmem:[#allocation2 + $0x28] sm:$0xff] }
 0x7e1   : > { %v3067_v33 = vpack.c.bf16 %v3062_v63, %v3061_v31  ;;  %v2885_v35 = vpop.xlane.xlu2 %2884 }
 0x7e2   : > { %v2971_v32 = vpop.f32.mrf.mxu3  ;;  %4627 = vrcp.f32 %v2885_v35  ;;  %v1831_v35 = vadd.f32 %v5305_v54, %v5349_v14 }
 0x7e6   : > { %v3009_v53 = vpop.f32.mrf.mxu1 }
 0x7e8   : > { %v4628_v61 = vpop.eup %4627 }
 0x7e9   : > { %v2888_v37 = vpop.xlane.xlu0 %2887 }
 0x7ea   : > { %4629 = vrcp.f32 %v2888_v37 }
 0x7eb   : > { %4631 = vrcp.f32 %v4713_v59 }
 0x7ef   : > { %4302 = vmatmul.msk.bf16.gmra.mxu0 %vm734_vm2, %v3067_v33 }
 0x7f0   : > { %v4630_v9 = vpop.eup %4629 }
 0x7f1   : > { %v4632_v48 = vpop.eup %4631 }
 0x7f2   : > { %v3026_v62 = vpop.f32.mrf.mxu2  ;;  %v3162_v53 = vmul.f32 32.0, %v4632_v48  ;;  %vm3166_vm5 = vweird.f32 %v4632_v48 }
 0x7f3   : > { %v3063_v3 = vmul.f32 %v4628_v61, %v3026_v62  ;;  %v2480_v61 = vadd.f32 %v5476_v29, %v1831_v35 }
 0x7f4   : > { %v3163_v23 = vsub.f32 1.0, %v3162_v53 }
 0x7f6   : > { %v3164_v63 = vmul.f32 %v4632_v48, %v3163_v23 }
 0x7f8   : > { %v3165_v5 = vadd.f32 %v4632_v48, %v3164_v63 }
 0x7fa   : > { %v3028_v19 = vpop.f32.mrf.mxu2  ;;  %v3045_v41 = vpop.f32.mrf.mxu3 }
 0x7fb   : > { %v3064_v57 = vmul.f32 %v4630_v9, %v3045_v41 }
 0x7fd   : > { %v3068_v7 = vpack.c.bf16 %v3064_v57, %v3063_v3 }
 0x7ff   : > { %4303 = vmatmul.msk.bf16.gmra.mxu0 %vm734_vm2, %v3068_v7 }
 0x802   : > { %v3047_v27 = vpop.f32.mrf.mxu3 }
 0x803   : > { %v4672_v27 = vld [vmem:[#allocation2 + $0x38] sm:$0xff] }
 0x840   : > { %v3101_v58 = vpop.f32.mrf.mxu0 }
 0x841   : > { %v3121_v10 = vadd.f32 %v3101_v58, %v5450_v50 }
 0x843   : > { %v3129_v56 = vadd.f32 %v4665_v2, %v3121_v10 }
 0x845   : > { %v3137_v52 = vsel %vm550_vm1, %v3129_v56, 0.0 }
 0x846   : > { %3138 = vadd.xlane.f32.xlu1 %v3137_v52 }
 0x848   : > { %v3103_v60 = vpop.f32.mrf.mxu0 }
 0x849   : > { %v3122_v47 = vadd.f32 %v3103_v60, %v2474_v1 }
 0x84b   : > { %v3130_v40 = vadd.f32 %v4666_v39, %v3122_v47 }
 0x84d   : > { %v3140_v11 = vsel %vm550_vm1, %v3130_v40, 0.0 }
 0x84e   : > { %3141 = vadd.xlane.f32.xlu2 %v3140_v11 }
 0x85c   : > { %v3106_v46 = vpop.f32.mrf.mxu0 }
 0x85d   : > { %v3123_v50 = vadd.f32 %v3106_v46, %v5458_v25 }
 0x85f   : > { %v5522_v49 = vadd.f32 %v4667_v36, %v3123_v50 }
 0x861   : > { %v3143_v13 = vsel %vm550_vm1, %v5522_v49, 0.0 }
 0x862   : > { %3144 = vadd.xlane.f32.xlu0 %v3143_v13 }
 0x864   : > { %v3108_v12 = vpop.f32.mrf.mxu0 }
 0x865   : > { %v3124_v22 = vadd.f32 %v3108_v12, %v2476_v42 }
 0x867   : > { %v3132_v44 = vadd.f32 %v4668_v15, %v3124_v22 }
 0x869   : > { %v3146_v17 = vsel %vm550_vm1, %v3132_v44, 0.0 }
 0x86a   : > { %3147 = vadd.xlane.f32.xlu1 %v3146_v17 }
 0x86c   : > { %v3111_v25 = vpop.f32.mrf.mxu0 }
 0x86d   : > { %v3125_v51 = vadd.f32 %v3111_v25, %v5465_v6 }
 0x86f   : > { %v3133_v45 = vadd.f32 %v4669_v8, %v3125_v51  ;;  %v4394_v8 = vld [vmem:[%s3354_s29 + $0x8] sm:$0xff] }
 0x870   : > { %3394 = vmatpush.bf16.msrb.mxu1 %v4394_v8 }
 0x871   : > { %v3149_v18 = vsel %vm550_vm1, %v3133_v45, 0.0 }
 0x872   : > { %3150 = vadd.xlane.f32.xlu2 %v3149_v18  ;;  %v4393_v18 = vld [vmem:[%s3354_s29] sm:$0xff] }
 0x874   : > { %v3113_v43 = vpop.f32.mrf.mxu0  ;;  %3395 = vmatpush.bf16.msrb.mxu1 %v4393_v18 }
 0x875   : > { %v3126_v21 = vadd.f32 %v3113_v43, %v2478_v16 }
 0x877   : > { %v3134_v55 = vadd.f32 %v4670_v24, %v3126_v21 }
 0x879   : > { %v3152_v28 = vsel %vm550_vm1, %v3134_v55, 0.0 }
 0x87a   : > { %3153 = vadd.xlane.f32.xlu0 %v3152_v28 }
 0x87c   : > { %v3116_v0 = vpop.f32.mrf.mxu0 }
 0x87d   : > { %v3127_v6 = vadd.f32 %v3116_v0, %v5473_v20  ;;  %v5544_v20 = vsel %vm3166_vm5, %v4632_v48, %v3165_v5 }
 0x87f   : > { %v3135_v32 = vadd.f32 %v4671_v30, %v3127_v6 }
 0x881   : > { %v3155_v38 = vsel %vm550_vm1, %v3135_v32, 0.0 }
 0x882   : > { %3156 = vadd.xlane.f32.xlu0 %v3155_v38 }
 0x884   : > { %v3118_v62 = vpop.f32.mrf.mxu0 }
 0x885   : > { %v3128_v19 = vadd.f32 %v3118_v62, %v2480_v61  ;;  %v5606_v61 = vld [vmem:[%s5541_s26] ss:$0 sm:$0xff] }
 0x887   : > { %v3136_v58 = vadd.f32 %v4672_v27, %v3128_v19  ;;  %v5611_v27 = vld [vmem:[%s5541_s26 + $0x1] ss:$0 sm:$0xff] }
 0x889   : > { %v3158_v29 = vsel %vm550_vm1, %v3136_v58, 0.0 }
 0x8b9   : > { %v3139_v31 = vpop.xlane.xlu1 %3138 }
 0x8ba   : > { %v3168_v33 = vmul.f32 %v5544_v20, %v3139_v31 }
 0x8bc   : > { %v5549_v37 = vsub.f32 %v3129_v56, %v3168_v33 }
 0x8be   : > { %v3184_v9 = vmul.f32 %v5549_v37, %v5549_v37 }
 0x8c0   : > { %v3192_v41 = vsel %vm550_vm1, %v3184_v9, 0.0 }
 0x8c1   : > { %v3142_v3 = vpop.xlane.xlu2 %3141  ;;  %3193 = vadd.xlane.f32.xlu1 %v3192_v41 }
 0x8c2   : > { %v3169_v57 = vmul.f32 %v5544_v20, %v3142_v3 }
 0x8c4   : > { %v5556_v7 = vsub.f32 %v3130_v40, %v3169_v57 }
 0x8c6   : > { %v3185_v54 = vmul.f32 %v5556_v7, %v5556_v7 }
 0x8c8   : > { %v3195_v14 = vsel %vm550_vm1, %v3185_v54, 0.0 }
 0x8c9   : > { %3196 = vadd.xlane.f32.xlu2 %v3195_v14  ;;  %3159 = vadd.xlane.f32.xlu1 %v3158_v29 }
 0x8d5   : > { %v3145_v10 = vpop.xlane.xlu0 %3144 }
 0x8d6   : > { %v3170_v2 = vmul.f32 %v5544_v20, %v3145_v10 }
 0x8d8   : > { %v5564_v56 = vsub.f32 %v5522_v49, %v3170_v2 }
 0x8da   : > { %v3186_v4 = vmul.f32 %v5564_v56, %v5564_v56 }
 0x8dc   : > { %v3198_v52 = vsel %vm550_vm1, %v3186_v4, 0.0 }
 0x8dd   : > { %v3148_v1 = vpop.xlane.xlu1 %3147  ;;  %3199 = vadd.xlane.f32.xlu2 %v3198_v52 }
 0x8de   : > { %v3171_v60 = vmul.f32 %v5544_v20, %v3148_v1 }
 0x8e0   : > { %v5570_v47 = vsub.f32 %v3132_v44, %v3171_v60 }
 0x8e2   : > { %v3187_v39 = vmul.f32 %v5570_v47, %v5570_v47 }
 0x8e4   : > { %v3201_v40 = vsel %vm550_vm1, %v3187_v39, 0.0 }
 0x8e5   : > { %v3151_v11 = vpop.xlane.xlu2 %3150  ;;  %3202 = vadd.xlane.f32.xlu0 %v3201_v40 }
 0x8e6   : > { %v3172_v46 = vmul.f32 %v5544_v20, %v3151_v11 }
 0x8e8   : > { %v5576_v50 = vsub.f32 %v3133_v45, %v3172_v46 }
 0x8ea   : > { %v3188_v36 = vmul.f32 %v5576_v50, %v5576_v50 }
 0x8ec   : > { %v3204_v49 = vsel %vm550_vm1, %v3188_v36, 0.0 }
 0x8ed   : > { %v3154_v34 = vpop.xlane.xlu0 %3153  ;;  %3205 = vadd.xlane.f32.xlu1 %v3204_v49 }
 0x8ee   : > { %v3173_v13 = vmul.f32 %v5544_v20, %v3154_v34 }
 0x8f0   : > { %v5582_v42 = vsub.f32 %v3134_v55, %v3173_v13 }
 0x8f2   : > { %v3189_v12 = vmul.f32 %v5582_v42, %v5582_v42 }
 0x8f4   : > { %v3207_v22 = vsel %vm550_vm1, %v3189_v12, 0.0 }
 0x8f5   : > { %3208 = vadd.xlane.f32.xlu2 %v3207_v22  ;;  %v3157_v15 = vpop.xlane.xlu0 %3156 }
 0x8f6   : > { %v3174_v44 = vmul.f32 %v5544_v20, %v3157_v15 }
 0x8f8   : > { %v5588_v17 = vsub.f32 %v3135_v32, %v3174_v44 }
 0x8fa   : > { %v3190_v25 = vmul.f32 %v5588_v17, %v5588_v17 }
 0x8fc   : > { %v3210_v51 = vsel %vm550_vm1, %v3190_v25, 0.0 }
 0x8fd   : > { %3211 = vadd.xlane.f32.xlu0 %v3210_v51 }
 0x934   : > { %v3194_v45 = vpop.xlane.xlu1 %3193 }
 0x935   : > { %v3216_v26 = vmul.f32 %v3194_v45, %v5544_v20 }
 0x937   : > { %v3224_v16 = vadd.f32 1e-05, %v3216_v26 }
 0x939   : > { %4633 = vrsqrt.f32 %v3224_v16  ;;  %vm3238_vm7 = vweird.f32 %v3224_v16 }
 0x93c   : > { %v3197_v43 = vpop.xlane.xlu2 %3196  ;;  %v3160_v21 = vpop.xlane.xlu1 %3159 }
 0x93d   : > { %v3217_v24 = vmul.f32 %v3197_v43, %v5544_v20  ;;  %v3175_v55 = vmul.f32 %v5544_v20, %v3160_v21 }
 0x93f   : > { %v4634_v28 = vpop.eup %4633  ;;  %v3225_v0 = vadd.f32 1e-05, %v3217_v24  ;;  %v5600_v6 = vsub.f32 %v3136_v58, %v3175_v55 }
 0x940   : > { %v3233_v30 = vmul.f32 %v4634_v28, %v3224_v16  ;;  %vm3239_vm6 = vweird.f32 %v4634_v28 }
 0x941   : > { %4635 = vrsqrt.f32 %v3225_v0  ;;  %v3191_v32 = vmul.f32 %v5600_v6, %v5600_v6  ;;  %vm3240_vm8 = vmor %vm3238_vm7, %vm3239_vm6  ;;  %vm3248_vm10 = vweird.f32 %v3225_v0 }
 0x942   : > { %v3234_v38 = vmul.f32 %v4634_v28, %v3233_v30 }
 0x943   : > { %v3213_v59 = vsel %vm550_vm1, %v3191_v32, 0.0 }
 0x944   : > { %v3235_v48 = vmul.f32 0.5, %v3234_v38  ;;  %3214 = vadd.xlane.f32.xlu1 %v3213_v59 }
 0x946   : > { %v3236_v53 = vsub.f32 1.5, %v3235_v48 }
 0x947   : > { %v4636_v23 = vpop.eup %4635 }
 0x948   : > { %v3237_v63 = vmul.f32 %v4634_v28, %v3236_v53  ;;  %v3243_v5 = vmul.f32 %v4636_v23, %v3225_v0  ;;  %vm3249_vm9 = vweird.f32 %v4636_v23 }
 0x949   : > { %vm3250_vm11 = vmor %vm3248_vm10, %vm3249_vm9 }
 0x94a   : > { %v3244_v31 = vmul.f32 %v4636_v23, %v3243_v5  ;;  %v3241_v33 = vsel %vm3240_vm8, %v4634_v28, %v3237_v63 }
 0x94b   : > { %v3312_v9 = vmul.f32 %v3241_v33, %v5549_v37 }
 0x94c   : > { %v3245_v35 = vmul.f32 0.5, %v3244_v31 }
 0x94d   : > { %v3326_v58 = vmul.f32 %v5606_v61, %v3312_v9 }
 0x94e   : > { %v3246_v62 = vsub.f32 1.5, %v3245_v35 }
 0x94f   : > { %v5621_v37 = vadd.f32 %v5611_v27, %v3326_v58 }
 0x950   : > { %v3247_v19 = vmul.f32 %v4636_v23, %v3246_v62  ;;  %v3200_v41 = vpop.xlane.xlu2 %3199 }
 0x951   : > { %v3218_v3 = vmul.f32 %v3200_v41, %v5544_v20 }
 0x952   : > { %v3251_v57 = vsel %vm3250_vm11, %v4636_v23, %v3247_v19 }
 0x953   : > { %v3313_v54 = vmul.f32 %v3251_v57, %v5556_v7  ;;  %v3226_v14 = vadd.f32 1e-05, %v3218_v3 }
 0x955   : > { %v3327_v29 = vmul.f32 %v5606_v61, %v3313_v54  ;;  %4637 = vrsqrt.f32 %v3226_v14  ;;  %vm3258_vm13 = vweird.f32 %v3226_v14 }
 0x957   : > { %v5624_v10 = vadd.f32 %v5611_v27, %v3327_v29 }
 0x958   : > { %v3203_v2 = vpop.xlane.xlu0 %3202 }
 0x959   : > { %v3348_v4 = vpack.c.bf16 %v5624_v10, %v5621_v37  ;;  %v3219_v7 = vmul.f32 %v3203_v2, %v5544_v20  ;;  %v4399_v2 = vld [vmem:[%s3430_s16 + $0x18] sm:$0xff] }
 0x95a   : > { %3486 = vmatpush.bf16.msrb.mxu2 %v4399_v2 }
 0x95b   : > { %v4638_v52 = vpop.eup %4637  ;;  %v3227_v1 = vadd.f32 1e-05, %v3219_v7  ;;  %4315 = vmatmul.msk.bf16.vlgmr.msrb.gmra.mxu1 %vm550_vm1, %v3348_v4 }
 0x95c   : > { %v3253_v60 = vmul.f32 %v4638_v52, %v3226_v14  ;;  %vm3259_vm12 = vweird.f32 %v4638_v52 }
 0x95d   : > { %4639 = vrsqrt.f32 %v3227_v1  ;;  %vm3260_vm14 = vmor %vm3258_vm13, %vm3259_vm12  ;;  %vm3268_vm0 = vweird.f32 %v3227_v1 }
 0x95e   : > { %v3254_v39 = vmul.f32 %v4638_v52, %v3253_v60  ;;  %v4398_v60 = vld [vmem:[%s3430_s16 + $0x10] sm:$0xff] }
 0x95f   : > { %3487 = vmatpush.bf16.msrb.mxu2 %v4398_v60 }
 0x960   : > { %v3255_v40 = vmul.f32 0.5, %v3254_v39  ;;  %v3206_v11 = vpop.xlane.xlu1 %3205 }
 0x961   : > { %v3220_v46 = vmul.f32 %v3206_v11, %v5544_v20 }
 0x962   : > { %v3256_v36 = vsub.f32 1.5, %v3255_v40  ;;  %v4397_v40 = vld [vmem:[%s3430_s16 + $0x8] sm:$0xff] }
 0x963   : > { %v4640_v49 = vpop.eup %4639  ;;  %v3228_v34 = vadd.f32 1e-05, %v3220_v46  ;;  %3488 = vmatpush.bf16.msrb.mxu2 %v4397_v40 }
 0x964   : > { %v3257_v13 = vmul.f32 %v4638_v52, %v3256_v36  ;;  %v3263_v12 = vmul.f32 %v4640_v49, %v3227_v1  ;;  %vm3269_vm15 = vweird.f32 %v4640_v49  ;;  %v4396_v36 = vld [vmem:[%s3430_s16] sm:$0xff] }
 0x965   : > { %4641 = vrsqrt.f32 %v3228_v34  ;;  %vm3270_vm2 = vmor %vm3268_vm0, %vm3269_vm15  ;;  %vm3278_vm4 = vweird.f32 %v3228_v34  ;;  %vm3469_vm15 = vcmask 523264  }
 0x966   : > { %v3264_v22 = vmul.f32 %v4640_v49, %v3263_v12  ;;  %v3261_v15 = vsel %vm3260_vm14, %v4638_v52, %v3257_v13 }
 0x967   : > { %v3314_v26 = vmul.f32 %v3261_v15, %v5564_v56  ;;  %3489 = vmatpush.bf16.msrb.mxu2 %v4396_v36 }
 0x968   : > { %v3265_v44 = vmul.f32 0.5, %v3264_v22  ;;  %v3209_v25 = vpop.xlane.xlu2 %3208 }
 0x969   : > { %v3221_v51 = vmul.f32 %v3209_v25, %v5544_v20  ;;  %v3328_v28 = vmul.f32 %v5606_v61, %v3314_v26 }
 0x96a   : > { %v3266_v8 = vsub.f32 1.5, %v3265_v44 }
 0x96b   : > { %v4642_v45 = vpop.eup %4641  ;;  %v3229_v18 = vadd.f32 1e-05, %v3221_v51  ;;  %v5637_v59 = vadd.f32 %v5611_v27, %v3328_v28 }
 0x96c   : > { %v3267_v16 = vmul.f32 %v4640_v49, %v3266_v8  ;;  %v3273_v43 = vmul.f32 %v4642_v45, %v3228_v34  ;;  %vm3279_vm3 = vweird.f32 %v4642_v45 }
 0x96d   : > { %4643 = vrsqrt.f32 %v3229_v18  ;;  %vm3280_vm5 = vmor %vm3278_vm4, %vm3279_vm3  ;;  %vm3288_vm7 = vweird.f32 %v3229_v18 }
 0x96e   : > { %v3271_v21 = vsel %vm3270_vm2, %v4640_v49, %v3267_v16  ;;  %v3274_v24 = vmul.f32 %v4642_v45, %v3273_v43 }
 0x96f   : > { %v3315_v55 = vmul.f32 %v3271_v21, %v5570_v47 }
 0x970   : > { %v3275_v0 = vmul.f32 0.5, %v3274_v24  ;;  %v3212_v58 = vpop.xlane.xlu0 %3211 }
 0x971   : > { %v3329_v30 = vmul.f32 %v5606_v61, %v3315_v55  ;;  %v3222_v54 = vmul.f32 %v3212_v58, %v5544_v20 }
 0x972   : > { %v3276_v32 = vsub.f32 1.5, %v3275_v0 }
 0x973   : > { %v4644_v38 = vpop.eup %4643  ;;  %v5640_v56 = vadd.f32 %v5611_v27, %v3329_v30  ;;  %v3230_v14 = vadd.f32 1e-05, %v3222_v54 }
 0x974   : > { %v3277_v48 = vmul.f32 %v4642_v45, %v3276_v32  ;;  %v3283_v53 = vmul.f32 %v4644_v38, %v3229_v18  ;;  %vm3289_vm6 = vweird.f32 %v4644_v38 }
 0x975   : > { %v3349_v23 = vpack.c.bf16 %v5640_v56, %v5637_v59  ;;  %vm3290_vm8 = vmor %vm3288_vm7, %vm3289_vm6  ;;  %4645 = vrsqrt.f32 %v3230_v14  ;;  %vm3298_vm10 = vweird.f32 %v3230_v14 }
 0x976   : > { %v3284_v47 = vmul.f32 %v4644_v38, %v3283_v53  ;;  %v3281_v63 = vsel %vm3280_vm5, %v4642_v45, %v3277_v48 }
 0x977   : > { %4316 = vmatmul.msk.bf16.gmra.mxu1 %vm550_vm1, %v3349_v23  ;;  %v3316_v33 = vmul.f32 %v3281_v63, %v5576_v50 }
 0x978   : > { %v3285_v5 = vmul.f32 0.5, %v3284_v47 }
 0x979   : > { %v3330_v19 = vmul.f32 %v5606_v61, %v3316_v33 }
 0x97a   : > { %v3286_v31 = vsub.f32 1.5, %v3285_v5 }
 0x97b   : > { %v5650_v3 = vadd.f32 %v5611_v27, %v3330_v19 }
 0x97c   : > { %v3287_v35 = vmul.f32 %v4644_v38, %v3286_v31 }
 0x97e   : > { %v3291_v62 = vsel %vm3290_vm8, %v4644_v38, %v3287_v35 }
 0x97f   : > { %v3317_v9 = vmul.f32 %v3291_v62, %v5582_v42  ;;  %v4646_v42 = vpop.eup %4645 }
 0x980   : > { %v3293_v29 = vmul.f32 %v4646_v42, %v3230_v14  ;;  %vm3299_vm9 = vweird.f32 %v4646_v42 }
 0x981   : > { %v3331_v41 = vmul.f32 %v5606_v61, %v3317_v9  ;;  %vm3300_vm11 = vmor %vm3298_vm10, %vm3299_vm9 }
 0x982   : > { %v3294_v4 = vmul.f32 %v4646_v42, %v3293_v29 }
 0x983   : > { %v5653_v57 = vadd.f32 %v5611_v27, %v3331_v41 }
 0x984   : > { %v3295_v39 = vmul.f32 0.5, %v3294_v4 }
 0x985   : > { %v3350_v50 = vpack.c.bf16 %v5653_v57, %v5650_v3 }
 0x986   : > { %v3296_v11 = vsub.f32 1.5, %v3295_v39 }
 0x987   : > { %4317 = vmatmul.msk.bf16.gmra.mxu1 %vm550_vm1, %v3350_v50 }
 0x988   : > { %v3297_v49 = vmul.f32 %v4646_v42, %v3296_v11 }
 0x98a   : > { %v3301_v12 = vsel %vm3300_vm11, %v4646_v42, %v3297_v49  ;;  %v4500_v42 = vld [vmem:[%s5541_s26 + $0x4] ss:$0 sm:$0xff] }
 0x98b   : > { %v3318_v44 = vmul.f32 %v3301_v12, %v5588_v17 }
 0x98d   : > { %v3332_v45 = vmul.f32 %v5606_v61, %v3318_v44 }
 0x98f   : > { %v5670_v18 = vadd.f32 %v5611_v27, %v3332_v45 }
 0x9b7   : > { %v3215_v7 = vpop.xlane.xlu1 %3214 }
 0x9b8   : > { %v3223_v52 = vmul.f32 %v3215_v7, %v5544_v20 }
 0x9ba   : > { %v3231_v1 = vadd.f32 1e-05, %v3223_v52 }
 0x9bc   : > { %4647 = vrsqrt.f32 %v3231_v1  ;;  %vm3308_vm13 = vweird.f32 %v3231_v1 }
 0x9c2   : > { %v4648_v46 = vpop.eup %4647 }
 0x9c3   : > { %v3303_v34 = vmul.f32 %v4648_v46, %v3231_v1  ;;  %vm3309_vm12 = vweird.f32 %v4648_v46 }
 0x9c4   : > { %vm3310_vm14 = vmor %vm3308_vm13, %vm3309_vm12 }
 0x9c5   : > { %v3304_v13 = vmul.f32 %v4648_v46, %v3303_v34 }
 0x9c7   : > { %v3305_v22 = vmul.f32 0.5, %v3304_v13 }
 0x9c9   : > { %v3306_v15 = vsub.f32 1.5, %v3305_v22 }
 0x9cb   : > { %v3307_v25 = vmul.f32 %v4648_v46, %v3306_v15 }
 0x9cd   : > { %v3311_v51 = vsel %vm3310_vm14, %v4648_v46, %v3307_v25 }
 0x9ce   : > { %v3319_v8 = vmul.f32 %v3311_v51, %v5600_v6  ;;  %v4499_v6 = vld [vmem:[%s3359_s25] ss:$0 sm:$0xff] }
 0x9d0   : > { %v3333_v26 = vmul.f32 %v5606_v61, %v3319_v8 }
 0x9d2   : > { %v5673_v16 = vadd.f32 %v5611_v27, %v3333_v26 }
 0x9d4   : > { %v3351_v43 = vpack.c.bf16 %v5673_v16, %v5670_v18 }
 0x9d6   : > { %4318 = vmatmul.msk.bf16.gmra.mxu1 %vm550_vm1, %v3351_v43 }
 0x9d8   : > { %v3397_v17 = vpop.f32.mrf.mxu1 }
 0x9d9   : > { %v3398_v21 = vadd.f32 %v4499_v6, %v3397_v17 }
 0x9db   : > { %v3417_v55 = vmax.f32 %v3398_v21, 0.0 }
 0x9e0   : > { %v3399_v24 = vpop.f32.mrf.mxu1 }
 0x9e1   : > { %v3400_v61 = vadd.f32 %v4499_v6, %v3399_v24 }
 0x9e3   : > { %v3418_v28 = vmax.f32 %v3400_v61, 0.0 }
 0x9e5   : > { %v3425_v0 = vpack.c.bf16 %v3418_v28, %v3417_v55 }
 0x9e7   : > { %4337 = vmatmul.msk.bf16.vlgmr.msrb.gmra.mxu2 %vm3469_vm15, %v3425_v0 }
 0x9f4   : > { %v3402_v27 = vpop.f32.mrf.mxu1 }
 0x9f5   : > { %v3403_v30 = vadd.f32 %v4499_v6, %v3402_v27 }
 0x9f7   : > { %v3419_v48 = vmax.f32 %v3403_v30, 0.0 }
 0x9fc   : > { %v3404_v32 = vpop.f32.mrf.mxu1 }
 0x9fd   : > { %v3405_v38 = vadd.f32 %v4499_v6, %v3404_v32 }
 0x9ff   : > { %v3420_v53 = vmax.f32 %v3405_v38, 0.0 }
 0xa01   : > { %v3426_v23 = vpack.c.bf16 %v3420_v53, %v3419_v48 }
 0xa03   : > { %4338 = vmatmul.msk.bf16.gmra.mxu2 %vm3469_vm15, %v3426_v23 }
 0xa04   : > { %v3407_v47 = vpop.f32.mrf.mxu1 }
 0xa05   : > { %v3408_v63 = vadd.f32 %v4499_v6, %v3407_v47 }
 0xa07   : > { %v3421_v33 = vmax.f32 %v3408_v63, 0.0 }
 0xa0c   : > { %v3409_v5 = vpop.f32.mrf.mxu1 }
 0xa0d   : > { %v3410_v31 = vadd.f32 %v4499_v6, %v3409_v5 }
 0xa0f   : > { %v3422_v35 = vmax.f32 %v3410_v31, 0.0 }
 0xa11   : > { %v3427_v62 = vpack.c.bf16 %v3422_v35, %v3421_v33 }
 0xa13   : > { %4339 = vmatmul.msk.bf16.gmra.mxu2 %vm3469_vm15, %v3427_v62 }
 0xa53   : > { %v3412_v9 = vpop.f32.mrf.mxu1 }
 0xa54   : > { %v3413_v19 = vadd.f32 %v4499_v6, %v3412_v9 }
 0xa56   : > { %v3423_v58 = vmax.f32 %v3413_v19, 0.0 }
 0xa5b   : > { %v3414_v41 = vpop.f32.mrf.mxu1 }
 0xa5c   : > { %v3415_v50 = vadd.f32 %v4499_v6, %v3414_v41 }
 0xa5e   : > { %v3424_v54 = vmax.f32 %v3415_v50, 0.0 }
 0xa60   : > { %v3428_v14 = vpack.c.bf16 %v3424_v54, %v3423_v58 }
 0xa62   : > { %4340 = vmatmul.msk.bf16.gmra.mxu2 %vm3469_vm15, %v3428_v14 }
 0xa6a   : > { %v3491_v29 = vpop.f32.mrf.mxu2 }
 0xa6b   : > { %v3492_v2 = vadd.f32 %v4500_v42, %v3491_v29 }
 0xa6d   : > { %v3511_v4 = vadd.f32 %v3492_v2, %v5621_v37 }
 0xa6f   : > { %v3519_v7 = vsel %vm550_vm1, %v3511_v4, 0.0 }
 0xa70   : > { %3520 = vadd.xlane.f32.xlu2 %v3519_v7 }
 0xa72   : > { %v3493_v52 = vpop.f32.mrf.mxu2 }
 0xa73   : > { %v3494_v1 = vadd.f32 %v4500_v42, %v3493_v52 }
 0xa75   : > { %v3512_v60 = vadd.f32 %v3494_v1, %v5624_v10 }
 0xa77   : > { %v3522_v39 = vsel %vm550_vm1, %v3512_v60, 0.0 }
 0xa78   : > { %3523 = vadd.xlane.f32.xlu0 %v3522_v39 }
 0xa86   : > { %v3496_v40 = vpop.f32.mrf.mxu2 }
 0xa87   : > { %v3497_v11 = vadd.f32 %v4500_v42, %v3496_v40 }
 0xa89   : > { %v3513_v46 = vadd.f32 %v3497_v11, %v5637_v59 }
 0xa8b   : > { %v3525_v36 = vsel %vm550_vm1, %v3513_v46, 0.0 }
 0xa8c   : > { %3526 = vadd.xlane.f32.xlu1 %v3525_v36 }
 0xa8e   : > { %v3498_v49 = vpop.f32.mrf.mxu2 }
 0xa8f   : > { %v3499_v34 = vadd.f32 %v4500_v42, %v3498_v49 }
 0xa91   : > { %v3514_v37 = vadd.f32 %v3499_v34, %v5640_v56 }
 0xa93   : > { %v3528_v13 = vsel %vm550_vm1, %v3514_v37, 0.0 }
 0xa94   : > { %3529 = vadd.xlane.f32.xlu2 %v3528_v13 }
 0xa96   : > { %v3501_v12 = vpop.f32.mrf.mxu2 }
 0xa97   : > { %v3502_v22 = vadd.f32 %v4500_v42, %v3501_v12 }
 0xa99   : > { %v3515_v10 = vadd.f32 %v3502_v22, %v5650_v3 }
 0xa9b   : > { %v3531_v15 = vsel %vm550_vm1, %v3515_v10, 0.0 }
 0xa9c   : > { %3532 = vadd.xlane.f32.xlu0 %v3531_v15 }
 0xa9e   : > { %v3503_v44 = vpop.f32.mrf.mxu2 }
 0xa9f   : > { %v3504_v25 = vadd.f32 %v4500_v42, %v3503_v44 }
 0xaa1   : > { %v3516_v59 = vadd.f32 %v3504_v25, %v5653_v57 }
 0xaa3   : > { %v3534_v51 = vsel %vm550_vm1, %v3516_v59, 0.0 }
 0xaa4   : > { %3535 = vadd.xlane.f32.xlu1 %v3534_v51  ;;  %v5755_v51 = vld [vmem:[%s5541_s26 + $0x2] ss:$0 sm:$0xff] }
 0xae3   : > { %v3521_v8 = vpop.xlane.xlu2 %3520 }
 0xae4   : > { %v3543_v56 = vmul.f32 %v3521_v8, %v5544_v20 }
 0xae5   : > { %v3506_v45 = vpop.f32.mrf.mxu2 }
 0xae6   : > { %v5701_v26 = vsub.f32 %v3511_v4, %v3543_v56  ;;  %v3507_v43 = vadd.f32 %v4500_v42, %v3506_v45  ;;  %v5758_v45 = vld [vmem:[%s5541_s26 + $0x3] ss:$0 sm:$0xff] }
 0xae8   : > { %v3559_v3 = vmul.f32 %v5701_v26, %v5701_v26  ;;  %v3517_v17 = vadd.f32 %v3507_v43, %v5670_v18 }
 0xaea   : > { %v3567_v6 = vsel %vm550_vm1, %v3559_v3, 0.0  ;;  %v3537_v21 = vsel %vm550_vm1, %v3517_v17, 0.0 }
 0xaeb   : > { %v3524_v57 = vpop.xlane.xlu0 %3523  ;;  %3568 = vadd.xlane.f32.xlu1 %v3567_v6  ;;  %3538 = vadd.xlane.f32.xlu2 %v3537_v21 }
 0xaec   : > { %v3544_v24 = vmul.f32 %v3524_v57, %v5544_v20 }
 0xaed   : > { %v3508_v61 = vpop.f32.mrf.mxu2 }
 0xaee   : > { %v5709_v55 = vsub.f32 %v3512_v60, %v3544_v24  ;;  %v3509_v28 = vadd.f32 %v4500_v42, %v3508_v61 }
 0xaf0   : > { %v3518_v0 = vadd.f32 %v3509_v28, %v5673_v16  ;;  %v3560_v27 = vmul.f32 %v5709_v55, %v5709_v55 }
 0xaf2   : > { %v3540_v18 = vsel %vm550_vm1, %v3518_v0, 0.0  ;;  %v3570_v30 = vsel %vm550_vm1, %v3560_v27, 0.0 }
 0xaf3   : > { %3541 = vadd.xlane.f32.xlu0 %v3540_v18  ;;  %3571 = vadd.xlane.f32.xlu2 %v3570_v30 }
 0xaff   : > { %v3527_v32 = vpop.xlane.xlu1 %3526 }
 0xb00   : > { %v3545_v38 = vmul.f32 %v3527_v32, %v5544_v20 }
 0xb02   : > { %v5717_v48 = vsub.f32 %v3513_v46, %v3545_v38 }
 0xb04   : > { %v3561_v53 = vmul.f32 %v5717_v48, %v5717_v48 }
 0xb06   : > { %v3573_v23 = vsel %vm550_vm1, %v3561_v53, 0.0 }
 0xb07   : > { %v3530_v16 = vpop.xlane.xlu2 %3529  ;;  %3574 = vadd.xlane.f32.xlu0 %v3573_v23 }
 0xb08   : > { %v3546_v47 = vmul.f32 %v3530_v16, %v5544_v20 }
 0xb0a   : > { %v5723_v63 = vsub.f32 %v3514_v37, %v3546_v47 }
 0xb0c   : > { %v3562_v5 = vmul.f32 %v5723_v63, %v5723_v63 }
 0xb0e   : > { %v3576_v31 = vsel %vm550_vm1, %v3562_v5, 0.0 }
 0xb0f   : > { %3577 = vadd.xlane.f32.xlu1 %v3576_v31  ;;  %v3533_v33 = vpop.xlane.xlu0 %3532 }
 0xb10   : > { %v3547_v35 = vmul.f32 %v3533_v33, %v5544_v20 }
 0xb12   : > { %v5729_v62 = vsub.f32 %v3515_v10, %v3547_v35 }
 0xb14   : > { %v3563_v9 = vmul.f32 %v5729_v62, %v5729_v62 }
 0xb16   : > { %v3579_v19 = vsel %vm550_vm1, %v3563_v9, 0.0 }
 0xb17   : > { %3580 = vadd.xlane.f32.xlu2 %v3579_v19  ;;  %v3536_v41 = vpop.xlane.xlu1 %3535 }
 0xb18   : > { %v3548_v50 = vmul.f32 %v3536_v41, %v5544_v20 }
 0xb1a   : > { %v5735_v58 = vsub.f32 %v3516_v59, %v3548_v50 }
 0xb1c   : > { %v3564_v54 = vmul.f32 %v5735_v58, %v5735_v58 }
 0xb1e   : > { %v3582_v14 = vsel %vm550_vm1, %v3564_v54, 0.0 }
 0xb1f   : > { %3583 = vadd.xlane.f32.xlu0 %v3582_v14 }
 0xb5e   : > { %v3539_v42 = vpop.xlane.xlu2 %3538  ;;  %v3569_v29 = vpop.xlane.xlu1 %3568 }
 0xb5f   : > { %v3549_v2 = vmul.f32 %v3539_v42, %v5544_v20  ;;  %v3591_v4 = vmul.f32 %v3569_v29, %v5544_v20 }
 0xb61   : > { %v5742_v7 = vsub.f32 %v3517_v17, %v3549_v2  ;;  %v3599_v52 = vadd.f32 1e-05, %v3591_v4 }
 0xb63   : > { %4649 = vrsqrt.f32 %v3599_v52  ;;  %v3565_v1 = vmul.f32 %v5742_v7, %v5742_v7  ;;  %vm3613_vm2 = vweird.f32 %v3599_v52 }
 0xb65   : > { %v3585_v60 = vsel %vm550_vm1, %v3565_v1, 0.0 }
 0xb66   : > { %v3542_v39 = vpop.xlane.xlu0 %3541  ;;  %3586 = vadd.xlane.f32.xlu1 %v3585_v60  ;;  %v3572_v40 = vpop.xlane.xlu2 %3571 }
 0xb67   : > { %v3550_v11 = vmul.f32 %v3542_v39, %v5544_v20  ;;  %v3592_v46 = vmul.f32 %v3572_v40, %v5544_v20 }
 0xb69   : > { %v4650_v36 = vpop.eup %4649  ;;  %v5749_v49 = vsub.f32 %v3518_v0, %v3550_v11  ;;  %v3600_v34 = vadd.f32 1e-05, %v3592_v46 }
 0xb6a   : > { %v3608_v37 = vmul.f32 %v4650_v36, %v3599_v52  ;;  %vm3614_vm0 = vweird.f32 %v4650_v36 }
 0xb6b   : > { %4651 = vrsqrt.f32 %v3600_v34  ;;  %v3566_v13 = vmul.f32 %v5749_v49, %v5749_v49  ;;  %vm3615_vm3 = vmor %vm3613_vm2, %vm3614_vm0  ;;  %vm3623_vm5 = vweird.f32 %v3600_v34 }
 0xb6c   : > { %v3609_v12 = vmul.f32 %v4650_v36, %v3608_v37 }
 0xb6d   : > { %v3588_v22 = vsel %vm550_vm1, %v3566_v13, 0.0 }
 0xb6e   : > { %v3610_v10 = vmul.f32 0.5, %v3609_v12  ;;  %3589 = vadd.xlane.f32.xlu2 %v3588_v22 }
 0xb70   : > { %v3611_v15 = vsub.f32 1.5, %v3610_v10 }
 0xb71   : > { %v4652_v44 = vpop.eup %4651 }
 0xb72   : > { %v3612_v25 = vmul.f32 %v4650_v36, %v3611_v15  ;;  %v3618_v59 = vmul.f32 %v4652_v44, %v3600_v34  ;;  %vm3624_vm4 = vweird.f32 %v4652_v44 }
 0xb73   : > { %vm3625_vm6 = vmor %vm3623_vm5, %vm3624_vm4 }
 0xb74   : > { %v3616_v8 = vsel %vm3615_vm3, %v4650_v36, %v3612_v25  ;;  %v3619_v56 = vmul.f32 %v4652_v44, %v3618_v59 }
 0xb75   : > { %v3687_v43 = vmul.f32 %v3616_v8, %v5701_v26 }
 0xb76   : > { %v3620_v3 = vmul.f32 0.5, %v3619_v56 }
 0xb77   : > { %v3701_v17 = vmul.f32 %v5755_v51, %v3687_v43 }
 0xb78   : > { %v3621_v6 = vsub.f32 1.5, %v3620_v3 }
 0xb79   : > { %v5763_v21 = vadd.f32 %v5758_v45, %v3701_v17 }
 0xb7a   : > { %v3622_v57 = vmul.f32 %v4652_v44, %v3621_v6  ;;  %v3575_v24 = vpop.xlane.xlu0 %3574 }
 0xb7b   : > { %3723 = vst.msk [vmem:[#allocation2] sm:$0xff] %vm550_vm1, %v5763_v21  ;;  %v3593_v61 = vmul.f32 %v3575_v24, %v5544_v20 }
 0xb7c   : > { %v3626_v28 = vsel %vm3625_vm6, %v4652_v44, %v3622_v57 }
 0xb7d   : > { %v3688_v26 = vmul.f32 %v3626_v28, %v5709_v55  ;;  %v3601_v0 = vadd.f32 1e-05, %v3593_v61 }
 0xb7f   : > { %v3702_v27 = vmul.f32 %v5755_v51, %v3688_v26  ;;  %4653 = vrsqrt.f32 %v3601_v0  ;;  %vm3633_vm8 = vweird.f32 %v3601_v0 }
 0xb81   : > { %v5771_v18 = vadd.f32 %v5758_v45, %v3702_v27 }
 0xb82   : > { %v3578_v30 = vpop.xlane.xlu1 %3577 }
 0xb83   : > { %3724 = vst.msk [vmem:[#allocation2 + $0x8] sm:$0xff] %vm550_vm1, %v5771_v18  ;;  %v3594_v32 = vmul.f32 %v3578_v30, %v5544_v20 }
 0xb85   : > { %v4654_v38 = vpop.eup %4653  ;;  %v3602_v53 = vadd.f32 1e-05, %v3594_v32 }
 0xb86   : > { %v3628_v23 = vmul.f32 %v4654_v38, %v3601_v0  ;;  %vm3634_vm7 = vweird.f32 %v4654_v38 }
 0xb87   : > { %4655 = vrsqrt.f32 %v3602_v53  ;;  %vm3635_vm9 = vmor %vm3633_vm8, %vm3634_vm7  ;;  %vm3643_vm11 = vweird.f32 %v3602_v53 }
 0xb88   : > { %v3629_v16 = vmul.f32 %v4654_v38, %v3628_v23 }
 0xb8a   : > { %v3630_v47 = vmul.f32 0.5, %v3629_v16  ;;  %v3581_v55 = vpop.xlane.xlu2 %3580 }
 0xb8b   : > { %v3595_v5 = vmul.f32 %v3581_v55, %v5544_v20 }
 0xb8c   : > { %v3631_v31 = vsub.f32 1.5, %v3630_v47 }
 0xb8d   : > { %v4656_v33 = vpop.eup %4655  ;;  %v3603_v35 = vadd.f32 1e-05, %v3595_v5 }
 0xb8e   : > { %v3632_v9 = vmul.f32 %v4654_v38, %v3631_v31  ;;  %v3638_v19 = vmul.f32 %v4656_v33, %v3602_v53  ;;  %vm3644_vm10 = vweird.f32 %v4656_v33 }
 0xb8f   : > { %4657 = vrsqrt.f32 %v3603_v35  ;;  %vm3645_vm12 = vmor %vm3643_vm11, %vm3644_vm10  ;;  %vm3653_vm14 = vweird.f32 %v3603_v35 }
 0xb90   : > { %v3636_v41 = vsel %vm3635_vm9, %v4654_v38, %v3632_v9  ;;  %v3639_v50 = vmul.f32 %v4656_v33, %v3638_v19 }
 0xb91   : > { %v3689_v54 = vmul.f32 %v3636_v41, %v5717_v48 }
 0xb92   : > { %v3640_v14 = vmul.f32 0.5, %v3639_v50  ;;  %v3584_v42 = vpop.xlane.xlu0 %3583 }
 0xb93   : > { %v3703_v29 = vmul.f32 %v5755_v51, %v3689_v54  ;;  %v3596_v2 = vmul.f32 %v3584_v42, %v5544_v20 }
 0xb94   : > { %v3641_v4 = vsub.f32 1.5, %v3640_v14 }
 0xb95   : > { %v4658_v52 = vpop.eup %4657  ;;  %v5781_v1 = vadd.f32 %v5758_v45, %v3703_v29  ;;  %v3604_v60 = vadd.f32 1e-05, %v3596_v2 }
 0xb96   : > { %v3642_v39 = vmul.f32 %v4656_v33, %v3641_v4  ;;  %v3648_v40 = vmul.f32 %v4658_v52, %v3603_v35  ;;  %vm3654_vm13 = vweird.f32 %v4658_v52 }
 0xb97   : > { %3725 = vst.msk [vmem:[#allocation2 + $0x10] sm:$0xff] %vm550_vm1, %v5781_v1  ;;  %4659 = vrsqrt.f32 %v3604_v60  ;;  %vm3655_vm15 = vmor %vm3653_vm14, %vm3654_vm13  ;;  %vm3663_vm2 = vweird.f32 %v3604_v60 }
 0xb98   : > { %v3646_v48 = vsel %vm3645_vm12, %v4656_v33, %v3642_v39  ;;  %v3649_v11 = vmul.f32 %v4658_v52, %v3648_v40 }
 0xb99   : > { %v3690_v46 = vmul.f32 %v3646_v48, %v5723_v63 }
 0xb9a   : > { %v3650_v36 = vmul.f32 0.5, %v3649_v11 }
 0xb9b   : > { %v3704_v34 = vmul.f32 %v5755_v51, %v3690_v46 }
 0xb9c   : > { %v3651_v37 = vsub.f32 1.5, %v3650_v36 }
 0xb9d   : > { %v4660_v13 = vpop.eup %4659  ;;  %v5788_v12 = vadd.f32 %v5758_v45, %v3704_v34 }
 0xb9e   : > { %v3652_v22 = vmul.f32 %v4658_v52, %v3651_v37  ;;  %v3658_v10 = vmul.f32 %v4660_v13, %v3604_v60  ;;  %vm3664_vm0 = vweird.f32 %v4660_v13 }
 0xb9f   : > { %3726 = vst.msk [vmem:[#allocation2 + $0x18] sm:$0xff] %vm550_vm1, %v5788_v12  ;;  %vm3665_vm3 = vmor %vm3663_vm2, %vm3664_vm0 }
 0xba0   : > { %v3656_v15 = vsel %vm3655_vm15, %v4658_v52, %v3652_v22  ;;  %v3659_v44 = vmul.f32 %v4660_v13, %v3658_v10 }
 0xba1   : > { %v3691_v63 = vmul.f32 %v3656_v15, %v5729_v62 }
 0xba2   : > { %v3660_v25 = vmul.f32 0.5, %v3659_v44 }
 0xba3   : > { %v3705_v59 = vmul.f32 %v5755_v51, %v3691_v63 }
 0xba4   : > { %v3661_v8 = vsub.f32 1.5, %v3660_v25 }
 0xba5   : > { %v3719_v56 = vadd.f32 %v5758_v45, %v3705_v59 }
 0xba6   : > { %v3662_v43 = vmul.f32 %v4660_v13, %v3661_v8 }
 0xba7   : > { %3727 = vst.msk [vmem:[#allocation2 + $0x20] sm:$0xff] %vm550_vm1, %v3719_v56 }
 0xba8   : > { %v3666_v3 = vsel %vm3665_vm3, %v4660_v13, %v3662_v43 }
 0xba9   : > { %v3692_v17 = vmul.f32 %v3666_v3, %v5735_v58 }
 0xbab   : > { %v3706_v6 = vmul.f32 %v5755_v51, %v3692_v17 }
 0xbad   : > { %v3720_v57 = vadd.f32 %v5758_v45, %v3706_v6 }
 0xbaf   : > { %3728 = vst.msk [vmem:[#allocation2 + $0x28] sm:$0xff] %vm550_vm1, %v3720_v57 }
 0xbd9   : > { %v3587_v62 = vpop.xlane.xlu1 %3586 }
 0xbda   : > { %v3597_v24 = vmul.f32 %v3587_v62, %v5544_v20 }
 0xbdc   : > { %v3605_v61 = vadd.f32 1e-05, %v3597_v24 }
 0xbde   : > { %4661 = vrsqrt.f32 %v3605_v61  ;;  %vm3673_vm5 = vweird.f32 %v3605_v61 }
 0xbe1   : > { %v3590_v28 = vpop.xlane.xlu2 %3589 }
 0xbe2   : > { %v3598_v26 = vmul.f32 %v3590_v28, %v5544_v20 }
 0xbe4   : > { %v4662_v0 = vpop.eup %4661  ;;  %v3606_v27 = vadd.f32 1e-05, %v3598_v26 }
 0xbe5   : > { %v3668_v30 = vmul.f32 %v4662_v0, %v3605_v61  ;;  %vm3674_vm4 = vweird.f32 %v4662_v0 }
 0xbe6   : > { %4663 = vrsqrt.f32 %v3606_v27  ;;  %vm3675_vm6 = vmor %vm3673_vm5, %vm3674_vm4  ;;  %vm3683_vm8 = vweird.f32 %v3606_v27 }
 0xbe7   : > { %v3669_v32 = vmul.f32 %v4662_v0, %v3668_v30 }
 0xbe9   : > { %v3670_v58 = vmul.f32 0.5, %v3669_v32 }
 0xbeb   : > { %v3671_v38 = vsub.f32 1.5, %v3670_v58 }
 0xbec   : > { %v4664_v53 = vpop.eup %4663 }
 0xbed   : > { %v3672_v23 = vmul.f32 %v4662_v0, %v3671_v38  ;;  %v3678_v16 = vmul.f32 %v4664_v53, %v3606_v27  ;;  %vm3684_vm7 = vweird.f32 %v4664_v53 }
 0xbee   : > { %vm3685_vm9 = vmor %vm3683_vm8, %vm3684_vm7 }
 0xbef   : > { %v3676_v47 = vsel %vm3675_vm6, %v4662_v0, %v3672_v23  ;;  %v3679_v55 = vmul.f32 %v4664_v53, %v3678_v16 }
 0xbf0   : > { %v3693_v5 = vmul.f32 %v3676_v47, %v5742_v7 }
 0xbf1   : > { %v3680_v31 = vmul.f32 0.5, %v3679_v55 }
 0xbf2   : > { %v3707_v20 = vmul.f32 %v5755_v51, %v3693_v5 }
 0xbf3   : > { %v3681_v33 = vsub.f32 1.5, %v3680_v31 }
 0xbf4   : > { %v3721_v35 = vadd.f32 %v5758_v45, %v3707_v20 }
 0xbf5   : > { %v3682_v9 = vmul.f32 %v4664_v53, %v3681_v33 }
 0xbf6   : > { %3729 = vst.msk [vmem:[#allocation2 + $0x30] sm:$0xff] %vm550_vm1, %v3721_v35 }
 0xbf7   : > { %v3686_v19 = vsel %vm3685_vm9, %v4664_v53, %v3682_v9 }
 0xbf8   : > { %v3694_v41 = vmul.f32 %v3686_v19, %v5749_v49 }
 0xbfa   : > { %v3708_v50 = vmul.f32 %v5755_v51, %v3694_v41  ;;  %3734 = sbr.rel (%p4343_p7) target bundleno = 3081 (0xc09), region = 72 }
 0xbfc   : > { %v3722_v54 = vadd.f32 %v5758_v45, %v3708_v50 }
 0xbfe   : > { %3730 = vst.msk [vmem:[#allocation2 + $0x38] sm:$0xff] %vm550_vm1, %v3722_v54 }
 0xbff   : > { %v3735_v7 = vpack.c.bf16 %v5763_v21, %v5763_v21  ;;  %vm3743_vm10 = vcmask 257024   ;;  %v3736_v49 = vpack.c.bf16 %v5771_v18, %v5771_v18  ;;  %v3737_v51 = vpack.c.bf16 %v5781_v1, %v5781_v1 }
 0xc00   : > { %v3738_v45 = vpack.c.bf16 %v5788_v12, %v5788_v12  ;;  %v3739_v14 = vpack.c.bf16 %v3719_v56, %v3719_v56  ;;  %v3740_v42 = vpack.c.bf16 %v3720_v57, %v3720_v57  ;;  %v3741_v29 = vpack.c.bf16 %v3721_v35, %v3721_v35 }
 0xc01   : > { %3744 = vst.msk [vmem:[%s4812_s30] sm:$0xf] %vm3743_vm10, %v3735_v7  ;;  %v3742_v2 = vpack.c.bf16 %v3722_v54, %v3722_v54 }
 0xc02   : > { %3745 = vst.msk [vmem:[%s4812_s30 + $0x4] sm:$0xf] %vm3743_vm10, %v3736_v49 }
 0xc03   : > { %3746 = vst.msk [vmem:[%s4812_s30 + $0x8] sm:$0xf] %vm3743_vm10, %v3737_v51 }
 0xc04   : > { %3747 = vst.msk [vmem:[%s4812_s30 + $0xc] sm:$0xf] %vm3743_vm10, %v3738_v45 }
 0xc05   : > { %3748 = vst.msk [vmem:[%s4812_s30 + $0x10] sm:$0xf] %vm3743_vm10, %v3739_v14 }
 0xc06   : > { %3749 = vst.msk [vmem:[%s4812_s30 + $0x14] sm:$0xf] %vm3743_vm10, %v3740_v42 }
 0xc07   : > { %3750 = vst.msk [vmem:[%s4812_s30 + $0x18] sm:$0xf] %vm3743_vm10, %v3741_v29 }
 0xc08   : > { %3751 = vst.msk [vmem:[%s4812_s30 + $0x1c] sm:$0xf] %vm3743_vm10, %v3742_v2 }
 0xc09 PF: > { %s21_s21 = sadd.s32 1, %s4711_s21   ;;  %s5854_s17 = smov %s4703_s19 }
 0xc0a   : > { %p18_p8 = scmp.ge.s32.totalorder %s21_s21, 6   ;;  %s5855_s18 = smov %s4707_s20 }
 0xc0b   : > { %s5856_s19 = smov %s5859_s22  ;;  %s5857_s20 = smov %s5863_s23 }
 0xc0c   :  { %20 = sbr.rel (!%p18_p8) target bundleno = 3 (0x3), region = 141 }

</bundles_post_ra>
